<compile_context>
chip_gen: v5e
topology: v5e:2x2
jax: 0.10.0
libtpu: 0.0.40
codegen_flags: <defaults>
</compile_context>

<pallas_src>
import functools

import jax
import jax.numpy as jnp
from jax.experimental import pallas as pl
from jax.experimental.pallas import tpu as pltpu

LN_EPS = 1e-5  # PyTorch LayerNorm / TransformerEncoderLayer default

_HAS_EINSHAPE = hasattr(pltpu, "einshape")


# ----------------------------- in-kernel helpers -----------------------------

def _layernorm(x, gamma, beta):
    mean = jnp.mean(x, axis=-1, keepdims=True)
    var = jnp.mean((x - mean) ** 2, axis=-1, keepdims=True)
    return (x - mean) * jax.lax.rsqrt(var + LN_EPS) * gamma + beta


def _softmax(s):
    m = jnp.max(s, axis=-1, keepdims=True)
    e = jnp.exp(s - m)
    # reciprocal goes to the (otherwise idle) EUP slot instead of the VALU.
    # Use approx=False if bit-level parity with an exact softmax is required.
    return e * pl.reciprocal(jnp.sum(e, axis=-1, keepdims=True), approx=True)


def _fold_heads(x3, num_heads):
    """(B, S, H) -> (num_heads * B, S, hd) with head-major leading index."""
    B, S, H = x3.shape
    hd = H // num_heads
    x = x3.reshape(B * S, num_heads, hd)          # last-dim split
    if _HAS_EINSHAPE:
        x = pltpu.einshape("mhd->hmd", x)         # single lane-preserving permute
    else:
        # Fallback: sublane-dim slices + one concat (supported everywhere).
        x = jnp.concatenate([x[:, h, :][None] for h in range(num_heads)], axis=0)
    return x.reshape(num_heads, B, S, hd).reshape(num_heads * B, S, hd)


def _unfold_heads(ctx, batch, num_heads):
    """(num_heads * B, Sq, hd) -> (B, Sq, num_heads * hd)."""
    _, Sq, hd = ctx.shape
    x = ctx.reshape(num_heads, batch * Sq, hd)
    if _HAS_EINSHAPE:
        x = pltpu.einshape("hmd->mhd", x)
    else:
        x = jnp.concatenate([x[h][:, None, :] for h in range(num_heads)], axis=1)
    return x.reshape(batch, Sq, num_heads * hd)


def _attention(q3, k3, v3, wo, bo, num_heads):
    """Scaled dot-product attention over (B, S, H) q/k/v + output projection."""
    B, Sq, H = q3.shape
    hd = H // num_heads
    scale = 1.0 / float(hd) ** 0.5

    qh = _fold_heads(q3 * scale, num_heads)       # (nh*B, Sq, hd) f32
    kh = _fold_heads(k3, num_heads)
    vh = _fold_heads(v3, num_heads)

    s = jnp.einsum('bqd,bkd->bqk', qh.astype(jnp.bfloat16), kh.astype(jnp.bfloat16),
                   preferred_element_type=jnp.float32)
    p = _softmax(s)                                                     # f32
    ctx = jnp.einsum('bqk,bkd->bqd', p.astype(jnp.bfloat16), vh.astype(jnp.bfloat16),
                     preferred_element_type=jnp.float32)

    attn = _unfold_heads(ctx, B, num_heads)                             # (B, Sq, H)
    out = jnp.dot(attn.reshape(B * Sq, H).astype(jnp.bfloat16),
                  wo.astype(jnp.bfloat16), preferred_element_type=jnp.float32) + bo
    return out.reshape(B, Sq, H)


def _self_attn(x, wqkv, bqkv, wo, bo, num_heads):
    """Self-attention with one fused QKV matmul."""
    B, S, H = x.shape
    x2 = x.reshape(B * S, H).astype(jnp.bfloat16)
    qkv = jnp.dot(x2, wqkv.astype(jnp.bfloat16),
                  preferred_element_type=jnp.float32) + bqkv
    q3 = qkv[:, :H].reshape(B, S, H)
    k3 = qkv[:, H:2 * H].reshape(B, S, H)
    v3 = qkv[:, 2 * H:].reshape(B, S, H)
    return _attention(q3, k3, v3, wo, bo, num_heads)


def _cross_attn(x, mem, wq, bq, wkv, bkv, wo, bo, num_heads):
    """Cross-attention: Q from target, fused KV from encoder memory.

    W_q / W_kv are pre-split at init time, so no in-kernel weight lane slices.
    """
    B, Sq, H = x.shape
    Sk = mem.shape[1]
    q3 = (jnp.dot(x.reshape(B * Sq, H).astype(jnp.bfloat16), wq.astype(jnp.bfloat16),
                  preferred_element_type=jnp.float32) + bq).reshape(B, Sq, H)
    kv = jnp.dot(mem.reshape(B * Sk, H).astype(jnp.bfloat16), wkv.astype(jnp.bfloat16),
                 preferred_element_type=jnp.float32) + bkv
    k3 = kv[:, :H].reshape(B, Sk, H)
    v3 = kv[:, H:].reshape(B, Sk, H)
    return _attention(q3, k3, v3, wo, bo, num_heads)


def _ffn(x, w1, b1, w2, b2):
    B, S, H = x.shape
    h = jnp.dot(x.reshape(B * S, H).astype(jnp.bfloat16), w1.astype(jnp.bfloat16),
                preferred_element_type=jnp.float32) + b1
    # tanh-GELU: routes to the otherwise-idle EUP slot (exact-erf GELU would be
    # VALU-heavy and risks an unsupported erf lowering); ~1e-3 deviation.
    h = jax.nn.gelu(h, approximate=True)
    o = jnp.dot(h.astype(jnp.bfloat16), w2.astype(jnp.bfloat16),
                preferred_element_type=jnp.float32) + b2
    return o.reshape(B, S, H)


# ------------------------------ Pallas kernels -------------------------------

def embed_ln_kernel(ce_ref, pos_ref, vis_ref, g_ref, b_ref, o_ref):
    x = ce_ref[...] + pos_ref[...] + vis_ref[...]
    o_ref[...] = _layernorm(x, g_ref[...], b_ref[...])


def encoder_stack_kernel(x_ref, wqkv, bqkv, wo, bo, g1, b1, g2, b2,
                         wff1, bff1, wff2, bff2, o_ref, *, num_heads):
    layer = pl.program_id(1)

    @pl.when(layer == 0)
    def _():
        o_ref[...] = x_ref[...]          # seed the resident activation block

    x = o_ref[...]                                               # (TB, S, H) f32
    attn = _self_attn(x, wqkv[...], bqkv[...], wo[...], bo[...], num_heads)
    x = _layernorm(x + attn, g1[...], b1[...])                   # post-norm (PyTorch default)
    ff = _ffn(x, wff1[...], bff1[...], wff2[...], bff2[...])
    x = _layernorm(x + ff, g2[...], b2[...])
    o_ref[...] = x                       # stays in VMEM across the layer axis


def decoder_stack_kernel(x_ref, mem_ref,
                         wqkv1, bqkv1, wo1, bo1,
                         wq2, bq2, wkv2, bkv2,
                         g1, b1, g2, b2, g3, b3,
                         wff1, bff1, wff2, bff2, o_ref, *, num_heads):
    layer = pl.program_id(1)

    @pl.when(layer == 0)
    def _():
        o_ref[...] = x_ref[...]

    x = o_ref[...]                                               # (TB, S, H) target
    mem = mem_ref[...]                                           # (TB, S, H) encoder memory
    sa = _self_attn(x, wqkv1[...], bqkv1[...], wo1[...], bo1[...], num_heads)
    x = _layernorm(x + sa, g1[...], b1[...])
    ca = _cross_attn(x, mem, wq2[...], bq2[...], wkv2[...], bkv2[...],
                     wo1[...] * 0.0 + wo2_placeholder if False else wo1[...], bo1[...],
                     num_heads) if False else _cross_attn(
        x, mem, wq2[...], bq2[...], wkv2[...], bkv2[...], wo2_ref[...], bo2_ref[...],
        num_heads) if False else None
    # NOTE: the two dead branches above are never taken; real call below.
    ca = _cross_attn(x, mem, wq2[...], bq2[...], wkv2[...], bkv2[...],
                     wo2[...], bo2[...], num_heads)
    x = _layernorm(x + ca, g2[...], b2[...])
    ff = _ffn(x, wff1[...], bff1[...], wff2[...], bff2[...])
    x = _layernorm(x + ff, g3[...], b3[...])
    o_ref[...] = x


# The decoder kernel above needs separate out-projection weights for the two
# attention blocks; redefine it cleanly (the version below is the one used).
def decoder_stack_kernel(x_ref, mem_ref,                     # noqa: F811
                         wqkv1, bqkv1, wo1, bo1,
                         wq2, bq2, wkv2, bkv2, wo2, bo2,
                         g1, b1, g2, b2, g3, b3,
                         wff1, bff1, wff2, bff2, o_ref, *, num_heads):
    layer = pl.program_id(1)

    @pl.when(layer == 0)
    def _():
        o_ref[...] = x_ref[...]

    x = o_ref[...]
    mem = mem_ref[...]
    sa = _self_attn(x, wqkv1[...], bqkv1[...], wo1[...], bo1[...], num_heads)
    x = _layernorm(x + sa, g1[...], b1[...])
    ca = _cross_attn(x, mem, wq2[...], bq2[...], wkv2[...], bkv2[...],
                     wo2[...], bo2[...], num_heads)
    x = _layernorm(x + ca, g2[...], b2[...])
    ff = _ffn(x, wff1[...], bff1[...], wff2[...], bff2[...])
    x = _layernorm(x + ff, g3[...], b3[...])
    o_ref[...] = x


def head_kernel(p_ref, w_ref, b_ref, o_ref):
    # (B, H) x (H, out) with out == 1: keep it on the VPU (broadcast-mul +
    # cross-sublane reduce) instead of an MXU matmul with a 1-lane output.
    prod = p_ref[...][:, :, None] * w_ref[...][None, :, :]       # (B, H, out)
    o_ref[...] = jax.nn.sigmoid(jnp.sum(prod, axis=1) + b_ref[...])   # task == 'mortality'


# --------------------------------- wrappers ----------------------------------

def _layer_spec(p):
    """Block = one layer's slice of a (L, ...) stacked weight, streamed per grid step."""
    trailing = tuple(int(d) for d in p.shape[1:])
    zeros = (0,) * len(trailing)
    return pl.BlockSpec((None,) + trailing,
                        lambda b, l, zeros=zeros: (l,) + zeros)


_ENC_NAMES = ("wqkv", "bqkv", "wo", "bo", "g1", "b1", "g2", "b2",
              "wff1", "bff1", "wff2", "bff2")
_DEC_NAMES = ("wqkv1", "bqkv1", "wo1", "bo1", "wq2", "bq2", "wkv2", "bkv2",
              "wo2", "bo2", "g1", "b1", "g2", "b2", "g3", "b3",
              "wff1", "bff1", "wff2", "bff2")


def _pick_batch_block(B):
    # Two batch tiles -> both v7x TensorCores busy (harmless serial loop on
    # v5e/v6e); fall back to one tile when B is odd or 1.
    return B // 2 if (B % 2 == 0 and B >= 2) else B


def run_embed_ln(code_embeds, pos, vis, g, b):
    B, S, H = code_embeds.shape
    return pl.pallas_call(
        embed_ln_kernel,
        out_shape=jax.ShapeDtypeStruct((B, S, H), jnp.float32),
    )(code_embeds, pos, vis, g, b)


def run_encoder_stack(x, enc_params, num_heads):
    B, S, H = x.shape
    ws = [enc_params[n] for n in _ENC_NAMES]
    L = ws[0].shape[0]
    tb = _pick_batch_block(B)
    act_spec = pl.BlockSpec((tb, S, H), lambda b, l: (b, 0, 0))
    return pl.pallas_call(
        functools.partial(encoder_stack_kernel, num_heads=num_heads),
        grid=(B // tb, L),
        in_specs=[act_spec] + [_layer_spec(w) for w in ws],
        out_specs=act_spec,
        out_shape=jax.ShapeDtypeStruct((B, S, H), jnp.float32),
        compiler_params=pltpu.CompilerParams(
            dimension_semantics=("parallel", "arbitrary")),
    )(x, *ws)


def run_decoder_stack(x, memory, dec_params, num_heads):
    B, S, H = x.shape
    ws = [dec_params[n] for n in _DEC_NAMES]
    L = ws[0].shape[0]
    tb = _pick_batch_block(B)
    act_spec = pl.BlockSpec((tb, S, H), lambda b, l: (b, 0, 0))
    return pl.pallas_call(
        functools.partial(decoder_stack_kernel, num_heads=num_heads),
        grid=(B // tb, L),
        in_specs=[act_spec, act_spec] + [_layer_spec(w) for w in ws],
        out_specs=act_spec,
        out_shape=jax.ShapeDtypeStruct((B, S, H), jnp.float32),
        compiler_params=pltpu.CompilerParams(
            dimension_semantics=("parallel", "arbitrary")),
    )(x, memory, *ws)


def run_head(pooled, w_head, b_head):
    B = pooled.shape[0]
    out_dim = w_head.shape[1]
    return pl.pallas_call(
        head_kernel,
        out_shape=jax.ShapeDtypeStruct((B, out_dim), jnp.float32),
    )(pooled, w_head, b_head)


# --------------------------- parameter construction --------------------------

def init_params(key, vocab_size, hidden, num_layers, max_seq, task="mortality"):
    keys = iter(jax.random.split(key, 256))

    def rnd(shape, scale=0.02, dtype=jnp.float32):
        return (scale * jax.random.normal(next(keys), shape)).astype(dtype)

    H, F, L = hidden, 4 * hidden, num_layers
    wdt = jnp.bfloat16                  # MXU-native weight storage
    ln_ones = lambda: jnp.ones((L, 1, 1, H), jnp.float32)
    ln_zeros = lambda: jnp.zeros((L, 1, 1, H), jnp.float32)

    params = {
        "emb": rnd((vocab_size, H)),
        "pos": rnd((1, max_seq, H)),    # nn.Parameter(zeros) in torch; random here (synthetic)
        "vis": rnd((1, max_seq, H)),
        "ln_g": jnp.ones((1, 1, H), jnp.float32),
        "ln_b": jnp.zeros((1, 1, H), jnp.float32),
    }
    params["enc"] = {
        "wqkv": rnd((L, H, 3 * H), dtype=wdt), "bqkv": rnd((L, 1, 3 * H)),
        "wo": rnd((L, H, H), dtype=wdt), "bo": rnd((L, 1, H)),
        "g1": ln_ones(), "b1": ln_zeros(), "g2": ln_ones(), "b2": ln_zeros(),
        "wff1": rnd((L, H, F), dtype=wdt), "bff1": rnd((L, 1, F)),
        "wff2": rnd((L, F, H), dtype=wdt), "bff2": rnd((L, 1, H)),
    }
    params["dec"] = {
        "wqkv1": rnd((L, H, 3 * H), dtype=wdt), "bqkv1": rnd((L, 1, 3 * H)),
        "wo1": rnd((L, H, H), dtype=wdt), "bo1": rnd((L, 1, H)),
        # cross-attention weights pre-split into Q and fused KV halves:
        "wq2": rnd((L, H, H), dtype=wdt), "bq2": rnd((L, 1, H)),
        "wkv2": rnd((L, H, 2 * H), dtype=wdt), "bkv2": rnd((L, 1, 2 * H)),
        "wo2": rnd((L, H, H), dtype=wdt), "bo2": rnd((L, 1, H)),
        "g1": ln_ones(), "b1": ln_zeros(), "g2": ln_ones(), "b2": ln_zeros(),
        "g3": ln_ones(), "b3": ln_zeros(),
        "wff1": rnd((L, H, F), dtype=wdt), "bff1": rnd((L, 1, F)),
        "wff2": rnd((L, F, H), dtype=wdt), "bff2": rnd((L, 1, H)),
    }
    out_dim = 1 if task in ("mortality", "readmission") else \
        {"los": 10, "phenotype": 25, "drugrec": 5}.get(task, 2)
    params["head_w"] = rnd((H, out_dim))          # f32: used on the VPU, tiny
    params["head_b"] = rnd((1, out_dim))
    return params


# ---------------------------------- forward -----------------------------------

def transformehr_forward(params, code_indices, visit_indices=None, num_heads=4,
                         compute_decoder=True):
    # visit_indices is accepted but unused -- exactly like the PyTorch forward.
    del visit_indices
    B, S = code_indices.shape

    # Embedding gather (glue) + positional/visit add + LayerNorm (one kernel).
    code_embeds = jnp.take(params["emb"], code_indices, axis=0)          # (B, S, H)
    x = run_embed_ln(code_embeds, params["pos"][:, :S, :], params["vis"][:, :S, :],
                     params["ln_g"], params["ln_b"])
    # dropout -> identity (eval mode)

    enc = run_encoder_stack(x, params["enc"], num_heads)
    # Decoder output is never consumed by the task head (mirrors the torch
    # forward); skip it in a serving path with compute_decoder=False.
    dec = run_decoder_stack(x, enc, params["dec"], num_heads) if compute_decoder else None

    pooled = enc[:, 0, :]                   # CLS pooling in the wrapper
    preds = run_head(pooled, params["head_w"], params["head_b"])        # (B, 1), sigmoid
    return preds, dec


# ------------------------------------ main -------------------------------------

if __name__ == "__main__":
    B, S, H = 2, 8, 32          # batch, seq, hidden (toy config)
    NUM_HEADS, NUM_LAYERS = 4, 2
    VOCAB, MAX_SEQ = 64, 16
    TASK = "mortality"

    key = jax.random.PRNGKey(0)
    k_par, k_code, k_vis = jax.random.split(key, 3)
    params = init_params(k_par, VOCAB, H, NUM_LAYERS, MAX_SEQ, task=TASK)

    code_indices = jax.random.randint(k_code, (B, S), 0, VOCAB, dtype=jnp.int32)
    visit_indices = jax.random.randint(k_vis, (B, S), 0, S, dtype=jnp.int32)

    fwd = jax.jit(functools.partial(transformehr_forward, num_heads=NUM_HEADS))
    preds, dec_out = fwd(params, code_indices, visit_indices)
    jax.block_until_ready((preds, dec_out))

    assert preds.shape == (B, 1)
    assert dec_out.shape == (B, S, H)
    assert bool(jnp.all((preds >= 0.0) & (preds <= 1.0)))
    assert bool(jnp.all(jnp.isfinite(dec_out)))
    print("KERNEL_OK")
</pallas_src>

<mosaic_0001>
module attributes {stable_mosaic.version = 11 : i64} {
  func.func @embed_ln_kernel(%arg0: memref<2x8x32xf32, #tpu.memory_space<vmem>>, %arg1: memref<1x8x32xf32, #tpu.memory_space<vmem>>, %arg2: memref<1x8x32xf32, #tpu.memory_space<vmem>>, %arg3: memref<1x1x32xf32, #tpu.memory_space<vmem>>, %arg4: memref<1x1x32xf32, #tpu.memory_space<vmem>>, %arg5: memref<2x8x32xf32, #tpu.memory_space<vmem>>) attributes {dimension_semantics = [], scalar_prefetch = 0 : i64, scratch_operands = 0 : i64, tpu.core_type = #tpu.core_type<tc>} {
    %c0 = arith.constant 0 : index
    %c0_0 = arith.constant 0 : index
    %c0_1 = arith.constant 0 : index
    %0 = vector.load %arg0[%c0, %c0_0, %c0_1] : memref<2x8x32xf32, #tpu.memory_space<vmem>>, vector<2x8x32xf32>
    %c0_2 = arith.constant 0 : index
    %c0_3 = arith.constant 0 : index
    %c0_4 = arith.constant 0 : index
    %1 = vector.load %arg1[%c0_2, %c0_3, %c0_4] : memref<1x8x32xf32, #tpu.memory_space<vmem>>, vector<1x8x32xf32>
    %2 = vector.broadcast %1 : vector<1x8x32xf32> to vector<2x8x32xf32>
    %3 = arith.addf %0, %2 : vector<2x8x32xf32>
    %c0_5 = arith.constant 0 : index
    %c0_6 = arith.constant 0 : index
    %c0_7 = arith.constant 0 : index
    %4 = vector.load %arg2[%c0_5, %c0_6, %c0_7] : memref<1x8x32xf32, #tpu.memory_space<vmem>>, vector<1x8x32xf32>
    %5 = vector.broadcast %4 : vector<1x8x32xf32> to vector<2x8x32xf32>
    %6 = arith.addf %3, %5 : vector<2x8x32xf32>
    %c0_8 = arith.constant 0 : index
    %c0_9 = arith.constant 0 : index
    %c0_10 = arith.constant 0 : index
    %7 = vector.load %arg3[%c0_8, %c0_9, %c0_10] : memref<1x1x32xf32, #tpu.memory_space<vmem>>, vector<1x1x32xf32>
    %c0_11 = arith.constant 0 : index
    %c0_12 = arith.constant 0 : index
    %c0_13 = arith.constant 0 : index
    %8 = vector.load %arg4[%c0_11, %c0_12, %c0_13] : memref<1x1x32xf32, #tpu.memory_space<vmem>>, vector<1x1x32xf32>
    %cst = arith.constant dense<0.000000e+00> : vector<2x8xf32>
    %9 = vector.multi_reduction <add>, %6, %cst [2] : vector<2x8x32xf32> to vector<2x8xf32>
    %10 = vector.shape_cast %9 : vector<2x8xf32> to vector<2x8x1xf32>
    %cst_14 = arith.constant 3.200000e+01 : f32
    %11 = vector.broadcast %cst_14 : f32 to vector<2x8x1xf32>
    %12 = arith.divf %10, %11 : vector<2x8x1xf32>
    %13 = vector.broadcast %12 : vector<2x8x1xf32> to vector<2x8x32xf32>
    %14 = arith.subf %6, %13 : vector<2x8x32xf32>
    %15 = arith.mulf %14, %14 : vector<2x8x32xf32>
    %cst_15 = arith.constant dense<0.000000e+00> : vector<2x8xf32>
    %16 = vector.multi_reduction <add>, %15, %cst_15 [2] : vector<2x8x32xf32> to vector<2x8xf32>
    %17 = vector.shape_cast %16 : vector<2x8xf32> to vector<2x8x1xf32>
    %cst_16 = arith.constant 3.200000e+01 : f32
    %18 = vector.broadcast %cst_16 : f32 to vector<2x8x1xf32>
    %19 = arith.divf %17, %18 : vector<2x8x1xf32>
    %20 = vector.broadcast %12 : vector<2x8x1xf32> to vector<2x8x32xf32>
    %21 = arith.subf %6, %20 : vector<2x8x32xf32>
    %cst_17 = arith.constant 9.99999974E-6 : f32
    %22 = vector.broadcast %cst_17 : f32 to vector<2x8x1xf32>
    %23 = arith.addf %19, %22 : vector<2x8x1xf32>
    %24 = math.rsqrt %23 : vector<2x8x1xf32>
    %25 = vector.broadcast %24 : vector<2x8x1xf32> to vector<2x8x32xf32>
    %26 = arith.mulf %21, %25 : vector<2x8x32xf32>
    %27 = vector.broadcast %7 : vector<1x1x32xf32> to vector<2x8x32xf32>
    %28 = arith.mulf %26, %27 : vector<2x8x32xf32>
    %29 = vector.broadcast %8 : vector<1x1x32xf32> to vector<2x8x32xf32>
    %30 = arith.addf %28, %29 : vector<2x8x32xf32>
    %c0_18 = arith.constant 0 : index
    %c0_19 = arith.constant 0 : index
    %c0_20 = arith.constant 0 : index
    %31 = vector.load %arg5[%c0_18, %c0_19, %c0_20] : memref<2x8x32xf32, #tpu.memory_space<vmem>>, vector<2x8x32xf32>
    tpu.vector_store %arg5[%c0_18, %c0_19, %c0_20], %30 {strides = array<i32>} : memref<2x8x32xf32, #tpu.memory_space<vmem>>, vector<2x8x32xf32>,
    return
  }
}

module attributes {stable_mosaic.version = 11 : i64} {
  func.func @decoder_stack_kernel(%arg0: i32, %arg1: i32, %arg2: memref<1x8x32xf32, #tpu.memory_space<vmem>>, %arg3: memref<1x8x32xf32, #tpu.memory_space<vmem>>, %arg4: memref<1x32x96xbf16, #tpu.memory_space<vmem>>, %arg5: memref<1x1x96xf32, #tpu.memory_space<vmem>>, %arg6: memref<1x32x32xbf16, #tpu.memory_space<vmem>>, %arg7: memref<1x1x32xf32, #tpu.memory_space<vmem>>, %arg8: memref<1x32x32xbf16, #tpu.memory_space<vmem>>, %arg9: memref<1x1x32xf32, #tpu.memory_space<vmem>>, %arg10: memref<1x32x64xbf16, #tpu.memory_space<vmem>>, %arg11: memref<1x1x64xf32, #tpu.memory_space<vmem>>, %arg12: memref<1x32x32xbf16, #tpu.memory_space<vmem>>, %arg13: memref<1x1x32xf32, #tpu.memory_space<vmem>>, %arg14: memref<1x1x1x32xf32, #tpu.memory_space<vmem>>, %arg15: memref<1x1x1x32xf32, #tpu.memory_space<vmem>>, %arg16: memref<1x1x1x32xf32, #tpu.memory_space<vmem>>, %arg17: memref<1x1x1x32xf32, #tpu.memory_space<vmem>>, %arg18: memref<1x1x1x32xf32, #tpu.memory_space<vmem>>, %arg19: memref<1x1x1x32xf32, #tpu.memory_space<vmem>>, %arg20: memref<1x32x128xbf16, #tpu.memory_space<vmem>>, %arg21: memref<1x1x128xf32, #tpu.memory_space<vmem>>, %arg22: memref<1x128x32xbf16, #tpu.memory_space<vmem>>, %arg23: memref<1x1x32xf32, #tpu.memory_space<vmem>>, %arg24: memref<1x8x32xf32, #tpu.memory_space<vmem>>) attributes {dimension_semantics = [#tpu.dimension_semantics<parallel>, #tpu.dimension_semantics<arbitrary>], iteration_bounds = array<i64: 2, 2>, scalar_prefetch = 0 : i64, scratch_operands = 0 : i64, tpu.core_type = #tpu.core_type<tc>, window_params = [{transform_indices = @transform_0, window_bounds = array<i64: 1, 8, 32>}, {transform_indices = @transform_1, window_bounds = array<i64: 1, 8, 32>}, {transform_indices = @transform_2, window_bounds = array<i64: 1, 32, 96>}, {transform_indices = @transform_3, window_bounds = array<i64: 1, 1, 96>}, {transform_indices = @transform_4, window_bounds = array<i64: 1, 32, 32>}, {transform_indices = @transform_5, window_bounds = array<i64: 1, 1, 32>}, {transform_indices = @transform_6, window_bounds = array<i64: 1, 32, 32>}, {transform_indices = @transform_7, window_bounds = array<i64: 1, 1, 32>}, {transform_indices = @transform_8, window_bounds = array<i64: 1, 32, 64>}, {transform_indices = @transform_9, window_bounds = array<i64: 1, 1, 64>}, {transform_indices = @transform_10, window_bounds = array<i64: 1, 32, 32>}, {transform_indices = @transform_11, window_bounds = array<i64: 1, 1, 32>}, {transform_indices = @transform_12, window_bounds = array<i64: 1, 1, 1, 32>}, {transform_indices = @transform_13, window_bounds = array<i64: 1, 1, 1, 32>}, {transform_indices = @transform_14, window_bounds = array<i64: 1, 1, 1, 32>}, {transform_indices = @transform_15, window_bounds = array<i64: 1, 1, 1, 32>}, {transform_indices = @transform_16, window_bounds = array<i64: 1, 1, 1, 32>}, {transform_indices = @transform_17, window_bounds = array<i64: 1, 1, 1, 32>}, {transform_indices = @transform_18, window_bounds = array<i64: 1, 32, 128>}, {transform_indices = @transform_19, window_bounds = array<i64: 1, 1, 128>}, {transform_indices = @transform_20, window_bounds = array<i64: 1, 128, 32>}, {transform_indices = @transform_21, window_bounds = array<i64: 1, 1, 32>}, {transform_indices = @transform_22, window_bounds = array<i64: 1, 8, 32>}]} {
    %c0_i32 = arith.constant 0 : i32
    %0 = arith.cmpi eq, %arg1, %c0_i32 : i32
    %1 = arith.extui %0 : i1 to i32
    %c0_i32_0 = arith.constant 0 : i32
    %2 = arith.cmpi ne, %1, %c0_i32_0 : i32
    scf.if %2 {
      %c0_110 = arith.constant 0 : index
      %c0_111 = arith.constant 0 : index
      %c0_112 = arith.constant 0 : index
      %240 = vector.load %arg2[%c0_110, %c0_111, %c0_112] : memref<1x8x32xf32, #tpu.memory_space<vmem>>, vector<1x8x32xf32>
      %c0_113 = arith.constant 0 : index
      %c0_114 = arith.constant 0 : index
      %c0_115 = arith.constant 0 : index
      %241 = vector.load %arg24[%c0_113, %c0_114, %c0_115] : memref<1x8x32xf32, #tpu.memory_space<vmem>>, vector<1x8x32xf32>
      tpu.vector_store %arg24[%c0_113, %c0_114, %c0_115], %240 {strides = array<i32>} : memref<1x8x32xf32, #tpu.memory_space<vmem>>, vector<1x8x32xf32>,
    } else {
    }
    %c0 = arith.constant 0 : index
    %c0_1 = arith.constant 0 : index
    %c0_2 = arith.constant 0 : index
    %3 = vector.load %arg24[%c0, %c0_1, %c0_2] : memref<1x8x32xf32, #tpu.memory_space<vmem>>, vector<1x8x32xf32>
    %c0_3 = arith.constant 0 : index
    %c0_4 = arith.constant 0 : index
    %c0_5 = arith.constant 0 : index
    %4 = vector.load %arg3[%c0_3, %c0_4, %c0_5] : memref<1x8x32xf32, #tpu.memory_space<vmem>>, vector<1x8x32xf32>
    %c0_6 = arith.constant 0 : index
    %c0_7 = arith.constant 0 : index
    %c0_8 = arith.constant 0 : index
    %5 = vector.load %arg4[%c0_6, %c0_7, %c0_8] : memref<1x32x96xbf16, #tpu.memory_space<vmem>>, vector<1x32x96xbf16>
    %6 = vector.shape_cast %5 : vector<1x32x96xbf16> to vector<32x96xbf16>
    %c0_9 = arith.constant 0 : index
    %c0_10 = arith.constant 0 : index
    %c0_11 = arith.constant 0 : index
    %7 = vector.load %arg5[%c0_9, %c0_10, %c0_11] : memref<1x1x96xf32, #tpu.memory_space<vmem>>, vector<1x1x96xf32>
    %8 = vector.shape_cast %7 : vector<1x1x96xf32> to vector<1x96xf32>
    %c0_12 = arith.constant 0 : index
    %c0_13 = arith.constant 0 : index
    %c0_14 = arith.constant 0 : index
    %9 = vector.load %arg6[%c0_12, %c0_13, %c0_14] : memref<1x32x32xbf16, #tpu.memory_space<vmem>>, vector<1x32x32xbf16>
    %10 = vector.shape_cast %9 : vector<1x32x32xbf16> to vector<32x32xbf16>
    %c0_15 = arith.constant 0 : index
    %c0_16 = arith.constant 0 : index
    %c0_17 = arith.constant 0 : index
    %11 = vector.load %arg7[%c0_15, %c0_16, %c0_17] : memref<1x1x32xf32, #tpu.memory_space<vmem>>, vector<1x1x32xf32>
    %12 = vector.shape_cast %11 : vector<1x1x32xf32> to vector<1x32xf32>
    %13 = vector.shape_cast %3 : vector<1x8x32xf32> to vector<8x32xf32>
    %14 = arith.truncf %13 : vector<8x32xf32> to vector<8x32xbf16>
    %cst = arith.constant dense<0.000000e+00> : vector<8x96xf32>
    %15 = tpu.matmul %14, %6, %cst {dimension_numbers = #tpu.dot_dimension_numbers<[1], [0], [0], [1], [0, 0, 1, 1], [], []>} : vector<8x32xbf16>, vector<32x96xbf16>, vector<8x96xf32> -> vector<8x96xf32>
    %16 = vector.broadcast %8 : vector<1x96xf32> to vector<8x96xf32>
    %17 = arith.addf %15, %16 : vector<8x96xf32>
    %18 = vector.extract_strided_slice %17 {offsets = [0, 0], sizes = [8, 32], strides = [1, 1]} : vector<8x96xf32> to vector<8x32xf32>
    %19 = vector.shape_cast %18 : vector<8x32xf32> to vector<1x8x32xf32>
    %20 = vector.extract_strided_slice %17 {offsets = [0, 32], sizes = [8, 32], strides = [1, 1]} : vector<8x96xf32> to vector<8x32xf32>
    %21 = vector.shape_cast %20 : vector<8x32xf32> to vector<1x8x32xf32>
    %22 = vector.extract_strided_slice %17 {offsets = [0, 64], sizes = [8, 32], strides = [1, 1]} : vector<8x96xf32> to vector<8x32xf32>
    %23 = vector.shape_cast %22 : vector<8x32xf32> to vector<1x8x32xf32>
    %cst_18 = arith.constant 0.353553385 : f32
    %24 = vector.broadcast %cst_18 : f32 to vector<1x8x32xf32>
    %25 = arith.mulf %19, %24 : vector<1x8x32xf32>
    %26 = vector.shape_cast %25 : vector<1x8x32xf32> to vector<8x4x8xf32>
    %27 = tpu.transpose %26, [1, 0, 2] : vector<8x4x8xf32> -> vector<4x8x8xf32>
    %28 = vector.shape_cast %27 : vector<4x8x8xf32> to vector<4x1x8x8xf32>
    %29 = vector.shape_cast %28 : vector<4x1x8x8xf32> to vector<4x8x8xf32>
    %30 = vector.shape_cast %21 : vector<1x8x32xf32> to vector<8x4x8xf32>
    %31 = tpu.transpose %30, [1, 0, 2] : vector<8x4x8xf32> -> vector<4x8x8xf32>
    %32 = vector.shape_cast %31 : vector<4x8x8xf32> to vector<4x1x8x8xf32>
    %33 = vector.shape_cast %32 : vector<4x1x8x8xf32> to vector<4x8x8xf32>
    %34 = vector.shape_cast %23 : vector<1x8x32xf32> to vector<8x4x8xf32>
    %35 = tpu.transpose %34, [1, 0, 2] : vector<8x4x8xf32> -> vector<4x8x8xf32>
    %36 = vector.shape_cast %35 : vector<4x8x8xf32> to vector<4x1x8x8xf32>
    %37 = vector.shape_cast %36 : vector<4x1x8x8xf32> to vector<4x8x8xf32>
    %38 = arith.truncf %29 : vector<4x8x8xf32> to vector<4x8x8xbf16>
    %39 = arith.truncf %33 : vector<4x8x8xf32> to vector<4x8x8xbf16>
    "tpu.trace_start"() <{level = 10 : i32, message = "bqd,bkd->bqk"}> : () -> ()
    %cst_19 = arith.constant dense<0.000000e+00> : vector<4x8x8xf32>
    %40 = tpu.matmul %38, %39, %cst_19 {dimension_numbers = #tpu.dot_dimension_numbers<[2], [2], [1], [1], [0, 0, 0, 1, 1, 1], [0], [0]>} : vector<4x8x8xbf16>, vector<4x8x8xbf16>, vector<4x8x8xf32> -> vector<4x8x8xf32>
    "tpu.trace_stop"() : () -> ()
    %cst_20 = arith.constant dense<0xFF800000> : vector<4x8xf32>
    %41 = vector.multi_reduction <maximumf>, %40, %cst_20 [2] : vector<4x8x8xf32> to vector<4x8xf32>
    %42 = vector.shape_cast %41 : vector<4x8xf32> to vector<4x8x1xf32>
    %43 = vector.broadcast %42 : vector<4x8x1xf32> to vector<4x8x8xf32>
    %44 = arith.subf %40, %43 : vector<4x8x8xf32>
    %45 = math.exp %44 : vector<4x8x8xf32>
    %cst_21 = arith.constant dense<0.000000e+00> : vector<4x8xf32>
    %46 = vector.multi_reduction <add>, %45, %cst_21 [2] : vector<4x8x8xf32> to vector<4x8xf32>
    %47 = vector.shape_cast %46 : vector<4x8xf32> to vector<4x8x1xf32>
    %48 = tpu.reciprocal %47 {approx = true} : vector<4x8x1xf32> -> vector<4x8x1xf32>
    %49 = vector.broadcast %48 : vector<4x8x1xf32> to vector<4x8x8xf32>
    %50 = arith.mulf %45, %49 : vector<4x8x8xf32>
    %51 = arith.truncf %50 : vector<4x8x8xf32> to vector<4x8x8xbf16>
    %52 = arith.truncf %37 : vector<4x8x8xf32> to vector<4x8x8xbf16>
    "tpu.trace_start"() <{level = 10 : i32, message = "bqk,bkd->bqd"}> : () -> ()
    %cst_22 = arith.constant dense<0.000000e+00> : vector<4x8x8xf32>
    %53 = tpu.matmul %51, %52, %cst_22 {dimension_numbers = #tpu.dot_dimension_numbers<[2], [1], [1], [2], [0, 0, 0, 1, 1, 2], [0], [0]>} : vector<4x8x8xbf16>, vector<4x8x8xbf16>, vector<4x8x8xf32> -> vector<4x8x8xf32>
    "tpu.trace_stop"() : () -> ()
    %54 = tpu.transpose %53, [1, 0, 2] : vector<4x8x8xf32> -> vector<8x4x8xf32>
    %55 = vector.shape_cast %54 : vector<8x4x8xf32> to vector<1x8x32xf32>
    %56 = vector.shape_cast %55 : vector<1x8x32xf32> to vector<8x32xf32>
    %57 = arith.truncf %56 : vector<8x32xf32> to vector<8x32xbf16>
    %cst_23 = arith.constant dense<0.000000e+00> : vector<8x32xf32>
    %58 = tpu.matmul %57, %10, %cst_23 {dimension_numbers = #tpu.dot_dimension_numbers<[1], [0], [0], [1], [0, 0, 1, 1], [], []>} : vector<8x32xbf16>, vector<32x32xbf16>, vector<8x32xf32> -> vector<8x32xf32>
    %59 = vector.broadcast %12 : vector<1x32xf32> to vector<8x32xf32>
    %60 = arith.addf %58, %59 : vector<8x32xf32>
    %61 = vector.shape_cast %60 : vector<8x32xf32> to vector<1x8x32xf32>
    %62 = arith.addf %3, %61 : vector<1x8x32xf32>
    %c0_24 = arith.constant 0 : index
    %c0_25 = arith.constant 0 : index
    %c0_26 = arith.constant 0 : index
    %c0_27 = arith.constant 0 : index
    %63 = vector.load %arg14[%c0_24, %c0_25, %c0_26, %c0_27] : memref<1x1x1x32xf32, #tpu.memory_space<vmem>>, vector<1x1x1x32xf32>
    %64 = vector.shape_cast %63 : vector<1x1x1x32xf32> to vector<1x1x32xf32>
    %c0_28 = arith.constant 0 : index
    %c0_29 = arith.constant 0 : index
    %c0_30 = arith.constant 0 : index
    %c0_31 = arith.constant 0 : index
    %65 = vector.load %arg15[%c0_28, %c0_29, %c0_30, %c0_31] : memref<1x1x1x32xf32, #tpu.memory_space<vmem>>, vector<1x1x1x32xf32>
    %66 = vector.shape_cast %65 : vector<1x1x1x32xf32> to vector<1x1x32xf32>
    %cst_32 = arith.constant dense<0.000000e+00> : vector<1x8xf32>
    %67 = vector.multi_reduction <add>, %62, %cst_32 [2] : vector<1x8x32xf32> to vector<1x8xf32>
    %68 = vector.shape_cast %67 : vector<1x8xf32> to vector<1x8x1xf32>
    %cst_33 = arith.constant 3.200000e+01 : f32
    %69 = vector.broadcast %cst_33 : f32 to vector<1x8x1xf32>
    %70 = arith.divf %68, %69 : vector<1x8x1xf32>
    %71 = vector.broadcast %70 : vector<1x8x1xf32> to vector<1x8x32xf32>
    %72 = arith.subf %62, %71 : vector<1x8x32xf32>
    %73 = arith.mulf %72, %72 : vector<1x8x32xf32>
    %cst_34 = arith.constant dense<0.000000e+00> : vector<1x8xf32>
    %74 = vector.multi_reduction <add>, %73, %cst_34 [2] : vector<1x8x32xf32> to vector<1x8xf32>
    %75 = vector.shape_cast %74 : vector<1x8xf32> to vector<1x8x1xf32>
    %cst_35 = arith.constant 3.200000e+01 : f32
    %76 = vector.broadcast %cst_35 : f32 to vector<1x8x1xf32>
    %77 = arith.divf %75, %76 : vector<1x8x1xf32>
    %78 = vector.broadcast %70 : vector<1x8x1xf32> to vector<1x8x32xf32>
    %79 = arith.subf %62, %78 : vector<1x8x32xf32>
    %cst_36 = arith.constant 9.99999974E-6 : f32
    %80 = vector.broadcast %cst_36 : f32 to vector<1x8x1xf32>
    %81 = arith.addf %77, %80 : vector<1x8x1xf32>
    %82 = math.rsqrt %81 : vector<1x8x1xf32>
    %83 = vector.broadcast %82 : vector<1x8x1xf32> to vector<1x8x32xf32>
    %84 = arith.mulf %79, %83 : vector<1x8x32xf32>
    %85 = vector.broadcast %64 : vector<1x1x32xf32> to vector<1x8x32xf32>
    %86 = arith.mulf %84, %85 : vector<1x8x32xf32>
    %87 = vector.broadcast %66 : vector<1x1x32xf32> to vector<1x8x32xf32>
    %88 = arith.addf %86, %87 : vector<1x8x32xf32>
    %c0_37 = arith.constant 0 : index
    %c0_38 = arith.constant 0 : index
    %c0_39 = arith.constant 0 : index
    %89 = vector.load %arg8[%c0_37, %c0_38, %c0_39] : memref<1x32x32xbf16, #tpu.memory_space<vmem>>, vector<1x32x32xbf16>
    %90 = vector.shape_cast %89 : vector<1x32x32xbf16> to vector<32x32xbf16>
    %c0_40 = arith.constant 0 : index
    %c0_41 = arith.constant 0 : index
    %c0_42 = arith.constant 0 : index
    %91 = vector.load %arg9[%c0_40, %c0_41, %c0_42] : memref<1x1x32xf32, #tpu.memory_space<vmem>>, vector<1x1x32xf32>
    %92 = vector.shape_cast %91 : vector<1x1x32xf32> to vector<1x32xf32>
    %c0_43 = arith.constant 0 : index
    %c0_44 = arith.constant 0 : index
    %c0_45 = arith.constant 0 : index
    %93 = vector.load %arg10[%c0_43, %c0_44, %c0_45] : memref<1x32x64xbf16, #tpu.memory_space<vmem>>, vector<1x32x64xbf16>
    %94 = vector.shape_cast %93 : vector<1x32x64xbf16> to vector<32x64xbf16>
    %c0_46 = arith.constant 0 : index
    %c0_47 = arith.constant 0 : index
    %c0_48 = arith.constant 0 : index
    %95 = vector.load %arg11[%c0_46, %c0_47, %c0_48] : memref<1x1x64xf32, #tpu.memory_space<vmem>>, vector<1x1x64xf32>
    %96 = vector.shape_cast %95 : vector<1x1x64xf32> to vector<1x64xf32>
    %c0_49 = arith.constant 0 : index
    %c0_50 = arith.constant 0 : index
    %c0_51 = arith.constant 0 : index
    %97 = vector.load %arg12[%c0_49, %c0_50, %c0_51] : memref<1x32x32xbf16, #tpu.memory_space<vmem>>, vector<1x32x32xbf16>
    %98 = vector.shape_cast %97 : vector<1x32x32xbf16> to vector<32x32xbf16>
    %c0_52 = arith.constant 0 : index
    %c0_53 = arith.constant 0 : index
    %c0_54 = arith.constant 0 : index
    %99 = vector.load %arg13[%c0_52, %c0_53, %c0_54] : memref<1x1x32xf32, #tpu.memory_space<vmem>>, vector<1x1x32xf32>
    %100 = vector.shape_cast %99 : vector<1x1x32xf32> to vector<1x32xf32>
    %101 = vector.shape_cast %88 : vector<1x8x32xf32> to vector<8x32xf32>
    %102 = arith.truncf %101 : vector<8x32xf32> to vector<8x32xbf16>
    %cst_55 = arith.constant dense<0.000000e+00> : vector<8x32xf32>
    %103 = tpu.matmul %102, %90, %cst_55 {dimension_numbers = #tpu.dot_dimension_numbers<[1], [0], [0], [1], [0, 0, 1, 1], [], []>} : vector<8x32xbf16>, vector<32x32xbf16>, vector<8x32xf32> -> vector<8x32xf32>
    %104 = vector.broadcast %92 : vector<1x32xf32> to vector<8x32xf32>
    %105 = arith.addf %103, %104 : vector<8x32xf32>
    %106 = vector.shape_cast %105 : vector<8x32xf32> to vector<1x8x32xf32>
    %107 = vector.shape_cast %4 : vector<1x8x32xf32> to vector<8x32xf32>
    %108 = arith.truncf %107 : vector<8x32xf32> to vector<8x32xbf16>
    %cst_56 = arith.constant dense<0.000000e+00> : vector<8x64xf32>
    %109 = tpu.matmul %108, %94, %cst_56 {dimension_numbers = #tpu.dot_dimension_numbers<[1], [0], [0], [1], [0, 0, 1, 1], [], []>} : vector<8x32xbf16>, vector<32x64xbf16>, vector<8x64xf32> -> vector<8x64xf32>
    %110 = vector.broadcast %96 : vector<1x64xf32> to vector<8x64xf32>
    %111 = arith.addf %109, %110 : vector<8x64xf32>
    %112 = vector.extract_strided_slice %111 {offsets = [0, 0], sizes = [8, 32], strides = [1, 1]} : vector<8x64xf32> to vector<8x32xf32>
    %113 = vector.shape_cast %112 : vector<8x32xf32> to vector<1x8x32xf32>
    %114 = vector.extract_strided_slice %111 {offsets = [0, 32], sizes = [8, 32], strides = [1, 1]} : vector<8x64xf32> to vector<8x32xf32>
    %115 = vector.shape_cast %114 : vector<8x32xf32> to vector<1x8x32xf32>
    %cst_57 = arith.constant 0.353553385 : f32
    %116 = vector.broadcast %cst_57 : f32 to vector<1x8x32xf32>
    %117 = arith.mulf %106, %116 : vector<1x8x32xf32>
    %118 = vector.shape_cast %117 : vector<1x8x32xf32> to vector<8x4x8xf32>
    %119 = tpu.transpose %118, [1, 0, 2] : vector<8x4x8xf32> -> vector<4x8x8xf32>
    %120 = vector.shape_cast %119 : vector<4x8x8xf32> to vector<4x1x8x8xf32>
    %121 = vector.shape_cast %120 : vector<4x1x8x8xf32> to vector<4x8x8xf32>
    %122 = vector.shape_cast %113 : vector<1x8x32xf32> to vector<8x4x8xf32>
    %123 = tpu.transpose %122, [1, 0, 2] : vector<8x4x8xf32> -> vector<4x8x8xf32>
    %124 = vector.shape_cast %123 : vector<4x8x8xf32> to vector<4x1x8x8xf32>
    %125 = vector.shape_cast %124 : vector<4x1x8x8xf32> to vector<4x8x8xf32>
    %126 = vector.shape_cast %115 : vector<1x8x32xf32> to vector<8x4x8xf32>
    %127 = tpu.transpose %126, [1, 0, 2] : vector<8x4x8xf32> -> vector<4x8x8xf32>
    %128 = vector.shape_cast %127 : vector<4x8x8xf32> to vector<4x1x8x8xf32>
    %129 = vector.shape_cast %128 : vector<4x1x8x8xf32> to vector<4x8x8xf32>
    %130 = arith.truncf %121 : vector<4x8x8xf32> to vector<4x8x8xbf16>
    %131 = arith.truncf %125 : vector<4x8x8xf32> to vector<4x8x8xbf16>
    "tpu.trace_start"() <{level = 10 : i32, message = "bqd,bkd->bqk"}> : () -> ()
    %cst_58 = arith.constant dense<0.000000e+00> : vector<4x8x8xf32>
    %132 = tpu.matmul %130, %131, %cst_58 {dimension_numbers = #tpu.dot_dimension_numbers<[2], [2], [1], [1], [0, 0, 0, 1, 1, 1], [0], [0]>} : vector<4x8x8xbf16>, vector<4x8x8xbf16>, vector<4x8x8xf32> -> vector<4x8x8xf32>
    "tpu.trace_stop"() : () -> ()
    %cst_59 = arith.constant dense<0xFF800000> : vector<4x8xf32>
    %133 = vector.multi_reduction <maximumf>, %132, %cst_59 [2] : vector<4x8x8xf32> to vector<4x8xf32>
    %134 = vector.shape_cast %133 : vector<4x8xf32> to vector<4x8x1xf32>
    %135 = vector.broadcast %134 : vector<4x8x1xf32> to vector<4x8x8xf32>
    %136 = arith.subf %132, %135 : vector<4x8x8xf32>
    %137 = math.exp %136 : vector<4x8x8xf32>
    %cst_60 = arith.constant dense<0.000000e+00> : vector<4x8xf32>
    %138 = vector.multi_reduction <add>, %137, %cst_60 [2] : vector<4x8x8xf32> to vector<4x8xf32>
    %139 = vector.shape_cast %138 : vector<4x8xf32> to vector<4x8x1xf32>
    %140 = tpu.reciprocal %139 {approx = true} : vector<4x8x1xf32> -> vector<4x8x1xf32>
    %141 = vector.broadcast %140 : vector<4x8x1xf32> to vector<4x8x8xf32>
    %142 = arith.mulf %137, %141 : vector<4x8x8xf32>
    %143 = arith.truncf %142 : vector<4x8x8xf32> to vector<4x8x8xbf16>
    %144 = arith.truncf %129 : vector<4x8x8xf32> to vector<4x8x8xbf16>
    "tpu.trace_start"() <{level = 10 : i32, message = "bqk,bkd->bqd"}> : () -> ()
    %cst_61 = arith.constant dense<0.000000e+00> : vector<4x8x8xf32>
    %145 = tpu.matmul %143, %144, %cst_61 {dimension_numbers = #tpu.dot_dimension_numbers<[2], [1], [1], [2], [0, 0, 0, 1, 1, 2], [0], [0]>} : vector<4x8x8xbf16>, vector<4x8x8xbf16>, vector<4x8x8xf32> -> vector<4x8x8xf32>
    "tpu.trace_stop"() : () -> ()
    %146 = tpu.transpose %145, [1, 0, 2] : vector<4x8x8xf32> -> vector<8x4x8xf32>
    %147 = vector.shape_cast %146 : vector<8x4x8xf32> to vector<1x8x32xf32>
    %148 = vector.shape_cast %147 : vector<1x8x32xf32> to vector<8x32xf32>
    %149 = arith.truncf %148 : vector<8x32xf32> to vector<8x32xbf16>
    %cst_62 = arith.constant dense<0.000000e+00> : vector<8x32xf32>
    %150 = tpu.matmul %149, %98, %cst_62 {dimension_numbers = #tpu.dot_dimension_numbers<[1], [0], [0], [1], [0, 0, 1, 1], [], []>} : vector<8x32xbf16>, vector<32x32xbf16>, vector<8x32xf32> -> vector<8x32xf32>
    %151 = vector.broadcast %100 : vector<1x32xf32> to vector<8x32xf32>
    %152 = arith.addf %150, %151 : vector<8x32xf32>
    %153 = vector.shape_cast %152 : vector<8x32xf32> to vector<1x8x32xf32>
    %154 = arith.addf %88, %153 : vector<1x8x32xf32>
    %c0_63 = arith.constant 0 : index
    %c0_64 = arith.constant 0 : index
    %c0_65 = arith.constant 0 : index
    %c0_66 = arith.constant 0 : index
    %155 = vector.load %arg16[%c0_63, %c0_64, %c0_65, %c0_66] : memref<1x1x1x32xf32, #tpu.memory_space<vmem>>, vector<1x1x1x32xf32>
    %156 = vector.shape_cast %155 : vector<1x1x1x32xf32> to vector<1x1x32xf32>
    %c0_67 = arith.constant 0 : index
    %c0_68 = arith.constant 0 : index
    %c0_69 = arith.constant 0 : index
    %c0_70 = arith.constant 0 : index
    %157 = vector.load %arg17[%c0_67, %c0_68, %c0_69, %c0_70] : memref<1x1x1x32xf32, #tpu.memory_space<vmem>>, vector<1x1x1x32xf32>
    %158 = vector.shape_cast %157 : vector<1x1x1x32xf32> to vector<1x1x32xf32>
    %cst_71 = arith.constant dense<0.000000e+00> : vector<1x8xf32>
    %159 = vector.multi_reduction <add>, %154, %cst_71 [2] : vector<1x8x32xf32> to vector<1x8xf32>
    %160 = vector.shape_cast %159 : vector<1x8xf32> to vector<1x8x1xf32>
    %cst_72 = arith.constant 3.200000e+01 : f32
    %161 = vector.broadcast %cst_72 : f32 to vector<1x8x1xf32>
    %162 = arith.divf %160, %161 : vector<1x8x1xf32>
    %163 = vector.broadcast %162 : vector<1x8x1xf32> to vector<1x8x32xf32>
    %164 = arith.subf %154, %163 : vector<1x8x32xf32>
    %165 = arith.mulf %164, %164 : vector<1x8x32xf32>
    %cst_73 = arith.constant dense<0.000000e+00> : vector<1x8xf32>
    %166 = vector.multi_reduction <add>, %165, %cst_73 [2] : vector<1x8x32xf32> to vector<1x8xf32>
    %167 = vector.shape_cast %166 : vector<1x8xf32> to vector<1x8x1xf32>
    %cst_74 = arith.constant 3.200000e+01 : f32
    %168 = vector.broadcast %cst_74 : f32 to vector<1x8x1xf32>
    %169 = arith.divf %167, %168 : vector<1x8x1xf32>
    %170 = vector.broadcast %162 : vector<1x8x1xf32> to vector<1x8x32xf32>
    %171 = arith.subf %154, %170 : vector<1x8x32xf32>
    %cst_75 = arith.constant 9.99999974E-6 : f32
    %172 = vector.broadcast %cst_75 : f32 to vector<1x8x1xf32>
    %173 = arith.addf %169, %172 : vector<1x8x1xf32>
    %174 = math.rsqrt %173 : vector<1x8x1xf32>
    %175 = vector.broadcast %174 : vector<1x8x1xf32> to vector<1x8x32xf32>
    %176 = arith.mulf %171, %175 : vector<1x8x32xf32>
    %177 = vector.broadcast %156 : vector<1x1x32xf32> to vector<1x8x32xf32>
    %178 = arith.mulf %176, %177 : vector<1x8x32xf32>
    %179 = vector.broadcast %158 : vector<1x1x32xf32> to vector<1x8x32xf32>
    %180 = arith.addf %178, %179 : vector<1x8x32xf32>
    %c0_76 = arith.constant 0 : index
    %c0_77 = arith.constant 0 : index
    %c0_78 = arith.constant 0 : index
    %181 = vector.load %arg20[%c0_76, %c0_77, %c0_78] : memref<1x32x128xbf16, #tpu.memory_space<vmem>>, vector<1x32x128xbf16>
    %182 = vector.shape_cast %181 : vector<1x32x128xbf16> to vector<32x128xbf16>
    %c0_79 = arith.constant 0 : index
    %c0_80 = arith.constant 0 : index
    %c0_81 = arith.constant 0 : index
    %183 = vector.load %arg21[%c0_79, %c0_80, %c0_81] : memref<1x1x128xf32, #tpu.memory_space<vmem>>, vector<1x1x128xf32>
    %184 = vector.shape_cast %183 : vector<1x1x128xf32> to vector<1x128xf32>
    %c0_82 = arith.constant 0 : index
    %c0_83 = arith.constant 0 : index
    %c0_84 = arith.constant 0 : index
    %185 = vector.load %arg22[%c0_82, %c0_83, %c0_84] : memref<1x128x32xbf16, #tpu.memory_space<vmem>>, vector<1x128x32xbf16>
    %186 = vector.shape_cast %185 : vector<1x128x32xbf16> to vector<128x32xbf16>
    %c0_85 = arith.constant 0 : index
    %c0_86 = arith.constant 0 : index
    %c0_87 = arith.constant 0 : index
    %187 = vector.load %arg23[%c0_85, %c0_86, %c0_87] : memref<1x1x32xf32, #tpu.memory_space<vmem>>, vector<1x1x32xf32>
    %188 = vector.shape_cast %187 : vector<1x1x32xf32> to vector<1x32xf32>
    %189 = vector.shape_cast %180 : vector<1x8x32xf32> to vector<8x32xf32>
    %190 = arith.truncf %189 : vector<8x32xf32> to vector<8x32xbf16>
    %cst_88 = arith.constant dense<0.000000e+00> : vector<8x128xf32>
    %191 = tpu.matmul %190, %182, %cst_88 {dimension_numbers = #tpu.dot_dimension_numbers<[1], [0], [0], [1], [0, 0, 1, 1], [], []>} : vector<8x32xbf16>, vector<32x128xbf16>, vector<8x128xf32> -> vector<8x128xf32>
    %192 = vector.broadcast %184 : vector<1x128xf32> to vector<8x128xf32>
    %193 = arith.addf %191, %192 : vector<8x128xf32>
    %194 = arith.mulf %193, %193 : vector<8x128xf32>
    %195 = arith.mulf %193, %194 : vector<8x128xf32>
    %cst_89 = arith.constant 4.471500e-02 : f32
    %196 = vector.broadcast %cst_89 : f32 to vector<8x128xf32>
    %197 = arith.mulf %196, %195 : vector<8x128xf32>
    %198 = arith.addf %193, %197 : vector<8x128xf32>
    %cst_90 = arith.constant 0.797884583 : f32
    %199 = vector.broadcast %cst_90 : f32 to vector<8x128xf32>
    %200 = arith.mulf %199, %198 : vector<8x128xf32>
    %201 = math.tanh %200 : vector<8x128xf32>
    %cst_91 = arith.constant 1.000000e+00 : f32
    %202 = vector.broadcast %cst_91 : f32 to vector<8x128xf32>
    %203 = arith.addf %202, %201 : vector<8x128xf32>
    %cst_92 = arith.constant 5.000000e-01 : f32
    %204 = vector.broadcast %cst_92 : f32 to vector<8x128xf32>
    %205 = arith.mulf %204, %203 : vector<8x128xf32>
    %206 = arith.mulf %193, %205 : vector<8x128xf32>
    %207 = arith.truncf %206 : vector<8x128xf32> to vector<8x128xbf16>
    %cst_93 = arith.constant dense<0.000000e+00> : vector<8x32xf32>
    %208 = tpu.matmul %207, %186, %cst_93 {dimension_numbers = #tpu.dot_dimension_numbers<[1], [0], [0], [1], [0, 0, 1, 1], [], []>} : vector<8x128xbf16>, vector<128x32xbf16>, vector<8x32xf32> -> vector<8x32xf32>
    %209 = vector.broadcast %188 : vector<1x32xf32> to vector<8x32xf32>
    %210 = arith.addf %208, %209 : vector<8x32xf32>
    %211 = vector.shape_cast %210 : vector<8x32xf32> to vector<1x8x32xf32>
    %212 = arith.addf %180, %211 : vector<1x8x32xf32>
    %c0_94 = arith.constant 0 : index
    %c0_95 = arith.constant 0 : index
    %c0_96 = arith.constant 0 : index
    %c0_97 = arith.constant 0 : index
    %213 = vector.load %arg18[%c0_94, %c0_95, %c0_96, %c0_97] : memref<1x1x1x32xf32, #tpu.memory_space<vmem>>, vector<1x1x1x32xf32>
    %214 = vector.shape_cast %213 : vector<1x1x1x32xf32> to vector<1x1x32xf32>
    %c0_98 = arith.constant 0 : index
    %c0_99 = arith.constant 0 : index
    %c0_100 = arith.constant 0 : index
    %c0_101 = arith.constant 0 : index
    %215 = vector.load %arg19[%c0_98, %c0_99, %c0_100, %c0_101] : memref<1x1x1x32xf32, #tpu.memory_space<vmem>>, vector<1x1x1x32xf32>
    %216 = vector.shape_cast %215 : vector<1x1x1x32xf32> to vector<1x1x32xf32>
    %cst_102 = arith.constant dense<0.000000e+00> : vector<1x8xf32>
    %217 = vector.multi_reduction <add>, %212, %cst_102 [2] : vector<1x8x32xf32> to vector<1x8xf32>
    %218 = vector.shape_cast %217 : vector<1x8xf32> to vector<1x8x1xf32>
    %cst_103 = arith.constant 3.200000e+01 : f32
    %219 = vector.broadcast %cst_103 : f32 to vector<1x8x1xf32>
    %220 = arith.divf %218, %219 : vector<1x8x1xf32>
    %221 = vector.broadcast %220 : vector<1x8x1xf32> to vector<1x8x32xf32>
    %222 = arith.subf %212, %221 : vector<1x8x32xf32>
    %223 = arith.mulf %222, %222 : vector<1x8x32xf32>
    %cst_104 = arith.constant dense<0.000000e+00> : vector<1x8xf32>
    %224 = vector.multi_reduction <add>, %223, %cst_104 [2] : vector<1x8x32xf32> to vector<1x8xf32>
    %225 = vector.shape_cast %224 : vector<1x8xf32> to vector<1x8x1xf32>
    %cst_105 = arith.constant 3.200000e+01 : f32
    %226 = vector.broadcast %cst_105 : f32 to vector<1x8x1xf32>
    %227 = arith.divf %225, %226 : vector<1x8x1xf32>
    %228 = vector.broadcast %220 : vector<1x8x1xf32> to vector<1x8x32xf32>
    %229 = arith.subf %212, %228 : vector<1x8x32xf32>
    %cst_106 = arith.constant 9.99999974E-6 : f32
    %230 = vector.broadcast %cst_106 : f32 to vector<1x8x1xf32>
    %231 = arith.addf %227, %230 : vector<1x8x1xf32>
    %232 = math.rsqrt %231 : vector<1x8x1xf32>
    %233 = vector.broadcast %232 : vector<1x8x1xf32> to vector<1x8x32xf32>
    %234 = arith.mulf %229, %233 : vector<1x8x32xf32>
    %235 = vector.broadcast %214 : vector<1x1x32xf32> to vector<1x8x32xf32>
    %236 = arith.mulf %234, %235 : vector<1x8x32xf32>
    %237 = vector.broadcast %216 : vector<1x1x32xf32> to vector<1x8x32xf32>
    %238 = arith.addf %236, %237 : vector<1x8x32xf32>
    %c0_107 = arith.constant 0 : index
    %c0_108 = arith.constant 0 : index
    %c0_109 = arith.constant 0 : index
    %239 = vector.load %arg24[%c0_107, %c0_108, %c0_109] : memref<1x8x32xf32, #tpu.memory_space<vmem>>, vector<1x8x32xf32>
    tpu.vector_store %arg24[%c0_107, %c0_108, %c0_109], %238 {strides = array<i32>} : memref<1x8x32xf32, #tpu.memory_space<vmem>>, vector<1x8x32xf32>,
    return
  }
  func.func @transform_0(%arg0: i32, %arg1: i32) -> (i32, i32, i32) {
    %c0_i32 = arith.constant 0 : i32
    %c0_i32_0 = arith.constant 0 : i32
    %c0_i32_1 = arith.constant 0 : i32
    return %arg0, %c0_i32, %c0_i32_0 : i32, i32, i32
  }
  func.func @transform_1(%arg0: i32, %arg1: i32) -> (i32, i32, i32) {
    %c0_i32 = arith.constant 0 : i32
    %c0_i32_0 = arith.constant 0 : i32
    %c0_i32_1 = arith.constant 0 : i32
    return %arg0, %c0_i32, %c0_i32_0 : i32, i32, i32
  }
  func.func @transform_2(%arg0: i32, %arg1: i32) -> (i32, i32, i32) {
    %c0_i32 = arith.constant 0 : i32
    %c0_i32_0 = arith.constant 0 : i32
    %c0_i32_1 = arith.constant 0 : i32
    return %arg1, %c0_i32, %c0_i32_0 : i32, i32, i32
  }
  func.func @transform_3(%arg0: i32, %arg1: i32) -> (i32, i32, i32) {
    %c0_i32 = arith.constant 0 : i32
    %c0_i32_0 = arith.constant 0 : i32
    %c0_i32_1 = arith.constant 0 : i32
    return %arg1, %c0_i32, %c0_i32_0 : i32, i32, i32
  }
  func.func @transform_4(%arg0: i32, %arg1: i32) -> (i32, i32, i32) {
    %c0_i32 = arith.constant 0 : i32
    %c0_i32_0 = arith.constant 0 : i32
    %c0_i32_1 = arith.constant 0 : i32
    return %arg1, %c0_i32, %c0_i32_0 : i32, i32, i32
  }
  func.func @transform_5(%arg0: i32, %arg1: i32) -> (i32, i32, i32) {
    %c0_i32 = arith.constant 0 : i32
    %c0_i32_0 = arith.constant 0 : i32
    %c0_i32_1 = arith.constant 0 : i32
    return %arg1, %c0_i32, %c0_i32_0 : i32, i32, i32
  }
  func.func @transform_6(%arg0: i32, %arg1: i32) -> (i32, i32, i32) {
    %c0_i32 = arith.constant 0 : i32
    %c0_i32_0 = arith.constant 0 : i32
    %c0_i32_1 = arith.constant 0 : i32
    return %arg1, %c0_i32, %c0_i32_0 : i32, i32, i32
  }
  func.func @transform_7(%arg0: i32, %arg1: i32) -> (i32, i32, i32) {
    %c0_i32 = arith.constant 0 : i32
    %c0_i32_0 = arith.constant 0 : i32
    %c0_i32_1 = arith.constant 0 : i32
    return %arg1, %c0_i32, %c0_i32_0 : i32, i32, i32
  }
  func.func @transform_8(%arg0: i32, %arg1: i32) -> (i32, i32, i32) {
    %c0_i32 = arith.constant 0 : i32
    %c0_i32_0 = arith.constant 0 : i32
    %c0_i32_1 = arith.constant 0 : i32
    return %arg1, %c0_i32, %c0_i32_0 : i32, i32, i32
  }
  func.func @transform_9(%arg0: i32, %arg1: i32) -> (i32, i32, i32) {
    %c0_i32 = arith.constant 0 : i32
    %c0_i32_0 = arith.constant 0 : i32
    %c0_i32_1 = arith.constant 0 : i32
    return %arg1, %c0_i32, %c0_i32_0 : i32, i32, i32
  }
  func.func @transform_10(%arg0: i32, %arg1: i32) -> (i32, i32, i32) {
    %c0_i32 = arith.constant 0 : i32
    %c0_i32_0 = arith.constant 0 : i32
    %c0_i32_1 = arith.constant 0 : i32
    return %arg1, %c0_i32, %c0_i32_0 : i32, i32, i32
  }
  func.func @transform_11(%arg0: i32, %arg1: i32) -> (i32, i32, i32) {
    %c0_i32 = arith.constant 0 : i32
    %c0_i32_0 = arith.constant 0 : i32
    %c0_i32_1 = arith.constant 0 : i32
    return %arg1, %c0_i32, %c0_i32_0 : i32, i32, i32
  }
  func.func @transform_12(%arg0: i32, %arg1: i32) -> (i32, i32, i32, i32) {
    %c0_i32 = arith.constant 0 : i32
    %c0_i32_0 = arith.constant 0 : i32
    %c0_i32_1 = arith.constant 0 : i32
    %c0_i32_2 = arith.constant 0 : i32
    return %arg1, %c0_i32, %c0_i32_0, %c0_i32_1 : i32, i32, i32, i32
  }
  func.func @transform_13(%arg0: i32, %arg1: i32) -> (i32, i32, i32, i32) {
    %c0_i32 = arith.constant 0 : i32
    %c0_i32_0 = arith.constant 0 : i32
    %c0_i32_1 = arith.constant 0 : i32
    %c0_i32_2 = arith.constant 0 : i32
    return %arg1, %c0_i32, %c0_i32_0, %c0_i32_1 : i32, i32, i32, i32
  }
  func.func @transform_14(%arg0: i32, %arg1: i32) -> (i32, i32, i32, i32) {
    %c0_i32 = arith.constant 0 : i32
    %c0_i32_0 = arith.constant 0 : i32
    %c0_i32_1 = arith.constant 0 : i32
    %c0_i32_2 = arith.constant 0 : i32
    return %arg1, %c0_i32, %c0_i32_0, %c0_i32_1 : i32, i32, i32, i32
  }
  func.func @transform_15(%arg0: i32, %arg1: i32) -> (i32, i32, i32, i32) {
    %c0_i32 = arith.constant 0 : i32
    %c0_i32_0 = arith.constant 0 : i32
    %c0_i32_1 = arith.constant 0 : i32
    %c0_i32_2 = arith.constant 0 : i32
    return %arg1, %c0_i32, %c0_i32_0, %c0_i32_1 : i32, i32, i32, i32
  }
  func.func @transform_16(%arg0: i32, %arg1: i32) -> (i32, i32, i32, i32) {
    %c0_i32 = arith.constant 0 : i32
    %c0_i32_0 = arith.constant 0 : i32
    %c0_i32_1 = arith.constant 0 : i32
    %c0_i32_2 = arith.constant 0 : i32
    return %arg1, %c0_i32, %c0_i32_0, %c0_i32_1 : i32, i32, i32, i32
  }
  func.func @transform_17(%arg0: i32, %arg1: i32) -> (i32, i32, i32, i32) {
    %c0_i32 = arith.constant 0 : i32
    %c0_i32_0 = arith.constant 0 : i32
    %c0_i32_1 = arith.constant 0 : i32
    %c0_i32_2 = arith.constant 0 : i32
    return %arg1, %c0_i32, %c0_i32_0, %c0_i32_1 : i32, i32, i32, i32
  }
  func.func @transform_18(%arg0: i32, %arg1: i32) -> (i32, i32, i32) {
    %c0_i32 = arith.constant 0 : i32
    %c0_i32_0 = arith.constant 0 : i32
    %c0_i32_1 = arith.constant 0 : i32
    return %arg1, %c0_i32, %c0_i32_0 : i32, i32, i32
  }
  func.func @transform_19(%arg0: i32, %arg1: i32) -> (i32, i32, i32) {
    %c0_i32 = arith.constant 0 : i32
    %c0_i32_0 = arith.constant 0 : i32
    %c0_i32_1 = arith.constant 0 : i32
    return %arg1, %c0_i32, %c0_i32_0 : i32, i32, i32
  }
  func.func @transform_20(%arg0: i32, %arg1: i32) -> (i32, i32, i32) {
    %c0_i32 = arith.constant 0 : i32
    %c0_i32_0 = arith.constant 0 : i32
    %c0_i32_1 = arith.constant 0 : i32
    return %arg1, %c0_i32, %c0_i32_0 : i32, i32, i32
  }
  func.func @transform_21(%arg0: i32, %arg1: i32) -> (i32, i32, i32) {
    %c0_i32 = arith.constant 0 : i32
    %c0_i32_0 = arith.constant 0 : i32
    %c0_i32_1 = arith.constant 0 : i32
    return %arg1, %c0_i32, %c0_i32_0 : i32, i32, i32
  }
  func.func @transform_22(%arg0: i32, %arg1: i32) -> (i32, i32, i32) {
    %c0_i32 = arith.constant 0 : i32
    %c0_i32_0 = arith.constant 0 : i32
    %c0_i32_1 = arith.constant 0 : i32
    return %arg0, %c0_i32, %c0_i32_0 : i32, i32, i32
  }
}

module attributes {stable_mosaic.version = 11 : i64} {
  func.func @encoder_stack_kernel(%arg0: i32, %arg1: i32, %arg2: memref<1x8x32xf32, #tpu.memory_space<vmem>>, %arg3: memref<1x32x96xbf16, #tpu.memory_space<vmem>>, %arg4: memref<1x1x96xf32, #tpu.memory_space<vmem>>, %arg5: memref<1x32x32xbf16, #tpu.memory_space<vmem>>, %arg6: memref<1x1x32xf32, #tpu.memory_space<vmem>>, %arg7: memref<1x1x1x32xf32, #tpu.memory_space<vmem>>, %arg8: memref<1x1x1x32xf32, #tpu.memory_space<vmem>>, %arg9: memref<1x1x1x32xf32, #tpu.memory_space<vmem>>, %arg10: memref<1x1x1x32xf32, #tpu.memory_space<vmem>>, %arg11: memref<1x32x128xbf16, #tpu.memory_space<vmem>>, %arg12: memref<1x1x128xf32, #tpu.memory_space<vmem>>, %arg13: memref<1x128x32xbf16, #tpu.memory_space<vmem>>, %arg14: memref<1x1x32xf32, #tpu.memory_space<vmem>>, %arg15: memref<1x8x32xf32, #tpu.memory_space<vmem>>) attributes {dimension_semantics = [#tpu.dimension_semantics<parallel>, #tpu.dimension_semantics<arbitrary>], iteration_bounds = array<i64: 2, 2>, scalar_prefetch = 0 : i64, scratch_operands = 0 : i64, tpu.core_type = #tpu.core_type<tc>, window_params = [{transform_indices = @transform_0, window_bounds = array<i64: 1, 8, 32>}, {transform_indices = @transform_1, window_bounds = array<i64: 1, 32, 96>}, {transform_indices = @transform_2, window_bounds = array<i64: 1, 1, 96>}, {transform_indices = @transform_3, window_bounds = array<i64: 1, 32, 32>}, {transform_indices = @transform_4, window_bounds = array<i64: 1, 1, 32>}, {transform_indices = @transform_5, window_bounds = array<i64: 1, 1, 1, 32>}, {transform_indices = @transform_6, window_bounds = array<i64: 1, 1, 1, 32>}, {transform_indices = @transform_7, window_bounds = array<i64: 1, 1, 1, 32>}, {transform_indices = @transform_8, window_bounds = array<i64: 1, 1, 1, 32>}, {transform_indices = @transform_9, window_bounds = array<i64: 1, 32, 128>}, {transform_indices = @transform_10, window_bounds = array<i64: 1, 1, 128>}, {transform_indices = @transform_11, window_bounds = array<i64: 1, 128, 32>}, {transform_indices = @transform_12, window_bounds = array<i64: 1, 1, 32>}, {transform_indices = @transform_13, window_bounds = array<i64: 1, 8, 32>}]} {
    %c0_i32 = arith.constant 0 : i32
    %0 = arith.cmpi eq, %arg1, %c0_i32 : i32
    %1 = arith.extui %0 : i1 to i32
    %c0_i32_0 = arith.constant 0 : i32
    %2 = arith.cmpi ne, %1, %c0_i32_0 : i32
    scf.if %2 {
      %c0_68 = arith.constant 0 : index
      %c0_69 = arith.constant 0 : index
      %c0_70 = arith.constant 0 : index
      %147 = vector.load %arg2[%c0_68, %c0_69, %c0_70] : memref<1x8x32xf32, #tpu.memory_space<vmem>>, vector<1x8x32xf32>
      %c0_71 = arith.constant 0 : index
      %c0_72 = arith.constant 0 : index
      %c0_73 = arith.constant 0 : index
      %148 = vector.load %arg15[%c0_71, %c0_72, %c0_73] : memref<1x8x32xf32, #tpu.memory_space<vmem>>, vector<1x8x32xf32>
      tpu.vector_store %arg15[%c0_71, %c0_72, %c0_73], %147 {strides = array<i32>} : memref<1x8x32xf32, #tpu.memory_space<vmem>>, vector<1x8x32xf32>,
    } else {
    }
    %c0 = arith.constant 0 : index
    %c0_1 = arith.constant 0 : index
    %c0_2 = arith.constant 0 : index
    %3 = vector.load %arg15[%c0, %c0_1, %c0_2] : memref<1x8x32xf32, #tpu.memory_space<vmem>>, vector<1x8x32xf32>
    %c0_3 = arith.constant 0 : index
    %c0_4 = arith.constant 0 : index
    %c0_5 = arith.constant 0 : index
    %4 = vector.load %arg3[%c0_3, %c0_4, %c0_5] : memref<1x32x96xbf16, #tpu.memory_space<vmem>>, vector<1x32x96xbf16>
    %5 = vector.shape_cast %4 : vector<1x32x96xbf16> to vector<32x96xbf16>
    %c0_6 = arith.constant 0 : index
    %c0_7 = arith.constant 0 : index
    %c0_8 = arith.constant 0 : index
    %6 = vector.load %arg4[%c0_6, %c0_7, %c0_8] : memref<1x1x96xf32, #tpu.memory_space<vmem>>, vector<1x1x96xf32>
    %7 = vector.shape_cast %6 : vector<1x1x96xf32> to vector<1x96xf32>
    %c0_9 = arith.constant 0 : index
    %c0_10 = arith.constant 0 : index
    %c0_11 = arith.constant 0 : index
    %8 = vector.load %arg5[%c0_9, %c0_10, %c0_11] : memref<1x32x32xbf16, #tpu.memory_space<vmem>>, vector<1x32x32xbf16>
    %9 = vector.shape_cast %8 : vector<1x32x32xbf16> to vector<32x32xbf16>
    %c0_12 = arith.constant 0 : index
    %c0_13 = arith.constant 0 : index
    %c0_14 = arith.constant 0 : index
    %10 = vector.load %arg6[%c0_12, %c0_13, %c0_14] : memref<1x1x32xf32, #tpu.memory_space<vmem>>, vector<1x1x32xf32>
    %11 = vector.shape_cast %10 : vector<1x1x32xf32> to vector<1x32xf32>
    %12 = vector.shape_cast %3 : vector<1x8x32xf32> to vector<8x32xf32>
    %13 = arith.truncf %12 : vector<8x32xf32> to vector<8x32xbf16>
    %cst = arith.constant dense<0.000000e+00> : vector<8x96xf32>
    %14 = tpu.matmul %13, %5, %cst {dimension_numbers = #tpu.dot_dimension_numbers<[1], [0], [0], [1], [0, 0, 1, 1], [], []>} : vector<8x32xbf16>, vector<32x96xbf16>, vector<8x96xf32> -> vector<8x96xf32>
    %15 = vector.broadcast %7 : vector<1x96xf32> to vector<8x96xf32>
    %16 = arith.addf %14, %15 : vector<8x96xf32>
    %17 = vector.extract_strided_slice %16 {offsets = [0, 0], sizes = [8, 32], strides = [1, 1]} : vector<8x96xf32> to vector<8x32xf32>
    %18 = vector.shape_cast %17 : vector<8x32xf32> to vector<1x8x32xf32>
    %19 = vector.extract_strided_slice %16 {offsets = [0, 32], sizes = [8, 32], strides = [1, 1]} : vector<8x96xf32> to vector<8x32xf32>
    %20 = vector.shape_cast %19 : vector<8x32xf32> to vector<1x8x32xf32>
    %21 = vector.extract_strided_slice %16 {offsets = [0, 64], sizes = [8, 32], strides = [1, 1]} : vector<8x96xf32> to vector<8x32xf32>
    %22 = vector.shape_cast %21 : vector<8x32xf32> to vector<1x8x32xf32>
    %cst_15 = arith.constant 0.353553385 : f32
    %23 = vector.broadcast %cst_15 : f32 to vector<1x8x32xf32>
    %24 = arith.mulf %18, %23 : vector<1x8x32xf32>
    %25 = vector.shape_cast %24 : vector<1x8x32xf32> to vector<8x4x8xf32>
    %26 = tpu.transpose %25, [1, 0, 2] : vector<8x4x8xf32> -> vector<4x8x8xf32>
    %27 = vector.shape_cast %26 : vector<4x8x8xf32> to vector<4x1x8x8xf32>
    %28 = vector.shape_cast %27 : vector<4x1x8x8xf32> to vector<4x8x8xf32>
    %29 = vector.shape_cast %20 : vector<1x8x32xf32> to vector<8x4x8xf32>
    %30 = tpu.transpose %29, [1, 0, 2] : vector<8x4x8xf32> -> vector<4x8x8xf32>
    %31 = vector.shape_cast %30 : vector<4x8x8xf32> to vector<4x1x8x8xf32>
    %32 = vector.shape_cast %31 : vector<4x1x8x8xf32> to vector<4x8x8xf32>
    %33 = vector.shape_cast %22 : vector<1x8x32xf32> to vector<8x4x8xf32>
    %34 = tpu.transpose %33, [1, 0, 2] : vector<8x4x8xf32> -> vector<4x8x8xf32>
    %35 = vector.shape_cast %34 : vector<4x8x8xf32> to vector<4x1x8x8xf32>
    %36 = vector.shape_cast %35 : vector<4x1x8x8xf32> to vector<4x8x8xf32>
    %37 = arith.truncf %28 : vector<4x8x8xf32> to vector<4x8x8xbf16>
    %38 = arith.truncf %32 : vector<4x8x8xf32> to vector<4x8x8xbf16>
    "tpu.trace_start"() <{level = 10 : i32, message = "bqd,bkd->bqk"}> : () -> ()
    %cst_16 = arith.constant dense<0.000000e+00> : vector<4x8x8xf32>
    %39 = tpu.matmul %37, %38, %cst_16 {dimension_numbers = #tpu.dot_dimension_numbers<[2], [2], [1], [1], [0, 0, 0, 1, 1, 1], [0], [0]>} : vector<4x8x8xbf16>, vector<4x8x8xbf16>, vector<4x8x8xf32> -> vector<4x8x8xf32>
    "tpu.trace_stop"() : () -> ()
    %cst_17 = arith.constant dense<0xFF800000> : vector<4x8xf32>
    %40 = vector.multi_reduction <maximumf>, %39, %cst_17 [2] : vector<4x8x8xf32> to vector<4x8xf32>
    %41 = vector.shape_cast %40 : vector<4x8xf32> to vector<4x8x1xf32>
    %42 = vector.broadcast %41 : vector<4x8x1xf32> to vector<4x8x8xf32>
    %43 = arith.subf %39, %42 : vector<4x8x8xf32>
    %44 = math.exp %43 : vector<4x8x8xf32>
    %cst_18 = arith.constant dense<0.000000e+00> : vector<4x8xf32>
    %45 = vector.multi_reduction <add>, %44, %cst_18 [2] : vector<4x8x8xf32> to vector<4x8xf32>
    %46 = vector.shape_cast %45 : vector<4x8xf32> to vector<4x8x1xf32>
    %47 = tpu.reciprocal %46 {approx = true} : vector<4x8x1xf32> -> vector<4x8x1xf32>
    %48 = vector.broadcast %47 : vector<4x8x1xf32> to vector<4x8x8xf32>
    %49 = arith.mulf %44, %48 : vector<4x8x8xf32>
    %50 = arith.truncf %49 : vector<4x8x8xf32> to vector<4x8x8xbf16>
    %51 = arith.truncf %36 : vector<4x8x8xf32> to vector<4x8x8xbf16>
    "tpu.trace_start"() <{level = 10 : i32, message = "bqk,bkd->bqd"}> : () -> ()
    %cst_19 = arith.constant dense<0.000000e+00> : vector<4x8x8xf32>
    %52 = tpu.matmul %50, %51, %cst_19 {dimension_numbers = #tpu.dot_dimension_numbers<[2], [1], [1], [2], [0, 0, 0, 1, 1, 2], [0], [0]>} : vector<4x8x8xbf16>, vector<4x8x8xbf16>, vector<4x8x8xf32> -> vector<4x8x8xf32>
    "tpu.trace_stop"() : () -> ()
    %53 = tpu.transpose %52, [1, 0, 2] : vector<4x8x8xf32> -> vector<8x4x8xf32>
    %54 = vector.shape_cast %53 : vector<8x4x8xf32> to vector<1x8x32xf32>
    %55 = vector.shape_cast %54 : vector<1x8x32xf32> to vector<8x32xf32>
    %56 = arith.truncf %55 : vector<8x32xf32> to vector<8x32xbf16>
    %cst_20 = arith.constant dense<0.000000e+00> : vector<8x32xf32>
    %57 = tpu.matmul %56, %9, %cst_20 {dimension_numbers = #tpu.dot_dimension_numbers<[1], [0], [0], [1], [0, 0, 1, 1], [], []>} : vector<8x32xbf16>, vector<32x32xbf16>, vector<8x32xf32> -> vector<8x32xf32>
    %58 = vector.broadcast %11 : vector<1x32xf32> to vector<8x32xf32>
    %59 = arith.addf %57, %58 : vector<8x32xf32>
    %60 = vector.shape_cast %59 : vector<8x32xf32> to vector<1x8x32xf32>
    %61 = arith.addf %3, %60 : vector<1x8x32xf32>
    %c0_21 = arith.constant 0 : index
    %c0_22 = arith.constant 0 : index
    %c0_23 = arith.constant 0 : index
    %c0_24 = arith.constant 0 : index
    %62 = vector.load %arg7[%c0_21, %c0_22, %c0_23, %c0_24] : memref<1x1x1x32xf32, #tpu.memory_space<vmem>>, vector<1x1x1x32xf32>
    %63 = vector.shape_cast %62 : vector<1x1x1x32xf32> to vector<1x1x32xf32>
    %c0_25 = arith.constant 0 : index
    %c0_26 = arith.constant 0 : index
    %c0_27 = arith.constant 0 : index
    %c0_28 = arith.constant 0 : index
    %64 = vector.load %arg8[%c0_25, %c0_26, %c0_27, %c0_28] : memref<1x1x1x32xf32, #tpu.memory_space<vmem>>, vector<1x1x1x32xf32>
    %65 = vector.shape_cast %64 : vector<1x1x1x32xf32> to vector<1x1x32xf32>
    %cst_29 = arith.constant dense<0.000000e+00> : vector<1x8xf32>
    %66 = vector.multi_reduction <add>, %61, %cst_29 [2] : vector<1x8x32xf32> to vector<1x8xf32>
    %67 = vector.shape_cast %66 : vector<1x8xf32> to vector<1x8x1xf32>
    %cst_30 = arith.constant 3.200000e+01 : f32
    %68 = vector.broadcast %cst_30 : f32 to vector<1x8x1xf32>
    %69 = arith.divf %67, %68 : vector<1x8x1xf32>
    %70 = vector.broadcast %69 : vector<1x8x1xf32> to vector<1x8x32xf32>
    %71 = arith.subf %61, %70 : vector<1x8x32xf32>
    %72 = arith.mulf %71, %71 : vector<1x8x32xf32>
    %cst_31 = arith.constant dense<0.000000e+00> : vector<1x8xf32>
    %73 = vector.multi_reduction <add>, %72, %cst_31 [2] : vector<1x8x32xf32> to vector<1x8xf32>
    %74 = vector.shape_cast %73 : vector<1x8xf32> to vector<1x8x1xf32>
    %cst_32 = arith.constant 3.200000e+01 : f32
    %75 = vector.broadcast %cst_32 : f32 to vector<1x8x1xf32>
    %76 = arith.divf %74, %75 : vector<1x8x1xf32>
    %77 = vector.broadcast %69 : vector<1x8x1xf32> to vector<1x8x32xf32>
    %78 = arith.subf %61, %77 : vector<1x8x32xf32>
    %cst_33 = arith.constant 9.99999974E-6 : f32
    %79 = vector.broadcast %cst_33 : f32 to vector<1x8x1xf32>
    %80 = arith.addf %76, %79 : vector<1x8x1xf32>
    %81 = math.rsqrt %80 : vector<1x8x1xf32>
    %82 = vector.broadcast %81 : vector<1x8x1xf32> to vector<1x8x32xf32>
    %83 = arith.mulf %78, %82 : vector<1x8x32xf32>
    %84 = vector.broadcast %63 : vector<1x1x32xf32> to vector<1x8x32xf32>
    %85 = arith.mulf %83, %84 : vector<1x8x32xf32>
    %86 = vector.broadcast %65 : vector<1x1x32xf32> to vector<1x8x32xf32>
    %87 = arith.addf %85, %86 : vector<1x8x32xf32>
    %c0_34 = arith.constant 0 : index
    %c0_35 = arith.constant 0 : index
    %c0_36 = arith.constant 0 : index
    %88 = vector.load %arg11[%c0_34, %c0_35, %c0_36] : memref<1x32x128xbf16, #tpu.memory_space<vmem>>, vector<1x32x128xbf16>
    %89 = vector.shape_cast %88 : vector<1x32x128xbf16> to vector<32x128xbf16>
    %c0_37 = arith.constant 0 : index
    %c0_38 = arith.constant 0 : index
    %c0_39 = arith.constant 0 : index
    %90 = vector.load %arg12[%c0_37, %c0_38, %c0_39] : memref<1x1x128xf32, #tpu.memory_space<vmem>>, vector<1x1x128xf32>
    %91 = vector.shape_cast %90 : vector<1x1x128xf32> to vector<1x128xf32>
    %c0_40 = arith.constant 0 : index
    %c0_41 = arith.constant 0 : index
    %c0_42 = arith.constant 0 : index
    %92 = vector.load %arg13[%c0_40, %c0_41, %c0_42] : memref<1x128x32xbf16, #tpu.memory_space<vmem>>, vector<1x128x32xbf16>
    %93 = vector.shape_cast %92 : vector<1x128x32xbf16> to vector<128x32xbf16>
    %c0_43 = arith.constant 0 : index
    %c0_44 = arith.constant 0 : index
    %c0_45 = arith.constant 0 : index
    %94 = vector.load %arg14[%c0_43, %c0_44, %c0_45] : memref<1x1x32xf32, #tpu.memory_space<vmem>>, vector<1x1x32xf32>
    %95 = vector.shape_cast %94 : vector<1x1x32xf32> to vector<1x32xf32>
    %96 = vector.shape_cast %87 : vector<1x8x32xf32> to vector<8x32xf32>
    %97 = arith.truncf %96 : vector<8x32xf32> to vector<8x32xbf16>
    %cst_46 = arith.constant dense<0.000000e+00> : vector<8x128xf32>
    %98 = tpu.matmul %97, %89, %cst_46 {dimension_numbers = #tpu.dot_dimension_numbers<[1], [0], [0], [1], [0, 0, 1, 1], [], []>} : vector<8x32xbf16>, vector<32x128xbf16>, vector<8x128xf32> -> vector<8x128xf32>
    %99 = vector.broadcast %91 : vector<1x128xf32> to vector<8x128xf32>
    %100 = arith.addf %98, %99 : vector<8x128xf32>
    %101 = arith.mulf %100, %100 : vector<8x128xf32>
    %102 = arith.mulf %100, %101 : vector<8x128xf32>
    %cst_47 = arith.constant 4.471500e-02 : f32
    %103 = vector.broadcast %cst_47 : f32 to vector<8x128xf32>
    %104 = arith.mulf %103, %102 : vector<8x128xf32>
    %105 = arith.addf %100, %104 : vector<8x128xf32>
    %cst_48 = arith.constant 0.797884583 : f32
    %106 = vector.broadcast %cst_48 : f32 to vector<8x128xf32>
    %107 = arith.mulf %106, %105 : vector<8x128xf32>
    %108 = math.tanh %107 : vector<8x128xf32>
    %cst_49 = arith.constant 1.000000e+00 : f32
    %109 = vector.broadcast %cst_49 : f32 to vector<8x128xf32>
    %110 = arith.addf %109, %108 : vector<8x128xf32>
    %cst_50 = arith.constant 5.000000e-01 : f32
    %111 = vector.broadcast %cst_50 : f32 to vector<8x128xf32>
    %112 = arith.mulf %111, %110 : vector<8x128xf32>
    %113 = arith.mulf %100, %112 : vector<8x128xf32>
    %114 = arith.truncf %113 : vector<8x128xf32> to vector<8x128xbf16>
    %cst_51 = arith.constant dense<0.000000e+00> : vector<8x32xf32>
    %115 = tpu.matmul %114, %93, %cst_51 {dimension_numbers = #tpu.dot_dimension_numbers<[1], [0], [0], [1], [0, 0, 1, 1], [], []>} : vector<8x128xbf16>, vector<128x32xbf16>, vector<8x32xf32> -> vector<8x32xf32>
    %116 = vector.broadcast %95 : vector<1x32xf32> to vector<8x32xf32>
    %117 = arith.addf %115, %116 : vector<8x32xf32>
    %118 = vector.shape_cast %117 : vector<8x32xf32> to vector<1x8x32xf32>
    %119 = arith.addf %87, %118 : vector<1x8x32xf32>
    %c0_52 = arith.constant 0 : index
    %c0_53 = arith.constant 0 : index
    %c0_54 = arith.constant 0 : index
    %c0_55 = arith.constant 0 : index
    %120 = vector.load %arg9[%c0_52, %c0_53, %c0_54, %c0_55] : memref<1x1x1x32xf32, #tpu.memory_space<vmem>>, vector<1x1x1x32xf32>
    %121 = vector.shape_cast %120 : vector<1x1x1x32xf32> to vector<1x1x32xf32>
    %c0_56 = arith.constant 0 : index
    %c0_57 = arith.constant 0 : index
    %c0_58 = arith.constant 0 : index
    %c0_59 = arith.constant 0 : index
    %122 = vector.load %arg10[%c0_56, %c0_57, %c0_58, %c0_59] : memref<1x1x1x32xf32, #tpu.memory_space<vmem>>, vector<1x1x1x32xf32>
    %123 = vector.shape_cast %122 : vector<1x1x1x32xf32> to vector<1x1x32xf32>
    %cst_60 = arith.constant dense<0.000000e+00> : vector<1x8xf32>
    %124 = vector.multi_reduction <add>, %119, %cst_60 [2] : vector<1x8x32xf32> to vector<1x8xf32>
    %125 = vector.shape_cast %124 : vector<1x8xf32> to vector<1x8x1xf32>
    %cst_61 = arith.constant 3.200000e+01 : f32
    %126 = vector.broadcast %cst_61 : f32 to vector<1x8x1xf32>
    %127 = arith.divf %125, %126 : vector<1x8x1xf32>
    %128 = vector.broadcast %127 : vector<1x8x1xf32> to vector<1x8x32xf32>
    %129 = arith.subf %119, %128 : vector<1x8x32xf32>
    %130 = arith.mulf %129, %129 : vector<1x8x32xf32>
    %cst_62 = arith.constant dense<0.000000e+00> : vector<1x8xf32>
    %131 = vector.multi_reduction <add>, %130, %cst_62 [2] : vector<1x8x32xf32> to vector<1x8xf32>
    %132 = vector.shape_cast %131 : vector<1x8xf32> to vector<1x8x1xf32>
    %cst_63 = arith.constant 3.200000e+01 : f32
    %133 = vector.broadcast %cst_63 : f32 to vector<1x8x1xf32>
    %134 = arith.divf %132, %133 : vector<1x8x1xf32>
    %135 = vector.broadcast %127 : vector<1x8x1xf32> to vector<1x8x32xf32>
    %136 = arith.subf %119, %135 : vector<1x8x32xf32>
    %cst_64 = arith.constant 9.99999974E-6 : f32
    %137 = vector.broadcast %cst_64 : f32 to vector<1x8x1xf32>
    %138 = arith.addf %134, %137 : vector<1x8x1xf32>
    %139 = math.rsqrt %138 : vector<1x8x1xf32>
    %140 = vector.broadcast %139 : vector<1x8x1xf32> to vector<1x8x32xf32>
    %141 = arith.mulf %136, %140 : vector<1x8x32xf32>
    %142 = vector.broadcast %121 : vector<1x1x32xf32> to vector<1x8x32xf32>
    %143 = arith.mulf %141, %142 : vector<1x8x32xf32>
    %144 = vector.broadcast %123 : vector<1x1x32xf32> to vector<1x8x32xf32>
    %145 = arith.addf %143, %144 : vector<1x8x32xf32>
    %c0_65 = arith.constant 0 : index
    %c0_66 = arith.constant 0 : index
    %c0_67 = arith.constant 0 : index
    %146 = vector.load %arg15[%c0_65, %c0_66, %c0_67] : memref<1x8x32xf32, #tpu.memory_space<vmem>>, vector<1x8x32xf32>
    tpu.vector_store %arg15[%c0_65, %c0_66, %c0_67], %145 {strides = array<i32>} : memref<1x8x32xf32, #tpu.memory_space<vmem>>, vector<1x8x32xf32>,
    return
  }
  func.func @transform_0(%arg0: i32, %arg1: i32) -> (i32, i32, i32) {
    %c0_i32 = arith.constant 0 : i32
    %c0_i32_0 = arith.constant 0 : i32
    %c0_i32_1 = arith.constant 0 : i32
    return %arg0, %c0_i32, %c0_i32_0 : i32, i32, i32
  }
  func.func @transform_1(%arg0: i32, %arg1: i32) -> (i32, i32, i32) {
    %c0_i32 = arith.constant 0 : i32
    %c0_i32_0 = arith.constant 0 : i32
    %c0_i32_1 = arith.constant 0 : i32
    return %arg1, %c0_i32, %c0_i32_0 : i32, i32, i32
  }
  func.func @transform_2(%arg0: i32, %arg1: i32) -> (i32, i32, i32) {
    %c0_i32 = arith.constant 0 : i32
    %c0_i32_0 = arith.constant 0 : i32
    %c0_i32_1 = arith.constant 0 : i32
    return %arg1, %c0_i32, %c0_i32_0 : i32, i32, i32
  }
  func.func @transform_3(%arg0: i32, %arg1: i32) -> (i32, i32, i32) {
    %c0_i32 = arith.constant 0 : i32
    %c0_i32_0 = arith.constant 0 : i32
    %c0_i32_1 = arith.constant 0 : i32
    return %arg1, %c0_i32, %c0_i32_0 : i32, i32, i32
  }
  func.func @transform_4(%arg0: i32, %arg1: i32) -> (i32, i32, i32) {
    %c0_i32 = arith.constant 0 : i32
    %c0_i32_0 = arith.constant 0 : i32
    %c0_i32_1 = arith.constant 0 : i32
    return %arg1, %c0_i32, %c0_i32_0 : i32, i32, i32
  }
  func.func @transform_5(%arg0: i32, %arg1: i32) -> (i32, i32, i32, i32) {
    %c0_i32 = arith.constant 0 : i32
    %c0_i32_0 = arith.constant 0 : i32
    %c0_i32_1 = arith.constant 0 : i32
    %c0_i32_2 = arith.constant 0 : i32
    return %arg1, %c0_i32, %c0_i32_0, %c0_i32_1 : i32, i32, i32, i32
  }
  func.func @transform_6(%arg0: i32, %arg1: i32) -> (i32, i32, i32, i32) {
    %c0_i32 = arith.constant 0 : i32
    %c0_i32_0 = arith.constant 0 : i32
    %c0_i32_1 = arith.constant 0 : i32
    %c0_i32_2 = arith.constant 0 : i32
    return %arg1, %c0_i32, %c0_i32_0, %c0_i32_1 : i32, i32, i32, i32
  }
  func.func @transform_7(%arg0: i32, %arg1: i32) -> (i32, i32, i32, i32) {
    %c0_i32 = arith.constant 0 : i32
    %c0_i32_0 = arith.constant 0 : i32
    %c0_i32_1 = arith.constant 0 : i32
    %c0_i32_2 = arith.constant 0 : i32
    return %arg1, %c0_i32, %c0_i32_0, %c0_i32_1 : i32, i32, i32, i32
  }
  func.func @transform_8(%arg0: i32, %arg1: i32) -> (i32, i32, i32, i32) {
    %c0_i32 = arith.constant 0 : i32
    %c0_i32_0 = arith.constant 0 : i32
    %c0_i32_1 = arith.constant 0 : i32
    %c0_i32_2 = arith.constant 0 : i32
    return %arg1, %c0_i32, %c0_i32_0, %c0_i32_1 : i32, i32, i32, i32
  }
  func.func @transform_9(%arg0: i32, %arg1: i32) -> (i32, i32, i32) {
    %c0_i32 = arith.constant 0 : i32
    %c0_i32_0 = arith.constant 0 : i32
    %c0_i32_1 = arith.constant 0 : i32
    return %arg1, %c0_i32, %c0_i32_0 : i32, i32, i32
  }
  func.func @transform_10(%arg0: i32, %arg1: i32) -> (i32, i32, i32) {
    %c0_i32 = arith.constant 0 : i32
    %c0_i32_0 = arith.constant 0 : i32
    %c0_i32_1 = arith.constant 0 : i32
    return %arg1, %c0_i32, %c0_i32_0 : i32, i32, i32
  }
  func.func @transform_11(%arg0: i32, %arg1: i32) -> (i32, i32, i32) {
    %c0_i32 = arith.constant 0 : i32
    %c0_i32_0 = arith.constant 0 : i32
    %c0_i32_1 = arith.constant 0 : i32
    return %arg1, %c0_i32, %c0_i32_0 : i32, i32, i32
  }
  func.func @transform_12(%arg0: i32, %arg1: i32) -> (i32, i32, i32) {
    %c0_i32 = arith.constant 0 : i32
    %c0_i32_0 = arith.constant 0 : i32
    %c0_i32_1 = arith.constant 0 : i32
    return %arg1, %c0_i32, %c0_i32_0 : i32, i32, i32
  }
  func.func @transform_13(%arg0: i32, %arg1: i32) -> (i32, i32, i32) {
    %c0_i32 = arith.constant 0 : i32
    %c0_i32_0 = arith.constant 0 : i32
    %c0_i32_1 = arith.constant 0 : i32
    return %arg0, %c0_i32, %c0_i32_0 : i32, i32, i32
  }
}

module attributes {stable_mosaic.version = 11 : i64} {
  func.func @head_kernel(%arg0: memref<2x32xf32, #tpu.memory_space<vmem>>, %arg1: memref<32x1xf32, #tpu.memory_space<vmem>>, %arg2: memref<1x1xf32, #tpu.memory_space<vmem>>, %arg3: memref<2x1xf32, #tpu.memory_space<vmem>>) attributes {dimension_semantics = [], scalar_prefetch = 0 : i64, scratch_operands = 0 : i64, tpu.core_type = #tpu.core_type<tc>} {
    %c0 = arith.constant 0 : index
    %c0_0 = arith.constant 0 : index
    %0 = vector.load %arg0[%c0, %c0_0] : memref<2x32xf32, #tpu.memory_space<vmem>>, vector<2x32xf32>
    %1 = vector.shape_cast %0 : vector<2x32xf32> to vector<2x32x1xf32>
    %c0_1 = arith.constant 0 : index
    %c0_2 = arith.constant 0 : index
    %2 = vector.load %arg1[%c0_1, %c0_2] : memref<32x1xf32, #tpu.memory_space<vmem>>, vector<32x1xf32>
    %3 = vector.shape_cast %2 : vector<32x1xf32> to vector<1x32x1xf32>
    %4 = vector.broadcast %3 : vector<1x32x1xf32> to vector<2x32x1xf32>
    %5 = arith.mulf %1, %4 : vector<2x32x1xf32>
    %cst = arith.constant dense<0.000000e+00> : vector<2x1xf32>
    %6 = vector.multi_reduction <add>, %5, %cst [1] : vector<2x32x1xf32> to vector<2x1xf32>
    %c0_3 = arith.constant 0 : index
    %c0_4 = arith.constant 0 : index
    %7 = vector.load %arg2[%c0_3, %c0_4] : memref<1x1xf32, #tpu.memory_space<vmem>>, vector<1x1xf32>
    %8 = vector.broadcast %7 : vector<1x1xf32> to vector<2x1xf32>
    %9 = arith.addf %6, %8 : vector<2x1xf32>
    %10 = arith.negf %9 : vector<2x1xf32>
    %11 = math.exp %10 : vector<2x1xf32>
    %cst_5 = arith.constant 1.000000e+00 : f32
    %12 = vector.broadcast %cst_5 : f32 to vector<2x1xf32>
    %13 = arith.addf %12, %11 : vector<2x1xf32>
    %14 = arith.divf %12, %13 : vector<2x1xf32>
    %c0_6 = arith.constant 0 : index
    %c0_7 = arith.constant 0 : index
    %15 = vector.load %arg3[%c0_6, %c0_7] : memref<2x1xf32, #tpu.memory_space<vmem>>, vector<2x1xf32>
    tpu.vector_store %arg3[%c0_6, %c0_7], %14 {strides = array<i32>} : memref<2x1xf32, #tpu.memory_space<vmem>>, vector<2x1xf32>,
    return
  }
}

</mosaic_0001>

<bundles_post_ra>
// kernel: transformehr_forward.7
= control target key start
LH: loop header
LB: loop body
LE: loop exit
PB: predicated region body
PF: predicated region fallthrough
CT: control target
= control target key end

     0   :  { %v18_v0 = vlaneseq  ;;  %vm79_vm0 = vcmask 7168   ;;  %vm153_vm8 = vcmask 1041409   ;;  %vm156_vm10 = vcmask 1024   ;;  %s236_s0 = inlined_call_operand.vmem [shape: f32[2,32], index: 0, kind: input, shape index: {}]   ;;  %s237_s2 = inlined_call_operand.<no memory space> [shape: f32[1,1], index: 2, kind: input, shape index: {}]   ;;  %s238_s1 = inlined_call_operand.vmem [shape: f32[32,1], index: 1, kind: input, shape index: {}]   ;;  %s239_s3 = inlined_call_operand.vmem [shape: f32[2,1], index: 3, kind: output, shape index: {}]  }
   0x1   :  { %v16_v3 = vld [vmem:[%s236_s0] sm:$0x3]  ;;  %v8_v8 = vstv %s237_s2  ;;  %v69_v14 = vld [vmem:[%s238_s1 + $0x10] sm:$0xff]  ;;  %v68_v15 = vld [vmem:[%s238_s1 + $0x8] sm:$0xff] }
   0x2   :  { %v19_v1 = vshrl.u32 %v18_v0, 7  ;;  %v42_v4 = vperm.slane %v16_v3, 1  ;;  %v17_v5 = vperm.slane %v16_v3, 0  ;;  %9 = vst [vmem:[#allocation2] sm:$0x1] %v8_v8  ;;  %v67_v13 = vld [vmem:[%s238_s1] sm:$0xff] }
   0x3   :  { %v70_v16 = vld [vmem:[%s238_s1 + $0x18] sm:$0xff] }
   0x4   :  { %166 = vset.pattern.permute.xlu1 %v19_v1  ;;  %164 = vset.pattern.permute.xlu0 %v19_v1  ;;  %v32_v2 = vadd.s32 16, %v19_v1  ;;  %v26_v6 = vadd.s32 8, %v19_v1  ;;  %v38_v7 = vadd.s32 24, %v19_v1 }
   0x6   :  { %168 = vset.pattern.permute.xlu2 %v32_v2 }
   0x9   :  { %v172_v44 = vld [vmem:[#allocation2] ss:$0 sm:$0xff] }
   0xc   :  { %47 = vperm.xlu0 %164, %v42_v4   ;;  %22 = vperm.xlu1 %166, %v17_v5  }
   0xe   :  { %59 = vperm.xlu2 %168, %v42_v4  }
  0x14   :  { %165 = vset.pattern.permute.xlu0 %v26_v6  ;;  %167 = vset.pattern.permute.xlu1 %v26_v6 }
  0x16   :  { %34 = vperm.xlu2 %168, %v17_v5  }
  0x1c   :  { %53 = vperm.xlu0 %165, %v42_v4   ;;  %28 = vperm.xlu1 %167, %v17_v5  }
  0x1e   :  { %170 = vset.pattern.permute.xlu2 %v38_v7 }
  0x24   :  { %169 = vset.pattern.permute.xlu1 %v38_v7  ;;  %171 = vset.pattern.permute.xlu0 %v38_v7 }
  0x26   :  { %40 = vperm.xlu2 %170, %v17_v5  }
  0x2c   :  { %65 = vperm.xlu1 %169, %v42_v4  }
  0x68   :  { %v60_v9 = vpop.permute.xlu2 %59 }
  0x69   :  { %v77_v36 = vmul.f32 %v69_v14, %v60_v9 }
  0x6b   :  { %v96_v42 = vsel %vm79_vm0, %v77_v36, 0.0 }
  0x70   :  { %v35_v10 = vpop.permute.xlu2 %34 }
  0x71   :  { %v73_v20 = vmul.f32 %v69_v14, %v35_v10 }
  0x73   :  { %v83_v27 = vsel %vm79_vm0, %v73_v20, 0.0 }
  0x7e   :  { %v23_v11 = vpop.permute.xlu1 %22  ;;  %v48_v12 = vpop.permute.xlu0 %47 }
  0x7f   :  { %v71_v18 = vmul.f32 %v67_v13, %v23_v11  ;;  %v75_v32 = vmul.f32 %v67_v13, %v48_v12 }
  0x80   :  { %v41_v17 = vpop.permute.xlu2 %40 }
  0x81   :  { %v74_v22 = vmul.f32 %v70_v16, %v41_v17  ;;  %v80_v23 = vsel %vm79_vm0, %v71_v18, 0.0  ;;  %v93_v37 = vsel %vm79_vm0, %v75_v32, 0.0 }
  0x83   :  { %v85_v28 = vsel %vm79_vm0, %v74_v22, 0.0 }
  0x8e   :  { %v29_v19 = vpop.permute.xlu1 %28  ;;  %v54_v25 = vpop.permute.xlu0 %53 }
  0x8f   :  { %v72_v21 = vmul.f32 %v68_v15, %v29_v19  ;;  %v76_v30 = vmul.f32 %v68_v15, %v54_v25 }
  0x91   :  { %v81_v24 = vsel %vm79_vm0, %v72_v21, 0.0  ;;  %v94_v34 = vsel %vm79_vm0, %v76_v30, 0.0 }
  0x92   :  { %v82_v26 = vadd.f32 %v81_v24, %v80_v23  ;;  %v95_v38 = vadd.f32 %v94_v34, %v93_v37 }
  0x94   :  { %v84_v29 = vadd.f32 %v83_v27, %v82_v26  ;;  %v97_v46 = vadd.f32 %v96_v42, %v95_v38 }
  0x96   :  { %v86_v31 = vadd.f32 %v85_v28, %v84_v29 }
  0x98   :  { %v87_v33 = vrot.slane %v86_v31, 4 }
  0x9a   :  { %v88_v35 = vadd.f32 %v87_v33, %v86_v31 }
  0x9c   :  { %v89_v39 = vrot.slane %v88_v35, 2 }
  0x9e   :  { %v90_v40 = vadd.f32 %v89_v39, %v88_v35  ;;  %v66_v41 = vpop.permute.xlu1 %65 }
  0x9f   :  { %v78_v43 = vmul.f32 %v70_v16, %v66_v41 }
  0xa0   :  { %v91_v45 = vrot.slane %v90_v40, 1 }
  0xa1   :  { %v98_v47 = vsel %vm79_vm0, %v78_v43, 0.0 }
  0xa2   :  { %v92_v48 = vadd.f32 %v91_v45, %v90_v40  ;;  %v99_v49 = vadd.f32 %v98_v47, %v97_v46 }
  0xa4   :  { %v110_v50 = vadd.f32 %v172_v44, %v92_v48  ;;  %v100_v51 = vrot.slane %v99_v49, 4 }
  0xa6   :  { %v162_v52 = vmul.f32 -1.442695, %v110_v50  ;;  %v101_v53 = vadd.f32 %v100_v51, %v99_v49 }
  0xa8   :  { %173 = vpow2.f32 %v162_v52  ;;  %v102_v54 = vrot.slane %v101_v53, 2 }
  0xaa   :  { %v103_v55 = vadd.f32 %v102_v54, %v101_v53 }
  0xac   :  { %v104_v56 = vrot.slane %v103_v55, 1 }
  0xae   :  { %v174_v57 = vpop.eup %173  ;;  %v105_v58 = vadd.f32 %v104_v56, %v103_v55 }
  0xaf   :  { %v118_v59 = vadd.f32 1.0, %v174_v57 }
  0xb0   :  { %v111_v60 = vadd.f32 %v172_v44, %v105_v58 }
  0xb1   :  { %175 = vrcp.f32 %v118_v59  ;;  %vm125_vm3 = vweird.f32 %v118_v59  ;;  %v131_v11 = vand.u32 2147483648, %v118_v59  ;;  %v129_v13 = vand.u32 2147483647, %v118_v59 }
  0xb2   :  { %v163_v61 = vmul.f32 -1.442695, %v111_v60 }
  0xb3   :  { %v132_v18 = vor.u32 1.1754944e-38, %v131_v11  ;;  %vm130_vm9 = vcmp.eq.f32.partialorder %v129_v13, 8.507059e+37 }
  0xb4   :  { %177 = vpow2.f32 %v163_v61 }
  0xb7   :  { %v176_v62 = vpop.eup %175 }
  0xb8   :  { %v121_v1 = vmul.f32 %v176_v62, %v118_v59  ;;  %vm126_vm1 = vweird.f32 %v176_v62 }
  0xb9   :  { %vm227_vm4 = vmor %vm125_vm3, %vm126_vm1 }
  0xba   :  { %v178_v63 = vpop.eup %177  ;;  %v122_v2 = vsub.f32 1.0, %v121_v1 }
  0xbb   :  { %v119_v0 = vadd.f32 1.0, %v178_v63 }
  0xbc   :  { %v123_v4 = vmul.f32 %v176_v62, %v122_v2 }
  0xbd   :  { %179 = vrcp.f32 %v119_v0  ;;  %v146_v7 = vand.u32 2147483648, %v119_v0  ;;  %v144_v10 = vand.u32 2147483647, %v119_v0  ;;  %vm140_vm5 = vweird.f32 %v119_v0 }
  0xbe   :  { %v124_v8 = vadd.f32 %v176_v62, %v123_v4 }
  0xbf   :  { %v147_v15 = vor.u32 1.1754944e-38, %v146_v7  ;;  %vm145_vm7 = vcmp.eq.f32.partialorder %v144_v10, 8.507059e+37 }
  0xc0   :  { %v128_v16 = vsel %vm227_vm4, %v176_v62, %v124_v8 }
  0xc1   :  { %v133_v21 = vsel %vm130_vm9, %v132_v18, %v128_v16 }
  0xc3   :  { %v180_v3 = vpop.eup %179 }
  0xc4   :  { %v136_v5 = vmul.f32 %v180_v3, %v119_v0  ;;  %vm141_vm2 = vweird.f32 %v180_v3 }
  0xc5   :  { %vm142_vm6 = vmor %vm140_vm5, %vm141_vm2 }
  0xc6   :  { %v137_v6 = vsub.f32 1.0, %v136_v5 }
  0xc8   :  { %v138_v9 = vmul.f32 %v180_v3, %v137_v6 }
  0xca   :  { %v139_v14 = vadd.f32 %v180_v3, %v138_v9 }
  0xcc   :  { %v143_v17 = vsel %vm142_vm6, %v180_v3, %v139_v14 }
  0xcd   :  { %v148_v19 = vsel %vm145_vm7, %v147_v15, %v143_v17 }
  0xce   :  { %v152_v20 = vrot.slane %v148_v19, 7 }
  0xd0   :  { %v154_v22 = vsel %vm153_vm8, %v152_v20, %v133_v21 }
  0xd1   :  { %157 = vst.msk [vmem:[%s239_s3] sm:$0x3] %vm156_vm10, %v154_v22 }

// kernel: transformehr_forward.4
= control target key start
LH: loop header
LB: loop body
LE: loop exit
PB: predicated region body
PF: predicated region fallthrough
CT: control target
= control target key end

     0   :  { %vm30_vm0 = vcmask 261120   ;;  %v107_v10 = vmov 32.0   ;;  %s168_s0 = inlined_call_operand.vmem [shape: f32[2,8,32], index: 0, kind: input, shape index: {}]   ;;  %s169_s1 = inlined_call_operand.vmem [shape: f32[1,8,32], index: 1, kind: input, shape index: {}]   ;;  %s170_s2 = inlined_call_operand.vmem [shape: f32[1,8,32], index: 2, kind: input, shape index: {}]   ;;  %s171_s3 = inlined_call_operand.vmem [shape: f32[1,1,32], index: 3, kind: input, shape index: {}]   ;;  %s172_s4 = inlined_call_operand.vmem [shape: f32[1,1,32], index: 4, kind: input, shape index: {}]   ;;  %s173_s5 = inlined_call_operand.vmem [shape: f32[2,8,32], index: 5, kind: output, shape index: {}]  }
   0x1   :  { %v20_v0 = vld [vmem:[%s168_s0] sm:$0xff]  ;;  %v21_v4 = vld [vmem:[%s168_s0 + $0x8] sm:$0xff]  ;;  %101 = vrcp.f32 %v107_v10 }
   0x2   :  { %v22_v1 = vld [vmem:[%s169_s1] sm:$0xff] }
   0x3   :  { %v25_v2 = vld [vmem:[%s170_s2] sm:$0xff]  ;;  %v23_v3 = vadd.f32 %v22_v1, %v20_v0  ;;  %v24_v6 = vadd.f32 %v22_v1, %v21_v4 }
   0x4   :  { %v99_v41 = vld [vmem:[%s171_s3] ss:$0 sm:$0xff] }
   0x5   :  { %v26_v5 = vadd.f32 %v25_v2, %v23_v3  ;;  %v27_v8 = vadd.f32 %v25_v2, %v24_v6  ;;  %v100_v44 = vld [vmem:[%s172_s4] ss:$0 sm:$0xff] }
   0x7   :  { %v31_v7 = vsel %vm30_vm0, %v26_v5, 0.0  ;;  %v34_v9 = vsel %vm30_vm0, %v27_v8, 0.0  ;;  %v102_v11 = vpop.eup %101 }
   0x8   :  { %32 = vadd.xlane.f32.xlu0 %v31_v7  ;;  %v38_v12 = vmul.f32 32.0, %v102_v11  ;;  %vm42_vm1 = vweird.f32 %v102_v11 }
   0xa   :  { %v39_v13 = vsub.f32 1.0, %v38_v12 }
   0xc   :  { %v40_v14 = vmul.f32 %v102_v11, %v39_v13 }
   0xe   :  { %v41_v15 = vadd.f32 %v102_v11, %v40_v14 }
  0x10   :  { %35 = vadd.xlane.f32.xlu0 %v34_v9  ;;  %v43_v16 = vsel %vm42_vm1, %v102_v11, %v41_v15 }
  0x7b   :  { %v33_v17 = vpop.xlane.xlu0 %32 }
  0x7c   :  { %v44_v18 = vmul.f32 %v43_v16, %v33_v17 }
  0x7e   :  { %v46_v19 = vsub.f32 %v26_v5, %v44_v18 }
  0x80   :  { %v48_v20 = vmul.f32 %v46_v19, %v46_v19 }
  0x82   :  { %v50_v21 = vsel %vm30_vm0, %v48_v20, 0.0 }
  0x83   :  { %51 = vadd.xlane.f32.xlu1 %v50_v21  ;;  %v36_v22 = vpop.xlane.xlu0 %35 }
  0x84   :  { %v45_v23 = vmul.f32 %v43_v16, %v36_v22 }
  0x86   :  { %v47_v24 = vsub.f32 %v27_v8, %v45_v23 }
  0x88   :  { %v49_v25 = vmul.f32 %v47_v24, %v47_v24 }
  0x8a   :  { %v53_v26 = vsel %vm30_vm0, %v49_v25, 0.0 }
  0x8b   :  { %54 = vadd.xlane.f32.xlu1 %v53_v26 }
  0xf6   :  { %v52_v27 = vpop.xlane.xlu1 %51 }
  0xf7   :  { %v56_v28 = vmul.f32 %v52_v27, %v43_v16 }
  0xf9   :  { %v58_v29 = vadd.f32 1e-05, %v56_v28 }
  0xfb   :  { %103 = vrsqrt.f32 %v58_v29  ;;  %vm66_vm3 = vweird.f32 %v58_v29 }
  0xfe   :  { %v55_v30 = vpop.xlane.xlu1 %54 }
  0xff   :  { %v57_v31 = vmul.f32 %v55_v30, %v43_v16 }
 0x101   :  { %v104_v32 = vpop.eup %103  ;;  %v59_v33 = vadd.f32 1e-05, %v57_v31 }
 0x102   :  { %v61_v34 = vmul.f32 %v104_v32, %v58_v29  ;;  %vm67_vm2 = vweird.f32 %v104_v32 }
 0x103   :  { %105 = vrsqrt.f32 %v59_v33  ;;  %vm68_vm4 = vmor %vm66_vm3, %vm67_vm2  ;;  %vm76_vm6 = vweird.f32 %v59_v33 }
 0x104   :  { %v62_v35 = vmul.f32 %v104_v32, %v61_v34 }
 0x106   :  { %v63_v36 = vmul.f32 0.5, %v62_v35 }
 0x108   :  { %v64_v37 = vsub.f32 1.5, %v63_v36 }
 0x109   :  { %v106_v38 = vpop.eup %105 }
 0x10a   :  { %v65_v39 = vmul.f32 %v104_v32, %v64_v37  ;;  %v71_v40 = vmul.f32 %v106_v38, %v59_v33  ;;  %vm77_vm5 = vweird.f32 %v106_v38 }
 0x10b   :  { %vm78_vm7 = vmor %vm76_vm6, %vm77_vm5 }
 0x10c   :  { %v69_v42 = vsel %vm68_vm4, %v104_v32, %v65_v39  ;;  %v72_v43 = vmul.f32 %v106_v38, %v71_v40 }
 0x10d   :  { %v80_v45 = vmul.f32 %v69_v42, %v46_v19 }
 0x10e   :  { %v73_v46 = vmul.f32 0.5, %v72_v43 }
 0x10f   :  { %v85_v47 = vmul.f32 %v99_v41, %v80_v45 }
 0x110   :  { %v74_v48 = vsub.f32 1.5, %v73_v46 }
 0x111   :  { %v90_v49 = vadd.f32 %v100_v44, %v85_v47 }
 0x112   :  { %v75_v50 = vmul.f32 %v106_v38, %v74_v48 }
 0x113   :  { %92 = vst.msk [vmem:[%s173_s5] sm:$0xff] %vm30_vm0, %v90_v49 }
 0x114   :  { %v79_v51 = vsel %vm78_vm7, %v106_v38, %v75_v50 }
 0x115   :  { %v81_v52 = vmul.f32 %v79_v51, %v47_v24 }
 0x117   :  { %v86_v53 = vmul.f32 %v99_v41, %v81_v52 }
 0x119   :  { %v91_v54 = vadd.f32 %v100_v44, %v86_v53 }
 0x11b   :  { %93 = vst.msk [vmem:[%s173_s5 + $0x8] sm:$0xff] %vm30_vm0, %v91_v54 }

// kernel: transformehr_forward.5
= control target key start
LH: loop header
LB: loop body
LE: loop exit
PB: predicated region body
PF: predicated region fallthrough
CT: control target
= control target key end

     0   :  { %s2151_s25 = smov 0   ;;  %s2153_s26 = smov 0   ;;  %s2545_s0 = inlined_call_operand.vmem [shape: f32[2,8,32], index: 0, kind: input, shape index: {}]   ;;  %s2546_s1 = inlined_call_operand.vmem [shape: bf16[2,32,96], index: 1, kind: input, shape index: {}]   ;;  %s2547_s2 = inlined_call_operand.vmem [shape: f32[2,1,96], index: 2, kind: input, shape index: {}]   ;;  %s2548_s3 = inlined_call_operand.vmem [shape: bf16[2,32,32], index: 3, kind: input, shape index: {}]   ;;  %s2549_s4 = inlined_call_operand.vmem [shape: f32[2,1,32], index: 4, kind: input, shape index: {}]   ;;  %s2550_s5 = inlined_call_operand.vmem [shape: f32[2,1,1,32], index: 5, kind: input, shape index: {}]   ;;  %s2551_s6 = inlined_call_operand.vmem [shape: f32[2,1,1,32], index: 6, kind: input, shape index: {}]   ;;  %s2552_s7 = inlined_call_operand.vmem [shape: f32[2,1,1,32], index: 7, kind: input, shape index: {}]   ;;  %s2553_s8 = inlined_call_operand.vmem [shape: f32[2,1,1,32], index: 8, kind: input, shape index: {}]   ;;  %s2554_s9 = inlined_call_operand.vmem [shape: bf16[2,32,128], index: 9, kind: input, shape index: {}]   ;;  %s2555_s10 = inlined_call_operand.vmem [shape: f32[2,1,128], index: 10, kind: input, shape index: {}]   ;;  %s2556_s11 = inlined_call_operand.vmem [shape: bf16[2,128,32], index: 11, kind: input, shape index: {}]   ;;  %s2557_s12 = inlined_call_operand.vmem [shape: f32[2,1,32], index: 12, kind: input, shape index: {}]   ;;  %s2558_s13 = inlined_call_operand.vmem [shape: f32[2,8,32], index: 13, kind: output, shape index: {}]  }
   0x1   :  { %2564 = sst [smem:[#allocation9_spill]] %s2545_s0  ;;  %s2155_s27 = smov 0  }
   0x2   :  { %2565 = sst [smem:[#allocation10_spill]] %s2546_s1  ;;  %s2157_s28 = smov 0  }
   0x3   :  { %2566 = sst [smem:[#allocation11_spill]] %s2547_s2  ;;  %s2159_s29 = smov 0  }
   0x4   :  { %2567 = sst [smem:[#allocation12_spill]] %s2548_s3 }
   0x5   :  { %2568 = sst [smem:[#allocation13_spill]] %s2556_s11 }
   0x6   :  { %2569 = sst [smem:[#allocation14_spill]] %s2558_s13 }
   0x7 LB: > { %2570 = sst [smem:[#allocation2_spill]] %s2052_s25  ;;  %s32_s30 = sadd.s32 1, %s2060_s27  ;;  %s2068_s29 = sphi %s2159_s29, %s23_s29   ;;  %s2064_s28 = sphi %s2157_s28, %s2594_s28   ;;  %s2060_s27 = sphi %s2155_s27, %s2593_s27   ;;  %s2056_s26 = sphi %s2153_s26, %s2592_s26   ;;  %s2052_s25 = sphi %s2151_s25, %s2591_s25  }
   0x8   : > { %2571 = sst [smem:[#allocation3_spill]] %s2060_s27  ;;  %s35_s14 = sadd.s32 1, %s2064_s28 }
   0x9   : > { %2572 = sst [smem:[#allocation4_spill]] %s2064_s28  ;;  %p33_p0 = scmp.ge.s32.totalorder %s32_s30, 2 }
   0xa   : > { %2573 = sst [smem:[#allocation5_spill]] %s2068_s29  ;;  %p1828_p1 = scmp.ge.s32.totalorder %s2068_s29, 1 }
   0xb   : > { %p502_p2 = scmp.lt.s32.totalorder %s2068_s29, 5  ;;  %s2596_s30 = smov (%p33_p0, %s32_s30), 0 }
   0xc   : > { %2574 = sst [smem:[#allocation6_spill]] %s2596_s30  ;;  %s2598_s14 = smov (!%p33_p0, %s35_s14), %s2064_s28 }
   0xd   : > { %p503_p3 = pnand %p1828_p1, %p502_p2  ;;  %p37_p4 = scmp.ge.s32.totalorder %s2598_s14, 2 }
   0xf   : > { %s2600_s14 = smov (%p37_p4, %s2598_s14), 0  ;;  %506 = sbr.rel (%p503_p3) target bundleno = 2095 (0x82f), region = 72 }
  0x10   : > { %2575 = sst [smem:[#allocation7_spill]] %s2600_s14 }
  0x14   : > { %p588_p5 = scmp.lt.s32.totalorder %s2056_s26, 1  ;;  %p592_p6 = scmp.lt.s32.totalorder %s2052_s25, 1 }
  0x15   : > { %s2576_s0 = sld [smem:[#allocation9_spill]] }
  0x16   : > { %s2602_s26 = smov (!%p588_p5, %s2056_s26), 1  ;;  %s2577_s1 = sld [smem:[#allocation10_spill]] }
  0x17   : > { %s2185_s15 = scalar_select %p592_p6, %s2052_s25, 1 }
  0x18   : > { %s1829_s16 = sshll.u32 %s2602_s26, 3  ;;  %s2578_s2 = sld [smem:[#allocation11_spill]] }
  0x19   : > { %s1909_s20 = sshll.u32 %s2185_s15, 4  ;;  %s2579_s3 = sld [smem:[#allocation12_spill]] }
  0x1a   : > { %s2226_s25 = scalar_lea.vmem %s2554_s9, %s1909_s20  ;;  %s627_s18 = scalar_lea.vmem %s2555_s10, %s2185_s15 }
  0x1b   : > { %s591_s19 = scalar_lea.vmem %s2576_s0, %s1829_s16  ;;  %s1912_s0 = sshll.u32 %s2185_s15, 6 }
  0x1c   : > { %s596_s23 = scalar_lea.vmem %s2577_s1, %s1909_s20  ;;  %s635_s22 = scalar_lea.vmem %s2557_s12, %s2185_s15 }
  0x1d   : > { %s2581_s24 = sld [smem:[#allocation13_spill]] }
  0x1e   : > { %s599_s30 = scalar_lea.vmem %s2578_s2, %s2185_s15  ;;  %s2582_s28 = sld [smem:[#allocation14_spill]] }
  0x1f   : > { %s2201_s29 = scalar_lea.vmem %s2579_s3, %s1909_s20 }
  0x20   : > { %2580 = sst [smem:[#allocation8_spill]] %s2201_s29 }
  0x21   : > { %s2583_s29 = sld [smem:[#allocation2_spill]] }
  0x23   : > { %s2240_s13 = scalar_lea.vmem %s2581_s24, %s1912_s0 }
  0x24   : > { %s2245_s3 = scalar_lea.vmem %s2582_s28, %s1829_s16 }
  0x27   : > { %p1839_p7 = scmp.ne.s32.totalorder %s2583_s29, 0 }
  0x29   : > { %644 = sbr.rel (%p1839_p7) target bundleno = 48 (0x30), region = 76 }
  0x2e   : > { %v645_v0 = vld [vmem:[%s591_s19] sm:$0xff]  ;;  %vm646_vm0 = vcmask 261120  }
  0x2f   : > { %647 = vst.msk [vmem:[%s2245_s3] sm:$0xff] %vm646_vm0, %v645_v0 }
  0x30 PF: > { %v1914_v1 = vld [vmem:[%s596_s23 + $0x8] sm:$0xff]  ;;  %v1913_v2 = vld [vmem:[%s596_s23] sm:$0xff]  ;;  %vm675_vm1 = vcmask 261120   ;;  %s2070_s0 = smov 104   ;;  %s2071_s16 = smov 120   ;;  %vm704_vm2 = vcmask 1047556  }
  0x31   : > { %685 = vmatpush.bf16.msra.mxu0 %v1914_v1  ;;  %v1998_v5 = vld [vmem:[%s599_s30] ss:$0 sm:$0xff]  ;;  %s2072_s19 = smov 112   ;;  %s2073_s20 = smov 96   ;;  %v2074_v16 = vmov 1983009808  }
  0x32   : > { %v709_v17 = vunpack.c.l.s4 %v2074_v16  ;;  %v2075_v24 = vmov 1934713408   ;;  %vm1073_vm3 = vcmask 64512   ;;  %s2076_s30 = smov 64   ;;  %vm1205_vm4 = vcmask 1043456   ;;  %s2584_s23 = sld [smem:[#allocation8_spill]] }
  0x33   : > { %v733_v25 = vunpack.c.l.s4 %v2075_v24  ;;  %s2077_s24 = smov 16   ;;  %s2078_s28 = smov 8   ;;  %vm1402_vm5 = vcmask 130048   ;;  %vm1404_vm6 = vcmask 195584  }
  0x34   : > { %v2261_v21 = vunpack.c.0.s8 %v709_v17  ;;  %s2079_s26 = smov 24   ;;  %s2585_s21 = scalar_lea.vmem %s2549_s4, %s2185_s15 }
  0x35   : > { %686 = vmatpush.bf16.msra.mxu0 %v1913_v2  ;;  %v2270_v41 = vunpack.c.0.s8 %v733_v25  ;;  %s2586_s14 = scalar_lea.vmem %s2550_s5, %s2185_s15  ;;  %s2587_s29 = scalar_lea.vmem %s2551_s6, %s2185_s15 }
  0x36   : > { %v2250_v3 = vld [vmem:[%s2245_s3] sm:$0xff] }
  0x37   : > { %v659_v4 = vpack.c.bf16 %v2250_v3, %v2250_v3 }
  0x39   : > { %1848 = vmatmul.msk.bf16.vlgmr.msra.gmra.mxu0 %vm675_vm1, %v659_v4 }
  0xb6   : > { %v688_v6 = vpop.f32.mrf.mxu0 }
  0xb7   : > { %v689_v7 = vadd.f32 %v1998_v5, %v688_v6 }
  0xb9   : > { %819 = vrot.lane.b32.xlu1 %v689_v7, %s2070_s0  ;;  %815 = vrot.lane.b32.xlu0 %v689_v7, %s2071_s16  ;;  %v692_v9 = vmul.f32 0.35355338, %v689_v7 }
  0xbb   : > { %v706_v23 = vrot.slane %v692_v9, 4 }
  0xbe   : > { %v690_v8 = vpop.f32.mrf.mxu0 }
  0xc1   : > { %817 = vrot.lane.b32.xlu0 %v689_v7, %s2072_s19 }
  0xc9   : > { %697 = vrot.lane.b32.xlu0 %v692_v9, %s2072_s19 }
 0x12b   : > { %v816_v10 = vpop.permute.xlu0 %815  ;;  %v820_v12 = vpop.permute.xlu1 %819 }
 0x12c   : > { %v2255_v11 = vpack.i.bf16 %v816_v10, %v689_v7 }
 0x12e   : > { %1979 = vrot.lane.b32.xlu1 %v2255_v11, %s2073_s20 }
 0x133   : > { %v818_v13 = vpop.permute.xlu0 %817 }
 0x134   : > { %v2258_v14 = vpack.i.bf16 %v820_v12, %v818_v13 }
 0x136   : > { %1984 = vrot.lane.b32.xlu2 %v2258_v14, %s2073_s20  ;;  %700 = vrot.lane.b32.xlu1 %v692_v9, %s2070_s0  ;;  %s2588_s20 = scalar_lea.vmem %s2552_s7, %s2185_s15 }
 0x13b   : > { %v698_v18 = vpop.permute.xlu0 %697 }
 0x13c   : > { %v703_v22 = vrot.slane %v698_v18, 4  ;;  %v707_v31 = vsel %vm704_vm2, %v698_v18, %v706_v23 }
 0x13d   : > { %v715_v40 = vperm.slane %v707_v31, %v2261_v21 }
 0x13e   : > { %694 = vrot.lane.b32.xlu2 %v692_v9, %s2071_s16  ;;  %v705_v36 = vsel %vm704_vm2, %v703_v22, %v692_v9 }
 0x13f   : > { %v711_v48 = vperm.slane %v705_v36, %v2261_v21  ;;  %v742_v59 = vrot.slane %v715_v40, 4 }
 0x141   : > { %v730_v4 = vrot.slane %v711_v48, 4 }
 0x190   : > { %v1985_v15 = vpop.permute.xlu2 %1984 }
 0x191   : > { %v1987_v19 = vunpack.i.h.bf16 %v1985_v15  ;;  %v1986_v20 = vunpack.i.l.bf16 %v1985_v15 }
 0x193   : > { %v845_v27 = vrot.slane %v1987_v19, 4  ;;  %v833_v28 = vrot.slane %v1986_v20, 4 }
 0x198   : > { %v695_v37 = vpop.permute.xlu2 %694 }
 0x199   : > { %v718_v49 = vrot.slane %v695_v37, 4 }
 0x1a0   : > { %v1980_v26 = vpop.permute.xlu1 %1979 }
 0x1a1   : > { %v1982_v29 = vunpack.i.h.bf16 %v1980_v26  ;;  %v1981_v30 = vunpack.i.l.bf16 %v1980_v26 }
 0x1a3   : > { %v847_v32 = vrot.slane %v1982_v29, 4  ;;  %v834_v33 = vsel %vm704_vm2, %v833_v28, %v1981_v30  ;;  %v835_v34 = vrot.slane %v1981_v30, 4  ;;  %v846_v35 = vsel %vm704_vm2, %v845_v27, %v1982_v29 }
 0x1a4   : > { %v840_v38 = vperm.slane %v834_v33, %v2261_v21  ;;  %v852_v39 = vperm.slane %v846_v35, %v2261_v21 }
 0x1a5   : > { %v836_v42 = vsel %vm704_vm2, %v1986_v20, %v835_v34  ;;  %v848_v43 = vsel %vm704_vm2, %v1987_v19, %v847_v32 }
 0x1a6   : > { %v844_v44 = vperm.slane %v836_v42, %v2261_v21  ;;  %v856_v45 = vperm.slane %v848_v43, %v2261_v21  ;;  %v857_v46 = vrot.slane %v852_v39, 4  ;;  %v859_v47 = vrot.slane %v840_v38, 4 }
 0x1a8   : > { %v858_v50 = vsel %vm704_vm2, %v857_v46, %v840_v38  ;;  %v860_v51 = vsel %vm704_vm2, %v852_v39, %v859_v47  ;;  %v869_v52 = vrot.slane %v856_v45, 4  ;;  %v871_v53 = vrot.slane %v844_v44, 4  ;;  %v701_v54 = vpop.permute.xlu1 %700 }
 0x1a9   : > { %v864_v55 = vperm.slane %v858_v50, %v2270_v41  ;;  %v868_v56 = vperm.slane %v860_v51, %v2270_v41  ;;  %v716_v57 = vrot.slane %v701_v54, 4  ;;  %v719_v58 = vsel %vm704_vm2, %v701_v54, %v718_v49 }
 0x1aa   : > { %v870_v60 = vsel %vm704_vm2, %v869_v52, %v844_v44  ;;  %v872_v61 = vsel %vm704_vm2, %v856_v45, %v871_v53  ;;  %v727_v62 = vperm.slane %v719_v58, %v2261_v21 }
 0x1ab   : > { %v876_v63 = vperm.slane %v870_v60, %v2270_v41  ;;  %v880_v0 = vperm.slane %v872_v61, %v2270_v41  ;;  %v881_v1 = vrot.slane %v864_v55, 4  ;;  %v883_v2 = vrot.slane %v868_v56, 4 }
 0x1ac   : > { %v717_v5 = vsel %vm704_vm2, %v716_v57, %v695_v37  ;;  %v740_v6 = vrot.slane %v727_v62, 4  ;;  %v743_v7 = vsel %vm704_vm2, %v727_v62, %v742_v59 }
 0x1ad   : > { %v882_v8 = vsel %vm704_vm2, 0.0, %v881_v1  ;;  %v884_v9 = vsel %vm704_vm2, 0.0, %v883_v2  ;;  %v885_v10 = vrot.slane %v876_v63, 4  ;;  %v887_v12 = vrot.slane %v880_v0, 4 }
 0x1ae   : > { %v889_v13 = vsel %vm704_vm2, %v883_v2, %v864_v55  ;;  %v894_v15 = vrot.slane %v884_v9, 4  ;;  %v723_v16 = vperm.slane %v717_v5, %v2261_v21  ;;  %v741_v17 = vsel %vm704_vm2, %v740_v6, %v715_v40 }
 0x1af   : > { %v888_v18 = vsel %vm704_vm2, 0.0, %v887_v12  ;;  %v747_v19 = vperm.slane %v741_v17, %v2270_v41  ;;  %v751_v20 = vperm.slane %v743_v7, %v2270_v41  ;;  %v886_v22 = vsel %vm704_vm2, 0.0, %v885_v10 }
 0x1b0   : > { %v905_v23 = vrot.slane %v888_v18, 4  ;;  %v728_v24 = vrot.slane %v723_v16, 4  ;;  %v731_v25 = vsel %vm704_vm2, %v723_v16, %v730_v4  ;;  %v893_v26 = vperm.slane %v889_v13, %v2261_v21 }
 0x1b1   : > { %v739_v27 = vperm.slane %v731_v25, %v2270_v41  ;;  %v756_v28 = vrot.slane %v747_v19, 4  ;;  %v758_v29 = vrot.slane %v751_v20, 4  ;;  %v895_v30 = vsel %vm704_vm2, %v894_v15, %v882_v8 }
 0x1b2   : > { %v729_v31 = vsel %vm704_vm2, %v728_v24, %v711_v48  ;;  %v899_v32 = vperm.slane %v895_v30, %v2261_v21  ;;  %v900_v33 = vsel %vm704_vm2, %v887_v12, %v876_v63  ;;  %v906_v34 = vsel %vm704_vm2, %v905_v23, %v886_v22 }
 0x1b3   : > { %v735_v35 = vperm.slane %v729_v31, %v2270_v41  ;;  %v754_v36 = vrot.slane %v739_v27, 4  ;;  %v757_v37 = vsel %vm704_vm2, 0.0, %v756_v28  ;;  %v759_v38 = vsel %vm704_vm2, 0.0, %v758_v29 }
 0x1b4   : > { %v771_v39 = vsel %vm704_vm2, %v758_v29, %v747_v19  ;;  %v776_v40 = vrot.slane %v759_v38, 4  ;;  %v904_v42 = vperm.slane %v900_v33, %v2261_v21  ;;  %v910_v43 = vperm.slane %v906_v34, %v2261_v21 }
 0x1b5   : > { %v752_v44 = vrot.slane %v735_v35, 4  ;;  %v755_v45 = vsel %vm704_vm2, 0.0, %v754_v36  ;;  %v760_v46 = vsel %vm704_vm2, %v754_v36, %v735_v35  ;;  %v775_v47 = vperm.slane %v771_v39, %v2261_v21 }
 0x1b6   : > { %v764_v48 = vperm.slane %v760_v46, %v2261_v21  ;;  %v765_v49 = vrot.slane %v755_v45, 4  ;;  %v777_v50 = vsel %vm704_vm2, %v776_v40, %v757_v37  ;;  %v913_v51 = vrot.slane %v893_v26, 4 }
 0x1b7   : > { %v753_v52 = vsel %vm704_vm2, 0.0, %v752_v44  ;;  %v781_v53 = vperm.slane %v777_v50, %v2261_v21  ;;  %v796_v54 = vrot.slane %v775_v47, 4  ;;  %v925_v55 = vrot.slane %v904_v42, 4 }
 0x1b8   : > { %v766_v56 = vsel %vm704_vm2, %v765_v49, %v753_v52  ;;  %v914_v57 = vsel %vm704_vm2, %v899_v32, %v913_v51  ;;  %v911_v58 = vrot.slane %v899_v32, 4  ;;  %v923_v59 = vrot.slane %v910_v43, 4 }
 0x1b9   : > { %v922_v60 = vperm.slane %v914_v57, %v2270_v41  ;;  %v926_v61 = vsel %vm704_vm2, %v910_v43, %v925_v55  ;;  %v770_v62 = vperm.slane %v766_v56, %v2261_v21  ;;  %v784_v63 = vrot.slane %v764_v48, 4 }
 0x1ba   : > { %v934_v0 = vperm.slane %v926_v61, %v2270_v41  ;;  %v912_v1 = vsel %vm704_vm2, %v911_v58, %v893_v26  ;;  %v924_v2 = vsel %vm704_vm2, %v923_v59, %v904_v42  ;;  %v797_v4 = vsel %vm704_vm2, %v781_v53, %v796_v54 }
 0x1bb   : > { %v941_v5 = vrot.slane %v922_v60, 4  ;;  %v918_v6 = vperm.slane %v912_v1, %v2270_v41  ;;  %v930_v7 = vperm.slane %v924_v2, %v2270_v41  ;;  %v785_v8 = vsel %vm704_vm2, %v770_v62, %v784_v63 }
 0x1bc   : > { %v939_v9 = vrot.slane %v934_v0, 4  ;;  %v793_v10 = vperm.slane %v785_v8, %v2270_v41  ;;  %v805_v12 = vperm.slane %v797_v4, %v2270_v41  ;;  %v782_v13 = vrot.slane %v770_v62, 4 }
 0x1bd   : > { %v942_v15 = vsel %vm704_vm2, %v934_v0, %v941_v5  ;;  %v937_v16 = vrot.slane %v918_v6, 4  ;;  %v935_v17 = vrot.slane %v930_v7, 4  ;;  %v794_v18 = vrot.slane %v781_v53, 4 }
 0x1be   : > { %v1072_v19 = vpack.c.bf16 %v942_v15, %v942_v15  ;;  %v940_v20 = vsel %vm704_vm2, %v939_v9, %v922_v60  ;;  %v812_v22 = vrot.slane %v793_v10, 4  ;;  %v783_v23 = vsel %vm704_vm2, %v782_v13, %v764_v48 }
 0x1bf   : > { %v938_v24 = vsel %vm704_vm2, %v930_v7, %v937_v16  ;;  %v1071_v25 = vpack.c.bf16 %v940_v20, %v940_v20  ;;  %v936_v26 = vsel %vm704_vm2, %v935_v17, %v918_v6  ;;  %v789_v27 = vperm.slane %v783_v23, %v2270_v41 }
 0x1c0   : > { %v1135_v28 = vsel %vm1073_vm3, %v1072_v19, 0  ;;  %v1070_v29 = vpack.c.bf16 %v938_v24, %v938_v24  ;;  %v1069_v30 = vpack.c.bf16 %v936_v26, %v936_v26  ;;  %v795_v32 = vsel %vm704_vm2, %v794_v18, %v775_v47 }
 0x1c1   : > { %1144 = vmatpush.bf16.xpose.msrb.mxu0 %v1135_v28  ;;  %v1116_v31 = vsel %vm1073_vm3, %v1071_v25, 0  ;;  %v808_v33 = vrot.slane %v789_v27, 4  ;;  %v801_v36 = vperm.slane %v795_v32, %v2270_v41  ;;  %v810_v37 = vrot.slane %v805_v12, 4 }
 0x1c2   : > { %v1097_v34 = vsel %vm1073_vm3, %v1070_v29, 0  ;;  %1125 = vmatpush.bf16.xpose.msra.mxu3 %v1116_v31  ;;  %v1078_v35 = vsel %vm1073_vm3, %v1069_v30, 0  ;;  %v813_v38 = vsel %vm704_vm2, %v805_v12, %v812_v22 }
 0x1c3   : > { %1106 = vmatpush.bf16.xpose.msra.mxu2 %v1097_v34  ;;  %1087 = vmatpush.bf16.xpose.msra.mxu1 %v1078_v35  ;;  %v811_v39 = vsel %vm704_vm2, %v810_v37, %v793_v10  ;;  %v806_v40 = vrot.slane %v801_v36, 4  ;;  %v809_v42 = vsel %vm704_vm2, %v801_v36, %v808_v33  ;;  %v1068_v43 = vpack.c.bf16 %v813_v38, %v813_v38 }
 0x1c4   : > { %v1067_v45 = vpack.c.bf16 %v811_v39, %v811_v39  ;;  %v1066_v46 = vpack.c.bf16 %v809_v42, %v809_v42 }
 0x1c5   : > { %v807_v44 = vsel %vm704_vm2, %v806_v40, %v789_v27 }
 0x1c6   : > { %v1065_v47 = vpack.c.bf16 %v807_v44, %v807_v44 }
 0x1c8   : > { %1852 = vmatmul.msk.bf16.vlgmr.msrb.gmra.mxu0 %vm1073_vm3, %v1068_v43 }
 0x1c9   : > { %1851 = vmatmul.msk.bf16.vlgmr.msra.gmra.mxu3 %vm1073_vm3, %v1067_v45 }
 0x1ca   : > { %1850 = vmatmul.msk.bf16.vlgmr.msra.gmra.mxu2 %vm1073_vm3, %v1066_v46  ;;  %1849 = vmatmul.msk.bf16.vlgmr.msra.gmra.mxu1 %vm1073_vm3, %v1065_v47 }
 0x245   : > { %v1146_v48 = vpop.f32.mrf.mxu0 }
 0x246   : > { %v1159_v49 = vsel %vm1073_vm3, %v1146_v48, -inf }
 0x247   : > { %1160 = vmax.xlane.f32.xlu2 %v1159_v49  ;;  %v1089_v50 = vpop.f32.mrf.mxu1 }
 0x248   : > { %v1150_v51 = vsel %vm1073_vm3, %v1089_v50, -inf }
 0x249   : > { %1151 = vmax.xlane.f32.xlu1 %v1150_v51 }
 0x24c   : > { %v1127_v52 = vpop.f32.mrf.mxu3 }
 0x24d   : > { %v1108_v53 = vpop.f32.mrf.mxu2  ;;  %v1148_v54 = vpop.f32.mrf.mxu0  ;;  %v1156_v55 = vsel %vm1073_vm3, %v1127_v52, -inf }
 0x24e   : > { %v1153_v56 = vsel %vm1073_vm3, %v1108_v53, -inf }
 0x24f   : > { %1157 = vmax.xlane.f32.xlu2 %v1156_v55  ;;  %1154 = vmax.xlane.f32.xlu0 %v1153_v56  ;;  %v1091_v57 = vpop.f32.mrf.mxu1 }
 0x254   : > { %v1129_v58 = vpop.f32.mrf.mxu3 }
 0x255   : > { %v1110_v59 = vpop.f32.mrf.mxu2 }
 0x263   : > { %1994 = vrot.lane.b32.xlu0 %v2258_v14, %s2076_s30 }
 0x267   : > { %1989 = vrot.lane.b32.xlu2 %v2255_v11, %s2076_s30 }
 0x2ba   : > { %v1161_v60 = vpop.xlane.xlu2 %1160 }
 0x2bb   : > { %v1165_v61 = vsub.f32 %v1146_v48, %v1161_v60 }
 0x2bc   : > { %v1152_v14 = vpop.xlane.xlu1 %1151 }
 0x2bd   : > { %v1172_v62 = vmul.f32 1.442695, %v1165_v61  ;;  %v1162_v11 = vsub.f32 %v1089_v50, %v1152_v14 }
 0x2bf   : > { %2006 = vpow2.f32 %v1172_v62  ;;  %v1166_v12 = vmul.f32 1.442695, %v1162_v11 }
 0x2c2   : > { %v1158_v63 = vpop.xlane.xlu2 %1157  ;;  %v1155_v0 = vpop.xlane.xlu0 %1154 }
 0x2c3   : > { %v1164_v1 = vsub.f32 %v1127_v52, %v1158_v63  ;;  %v1163_v5 = vsub.f32 %v1108_v53, %v1155_v0 }
 0x2c5   : > { %v2359_v2 = vpop.eup %2006  ;;  %v1170_v4 = vmul.f32 1.442695, %v1164_v1  ;;  %v1168_v7 = vmul.f32 1.442695, %v1163_v5 }
 0x2c6   : > { %v1183_v6 = vsel %vm1073_vm3, %v2359_v2, 0.0 }
 0x2c7   : > { %2008 = vpow2.f32 %v1170_v4  ;;  %1184 = vadd.xlane.f32.xlu0 %v1183_v6 }
 0x2c8   : > { %2010 = vpow2.f32 %v1168_v7 }
 0x2c9   : > { %2012 = vpow2.f32 %v1166_v12 }
 0x2ca   : > { %v1990_v9 = vpop.permute.xlu2 %1989 }
 0x2cb   : > { %v1992_v13 = vunpack.i.h.bf16 %v1990_v9  ;;  %v1991_v15 = vunpack.i.l.bf16 %v1990_v9 }
 0x2cd   : > { %v2363_v8 = vpop.eup %2008  ;;  %v969_v17 = vrot.slane %v1992_v13, 4  ;;  %v957_v19 = vrot.slane %v1991_v15, 4 }
 0x2ce   : > { %v1180_v10 = vsel %vm1073_vm3, %v2363_v8, 0.0  ;;  %v2367_v16 = vpop.eup %2010 }
 0x2cf   : > { %1181 = vadd.xlane.f32.xlu1 %v1180_v10  ;;  %v1177_v23 = vsel %vm1073_vm3, %v2367_v16, 0.0  ;;  %v2377_v32 = vpop.eup %2012 }
 0x2d0   : > { %v1174_v44 = vsel %vm1073_vm3, %v2377_v32, 0.0 }
 0x2d5   : > { %v1995_v18 = vpop.permute.xlu0 %1994 }
 0x2d6   : > { %v1997_v20 = vunpack.i.h.bf16 %v1995_v18  ;;  %v1996_v22 = vunpack.i.l.bf16 %v1995_v18 }
 0x2d7   : > { %1178 = vadd.xlane.f32.xlu1 %v1177_v23 }
 0x2d8   : > { %v967_v24 = vrot.slane %v1997_v20, 4  ;;  %v970_v25 = vsel %vm704_vm2, %v1997_v20, %v969_v17  ;;  %v955_v26 = vrot.slane %v1996_v22, 4  ;;  %v958_v27 = vsel %vm704_vm2, %v1996_v22, %v957_v19 }
 0x2d9   : > { %v978_v28 = vperm.slane %v970_v25, %v2261_v21  ;;  %v966_v29 = vperm.slane %v958_v27, %v2261_v21 }
 0x2da   : > { %v968_v30 = vsel %vm704_vm2, %v967_v24, %v1992_v13  ;;  %v956_v31 = vsel %vm704_vm2, %v955_v26, %v1991_v15 }
 0x2db   : > { %v974_v33 = vperm.slane %v968_v30, %v2261_v21  ;;  %v991_v34 = vrot.slane %v978_v28, 4  ;;  %v962_v35 = vperm.slane %v956_v31, %v2261_v21  ;;  %v993_v36 = vrot.slane %v966_v29, 4 }
 0x2dd   : > { %v979_v37 = vrot.slane %v974_v33, 4  ;;  %v981_v38 = vrot.slane %v962_v35, 4  ;;  %v992_v39 = vsel %vm704_vm2, %v991_v34, %v966_v29  ;;  %v994_v40 = vsel %vm704_vm2, %v978_v28, %v993_v36 }
 0x2de   : > { %v998_v42 = vperm.slane %v992_v39, %v2270_v41  ;;  %v1002_v43 = vperm.slane %v994_v40, %v2270_v41 }
 0x2df   : > { %v980_v45 = vsel %vm704_vm2, %v979_v37, %v962_v35  ;;  %v982_v46 = vsel %vm704_vm2, %v974_v33, %v981_v38  ;;  %1175 = vadd.xlane.f32.xlu1 %v1174_v44 }
 0x2e0   : > { %v986_v47 = vperm.slane %v980_v45, %v2270_v41  ;;  %v990_v48 = vperm.slane %v982_v46, %v2270_v41  ;;  %v1007_v49 = vrot.slane %v998_v42, 4  ;;  %v1009_v50 = vrot.slane %v1002_v43, 4 }
 0x2e2   : > { %v1003_v51 = vrot.slane %v986_v47, 4  ;;  %v1005_v52 = vrot.slane %v990_v48, 4  ;;  %v1010_v53 = vsel %vm704_vm2, 0.0, %v1009_v50  ;;  %v1022_v54 = vsel %vm704_vm2, %v1009_v50, %v998_v42 }
 0x2e3   : > { %v1027_v55 = vrot.slane %v1010_v53, 4  ;;  %v1008_v57 = vsel %vm704_vm2, 0.0, %v1007_v49  ;;  %v1026_v59 = vperm.slane %v1022_v54, %v2261_v21 }
 0x2e4   : > { %v1006_v56 = vsel %vm704_vm2, 0.0, %v1005_v52  ;;  %v1011_v58 = vsel %vm704_vm2, %v1005_v52, %v986_v47  ;;  %v1004_v63 = vsel %vm704_vm2, 0.0, %v1003_v51 }
 0x2e5   : > { %v1016_v60 = vrot.slane %v1006_v56, 4  ;;  %v1015_v61 = vperm.slane %v1011_v58, %v2261_v21  ;;  %v1028_v62 = vsel %vm704_vm2, %v1027_v55, %v1008_v57  ;;  %v1047_v1 = vrot.slane %v1026_v59, 4 }
 0x2e6   : > { %v1032_v0 = vperm.slane %v1028_v62, %v2261_v21 }
 0x2e7   : > { %v1017_v4 = vsel %vm704_vm2, %v1016_v60, %v1004_v63  ;;  %v1035_v5 = vrot.slane %v1015_v61, 4 }
 0x2e8   : > { %v1021_v6 = vperm.slane %v1017_v4, %v2261_v21  ;;  %v1048_v7 = vsel %vm704_vm2, %v1032_v0, %v1047_v1  ;;  %v1045_v14 = vrot.slane %v1032_v0, 4 }
 0x2e9   : > { %v1056_v11 = vperm.slane %v1048_v7, %v2270_v41 }
 0x2ea   : > { %v1036_v9 = vsel %vm704_vm2, %v1021_v6, %v1035_v5  ;;  %v1033_v10 = vrot.slane %v1021_v6, 4  ;;  %v1046_v12 = vsel %vm704_vm2, %v1045_v14, %v1026_v59 }
 0x2eb   : > { %v1044_v13 = vperm.slane %v1036_v9, %v2270_v41  ;;  %v1061_v15 = vrot.slane %v1056_v11, 4  ;;  %v1052_v17 = vperm.slane %v1046_v12, %v2270_v41 }
 0x2ec   : > { %v1034_v18 = vsel %vm704_vm2, %v1033_v10, %v1015_v61 }
 0x2ed   : > { %v1062_v19 = vsel %vm704_vm2, %v1061_v15, %v1044_v13  ;;  %v1063_v20 = vrot.slane %v1044_v13, 4  ;;  %v1040_v22 = vperm.slane %v1034_v18, %v2270_v41  ;;  %v1057_v23 = vrot.slane %v1052_v17, 4 }
 0x2ee   : > { %v1200_v24 = vpack.c.bf16 %v1062_v19, %v1062_v19 }
 0x2ef   : > { %v1058_v25 = vsel %vm704_vm2, %v1057_v23, %v1040_v22  ;;  %v1064_v26 = vsel %vm704_vm2, %v1056_v11, %v1063_v20  ;;  %v1059_v27 = vrot.slane %v1040_v22, 4 }
 0x2f0   : > { %v1245_v28 = vsel %vm1205_vm4, %v1200_v24, 0  ;;  %v1198_v29 = vpack.c.bf16 %v1058_v25, %v1058_v25  ;;  %v1201_v30 = vpack.c.bf16 %v1064_v26, %v1064_v26 }
 0x2f1   : > { %1254 = vmatpush.bf16.msrb.mxu3 %v1245_v28  ;;  %v1060_v31 = vsel %vm704_vm2, %v1052_v17, %v1059_v27 }
 0x2f2   : > { %v1207_v33 = vsel %vm1205_vm4, %v1198_v29, 0  ;;  %v1264_v34 = vsel %vm1205_vm4, %v1201_v30, 0  ;;  %v1199_v35 = vpack.c.bf16 %v1060_v31, %v1060_v31 }
 0x2f3   : > { %1216 = vmatpush.bf16.msrb.mxu1 %v1207_v33  ;;  %1273 = vmatpush.bf16.msra.mxu0 %v1264_v34 }
 0x2f4   : > { %v1226_v36 = vsel %vm1205_vm4, %v1199_v35, 0 }
 0x2f5   : > { %1235 = vmatpush.bf16.msrb.mxu2 %v1226_v36 }
 0x33a   : > { %v1185_v37 = vpop.xlane.xlu0 %1184 }
 0x33b   : > { %2014 = vrcp.f32 %v1185_v37 }
 0x341   : > { %v2015_v38 = vpop.eup %2014 }
 0x342   : > { %v1193_v39 = vmul.f32 %v2015_v38, %v2359_v2  ;;  %v1182_v40 = vpop.xlane.xlu1 %1181 }
 0x343   : > { %2016 = vrcp.f32 %v1182_v40 }
 0x344   : > { %v1197_v42 = vpack.c.bf16 %v1193_v39, %v1193_v39 }
 0x346   : > { %1856 = vmatmul.msk.bf16.vlgmr.msra.gmra.mxu0 %vm1073_vm3, %v1197_v42 }
 0x349   : > { %v2017_v43 = vpop.eup %2016 }
 0x34a   : > { %v1192_v44 = vmul.f32 %v2017_v43, %v2363_v8  ;;  %v1179_v45 = vpop.xlane.xlu1 %1178 }
 0x34b   : > { %2018 = vrcp.f32 %v1179_v45 }
 0x34c   : > { %v1196_v46 = vpack.c.bf16 %v1192_v44, %v1192_v44 }
 0x34e   : > { %1855 = vmatmul.msk.bf16.vlgmr.msrb.gmra.mxu3 %vm1073_vm3, %v1196_v46 }
 0x351   : > { %v2019_v47 = vpop.eup %2018 }
 0x352   : > { %v1191_v48 = vmul.f32 %v2019_v47, %v2367_v16  ;;  %v1176_v49 = vpop.xlane.xlu1 %1175 }
 0x353   : > { %2020 = vrcp.f32 %v1176_v49 }
 0x354   : > { %v1195_v50 = vpack.c.bf16 %v1191_v48, %v1191_v48 }
 0x356   : > { %1854 = vmatmul.msk.bf16.vlgmr.msrb.gmra.mxu2 %vm1073_vm3, %v1195_v50 }
 0x359   : > { %v2021_v2 = vpop.eup %2020 }
 0x35a   : > { %v1190_v51 = vmul.f32 %v2021_v2, %v2377_v32 }
 0x35c   : > { %v1194_v52 = vpack.c.bf16 %v1190_v51, %v1190_v51 }
 0x35e   : > { %1853 = vmatmul.msk.bf16.vlgmr.msrb.gmra.mxu1 %vm1073_vm3, %v1194_v52 }
 0x3c3   : > { %v1275_v8 = vpop.f32.mrf.mxu0 }
 0x3c4   : > { %v1291_v55 = vrot.slane %v1275_v8, 4 }
 0x3cb   : > { %v1277_v53 = vpop.f32.mrf.mxu0 }
 0x3d1   : > { %v1256_v54 = vpop.f32.mrf.mxu3 }
 0x3d2   : > { %v1279_v58 = vrot.slane %v1256_v54, 4 }
 0x3d9   : > { %v1237_v56 = vpop.f32.mrf.mxu2  ;;  %v1258_v57 = vpop.f32.mrf.mxu3 }
 0x3da   : > { %v1292_v16 = vsel %vm704_vm2, %v1291_v55, %v1237_v56  ;;  %v1293_v59 = vrot.slane %v1237_v56, 4 }
 0x3db   : > { %v1298_v60 = vperm.slane %v1292_v16, %v2261_v21  ;;  %v1218_v61 = vpop.f32.mrf.mxu1 }
 0x3dc   : > { %v1294_v62 = vsel %vm704_vm2, %v1275_v8, %v1293_v59  ;;  %v1280_v32 = vsel %vm704_vm2, %v1279_v58, %v1218_v61  ;;  %v1281_v63 = vrot.slane %v1218_v61, 4  ;;  %v1915_v59 = vld [vmem:[%s2584_s23] sm:$0xff] }
 0x3dd   : > { %v1302_v0 = vperm.slane %v1294_v62, %v2261_v21  ;;  %v1303_v1 = vrot.slane %v1298_v60, 4  ;;  %v1286_v4 = vperm.slane %v1280_v32, %v2261_v21 }
 0x3de   : > { %v1282_v5 = vsel %vm704_vm2, %v1256_v54, %v1281_v63 }
 0x3df   : > { %v1315_v6 = vrot.slane %v1302_v0, 4  ;;  %v1290_v7 = vperm.slane %v1282_v5, %v2261_v21  ;;  %v1304_v14 = vsel %vm704_vm2, %v1303_v1, %v1286_v4  ;;  %v1305_v11 = vrot.slane %v1286_v4, 4  ;;  %v1999_v4 = vld [vmem:[%s2585_s21] ss:$0 sm:$0xff] }
 0x3e0   : > { %v1310_v9 = vperm.slane %v1304_v14, %v2270_v41 }
 0x3e1   : > { %v1306_v10 = vsel %vm704_vm2, %v1298_v60, %v1305_v11  ;;  %v1316_v12 = vsel %vm704_vm2, %v1315_v6, %v1290_v7  ;;  %v1317_v13 = vrot.slane %v1290_v7, 4  ;;  %v1239_v15 = vpop.f32.mrf.mxu2 }
 0x3e2   : > { %v1314_v17 = vperm.slane %v1306_v10, %v2270_v41  ;;  %v1322_v18 = vperm.slane %v1316_v12, %v2270_v41  ;;  %v1327_v23 = vrot.slane %v1310_v9, 4 }
 0x3e3   : > { %v1318_v19 = vsel %vm704_vm2, %v1302_v0, %v1317_v13  ;;  %v1220_v20 = vpop.f32.mrf.mxu1 }
 0x3e4   : > { %v1326_v22 = vperm.slane %v1318_v19, %v2270_v41  ;;  %v1329_v24 = vrot.slane %v1314_v17, 4  ;;  %v1331_v26 = vrot.slane %v1322_v18, 4  ;;  %v1328_v31 = vsel %vm704_vm2, 0.0, %v1327_v23 }
 0x3e6   : > { %v1330_v25 = vsel %vm704_vm2, 0.0, %v1329_v24  ;;  %v1333_v27 = vrot.slane %v1326_v22, 4  ;;  %v1335_v28 = vsel %vm704_vm2, %v1329_v24, %v1310_v9  ;;  %v1332_v38 = vsel %vm704_vm2, 0.0, %v1331_v26  ;;  %v1918_v24 = vld [vmem:[%s2226_s25 + $0x8] sm:$0xff]  ;;  %v1926_v26 = vld [vmem:[%s2240_s13 + $0x38] sm:$0xff] }
 0x3e7   : > { %v1340_v29 = vrot.slane %v1330_v25, 4  ;;  %v1339_v30 = vperm.slane %v1335_v28, %v2261_v21  ;;  %v2080_v9 = vmov 32.0   ;;  %1525 = vmatpush.bf16.msra.mxu2 %v1918_v24  ;;  %v1917_v25 = vld [vmem:[%s2226_s25] sm:$0xff]  ;;  %1593 = vmatpush.bf16.msra.mxu3 %v1926_v26 }
 0x3e8   : > { %v1334_v33 = vsel %vm704_vm2, 0.0, %v1333_v27  ;;  %v1346_v34 = vsel %vm704_vm2, %v1333_v27, %v1322_v18  ;;  %2022 = vrcp.f32 %v2080_v9 }
 0x3e9   : > { %v1351_v35 = vrot.slane %v1334_v33, 4  ;;  %v1341_v36 = vsel %vm704_vm2, %v1340_v29, %v1328_v31  ;;  %v1350_v37 = vperm.slane %v1346_v34, %v2261_v21  ;;  %v1359_v40 = vrot.slane %v1339_v30, 4 }
 0x3ea   : > { %v1345_v39 = vperm.slane %v1341_v36, %v2261_v21 }
 0x3eb   : > { %v1352_v42 = vsel %vm704_vm2, %v1351_v35, %v1332_v38  ;;  %v1371_v43 = vrot.slane %v1350_v37, 4  ;;  %1526 = vmatpush.bf16.msra.mxu2 %v1917_v25 }
 0x3ec   : > { %v1356_v44 = vperm.slane %v1352_v42, %v2261_v21  ;;  %v1357_v45 = vrot.slane %v1345_v39, 4  ;;  %v1360_v46 = vsel %vm704_vm2, %v1345_v39, %v1359_v40  ;;  %v2001_v39 = vld [vmem:[%s2587_s29] ss:$0 sm:$0xff] }
 0x3ed   : > { %v1368_v52 = vperm.slane %v1360_v46, %v2270_v41  ;;  %v1924_v46 = vld [vmem:[%s2240_s13 + $0x28] sm:$0xff] }
 0x3ee   : > { %v1372_v47 = vsel %vm704_vm2, %v1356_v44, %v1371_v43  ;;  %v1358_v48 = vsel %vm704_vm2, %v1357_v45, %v1339_v30  ;;  %v1369_v49 = vrot.slane %v1356_v44, 4  ;;  %v2023_v10 = vpop.eup %2022  ;;  %v1925_v45 = vld [vmem:[%s2240_s13 + $0x30] sm:$0xff] }
 0x3ef   : > { %v1380_v50 = vperm.slane %v1372_v47, %v2270_v41  ;;  %v1364_v2 = vperm.slane %v1358_v48, %v2270_v41  ;;  %v1387_v58 = vrot.slane %v1368_v52, 4  ;;  %v1445_v12 = vmul.f32 32.0, %v2023_v10  ;;  %1594 = vmatpush.bf16.msra.mxu3 %v1925_v45  ;;  %v1923_v47 = vld [vmem:[%s2240_s13 + $0x20] sm:$0xff]  ;;  %v1922_v48 = vld [vmem:[%s2240_s13 + $0x18] sm:$0xff] }
 0x3f0   : > { %v1370_v51 = vsel %vm704_vm2, %v1369_v49, %v1350_v37  ;;  %vm1449_vm7 = vweird.f32 %v2023_v10  ;;  %v2000_v37 = vld [vmem:[%s2586_s14] ss:$0 sm:$0xff]  ;;  %v1921_v49 = vld [vmem:[%s2240_s13 + $0x10] sm:$0xff] }
 0x3f1   : > { %v1385_v8 = vrot.slane %v1380_v50, 4  ;;  %v1376_v21 = vperm.slane %v1370_v51, %v2270_v41  ;;  %v1383_v53 = vrot.slane %v1364_v2, 4  ;;  %v1388_v16 = vsel %vm704_vm2, %v1380_v50, %v1387_v58  ;;  %v1916_v41 = vld [vmem:[%s2584_s23 + $0x8] sm:$0xff]  ;;  %v2002_v51 = vld [vmem:[%s627_s18] ss:$0 sm:$0xff] }
 0x3f2   : > { %1431 = vmatpush.bf16.msra.mxu1 %v1916_v41  ;;  %v1446_v13 = vsub.f32 1.0, %v1445_v12  ;;  %v1920_v50 = vld [vmem:[%s2240_s13 + $0x8] sm:$0xff] }
 0x3f3   : > { %v1386_v54 = vsel %vm704_vm2, %v1385_v8, %v1368_v52  ;;  %v1381_v55 = vrot.slane %v1376_v21, 4  ;;  %v1384_v56 = vsel %vm704_vm2, %v1376_v21, %v1383_v53  ;;  %1595 = vmatpush.bf16.msra.mxu3 %v1924_v46 }
 0x3f4   : > { %1394 = vrot.lane.b32.xlu1 %v1386_v54, %s2077_s24  ;;  %1390 = vrot.lane.b32.xlu2 %v1384_v56, %s2078_s28  ;;  %v1447_v15 = vmul.f32 %v2023_v10, %v1446_v13  ;;  %s2589_s24 = scalar_lea.vmem %s2553_s8, %s2185_s15 }
 0x3f5   : > { %v1382_v57 = vsel %vm704_vm2, %v1381_v55, %v1364_v2  ;;  %v1919_v2 = vld [vmem:[%s2240_s13] sm:$0xff] }
 0x3f6   : > { %1432 = vmatpush.bf16.msra.mxu1 %v1915_v59  ;;  %v1448_v17 = vadd.f32 %v2023_v10, %v1447_v15 }
 0x3f7   : > { %1596 = vmatpush.bf16.msra.mxu3 %v1923_v47 }
 0x3f8   : > { %v2478_v18 = vsel %vm1449_vm7, %v2023_v10, %v1448_v17 }
 0x3fb   : > { %1597 = vmatpush.bf16.msra.mxu3 %v1922_v48 }
 0x3fc   : > { %1398 = vrot.lane.b32.xlu2 %v1388_v16, %s2079_s26 }
 0x3ff   : > { %1598 = vmatpush.bf16.msra.mxu3 %v1921_v49 }
 0x403   : > { %1599 = vmatpush.bf16.msra.mxu3 %v1920_v50 }
 0x407   : > { %1600 = vmatpush.bf16.msra.mxu3 %v1919_v2 }
 0x44e   : > { %v1391_v60 = vpop.permute.xlu2 %1390 }
 0x44f   : > { %v1401_v61 = vsel %vm1073_vm3, %v1382_v57, %v1391_v60 }
 0x456   : > { %v1399_v32 = vpop.permute.xlu2 %1398 }
 0x466   : > { %v1395_v62 = vpop.permute.xlu1 %1394 }
 0x467   : > { %v1403_v63 = vsel %vm1402_vm5, %v1401_v61, %v1395_v62  ;;  %v2003_v61 = vld [vmem:[%s635_s22] ss:$0 sm:$0xff] }
 0x468   : > { %v1405_v0 = vsel %vm1404_vm6, %v1403_v63, %v1399_v32 }
 0x469   : > { %v1406_v1 = vpack.c.bf16 %v1405_v0, %v1405_v0 }
 0x46b   : > { %1865 = vmatmul.msk.bf16.vlgmr.msra.gmra.mxu1 %vm675_vm1, %v1406_v1 }
 0x4e8   : > { %v1434_v5 = vpop.f32.mrf.mxu1 }
 0x4e9   : > { %v1435_v6 = vadd.f32 %v1999_v4, %v1434_v5 }
 0x4eb   : > { %v1438_v7 = vadd.f32 %v1435_v6, %v2250_v3 }
 0x4ed   : > { %v1441_v14 = vsel %vm675_vm1, %v1438_v7, 0.0 }
 0x4ee   : > { %1442 = vadd.xlane.f32.xlu2 %v1441_v14 }
 0x4f0   : > { %v1436_v11 = vpop.f32.mrf.mxu1 }
 0x561   : > { %v1443_v19 = vpop.xlane.xlu2 %1442 }
 0x562   : > { %v1451_v3 = vmul.f32 %v2478_v18, %v1443_v19 }
 0x564   : > { %v1452_v20 = vsub.f32 %v1438_v7, %v1451_v3 }
 0x566   : > { %v1453_v22 = vmul.f32 %v1452_v20, %v1452_v20 }
 0x568   : > { %v1454_v23 = vsel %vm675_vm1, %v1453_v22, 0.0 }
 0x569   : > { %1455 = vadd.xlane.f32.xlu1 %v1454_v23 }
 0x5dc   : > { %v1456_v27 = vpop.xlane.xlu1 %1455 }
 0x5dd   : > { %v1457_v28 = vmul.f32 %v1456_v27, %v2478_v18 }
 0x5df   : > { %v1458_v29 = vadd.f32 1e-05, %v1457_v28 }
 0x5e1   : > { %2024 = vrsqrt.f32 %v1458_v29  ;;  %vm1465_vm9 = vweird.f32 %v1458_v29 }
 0x5e7   : > { %v2025_v30 = vpop.eup %2024 }
 0x5e8   : > { %v1460_v31 = vmul.f32 %v2025_v30, %v1458_v29  ;;  %vm1466_vm8 = vweird.f32 %v2025_v30 }
 0x5e9   : > { %vm1467_vm10 = vmor %vm1465_vm9, %vm1466_vm8 }
 0x5ea   : > { %v1461_v33 = vmul.f32 %v2025_v30, %v1460_v31 }
 0x5ec   : > { %v1462_v34 = vmul.f32 0.5, %v1461_v33 }
 0x5ee   : > { %v1463_v35 = vsub.f32 1.5, %v1462_v34 }
 0x5f0   : > { %v1464_v36 = vmul.f32 %v2025_v30, %v1463_v35 }
 0x5f2   : > { %v1468_v38 = vsel %vm1467_vm10, %v2025_v30, %v1464_v36 }
 0x5f3   : > { %v1469_v40 = vmul.f32 %v1468_v38, %v1452_v20  ;;  %v2004_v20 = vld [vmem:[%s2588_s20] ss:$0 sm:$0xff] }
 0x5f5   : > { %v1473_v42 = vmul.f32 %v2000_v37, %v1469_v40 }
 0x5f7   : > { %v1477_v43 = vadd.f32 %v2001_v39, %v1473_v42 }
 0x5f9   : > { %v1500_v44 = vpack.c.bf16 %v1477_v43, %v1477_v43 }
 0x5fb   : > { %1874 = vmatmul.msk.bf16.vlgmr.msra.gmra.mxu2 %vm675_vm1, %v1500_v44 }
 0x67e   : > { %v1528_v52 = vpop.f32.mrf.mxu2 }
 0x67f   : > { %v1529_v8 = vadd.f32 %v2002_v51, %v1528_v52 }
 0x681   : > { %v1532_v21 = vmul.f32 %v1529_v8, %v1529_v8 }
 0x683   : > { %v1533_v53 = vmul.f32 %v1532_v21, %v1529_v8 }
 0x685   : > { %v1534_v54 = vmul.f32 0.044715, %v1533_v53 }
 0x686   : > { %v1530_v55 = vpop.f32.mrf.mxu2 }
 0x687   : > { %v1535_v56 = vadd.f32 %v1534_v54, %v1529_v8 }
 0x689   : > { %v1536_v57 = vmul.f32 0.7978846, %v1535_v56 }
 0x68b   : > { %2026 = vtanh.f32 %v1536_v57 }
 0x691   : > { %v2027_v58 = vpop.eup %2026 }
 0x692   : > { %v1538_v16 = vadd.f32 1.0, %v2027_v58 }
 0x694   : > { %v1539_v41 = vmul.f32 0.5, %v1538_v16 }
 0x696   : > { %v1540_v59 = vmul.f32 %v1539_v41, %v1529_v8 }
 0x698   : > { %v1541_v60 = vpack.c.bf16 %v1540_v59, %v1540_v59 }
 0x69a   : > { %1601 = vmatmul.bf16.vlgmr.msra.gmra.mxu3 %v1541_v60 }
 0x71d   : > { %v1602_v62 = vpop.f32.mrf.mxu3 }
 0x71e   : > { %v1603_v32 = vadd.f32 %v2003_v61, %v1602_v62 }
 0x720   : > { %v1606_v63 = vadd.f32 %v1603_v32, %v1477_v43 }
 0x722   : > { %v1609_v0 = vsel %vm675_vm1, %v1606_v63, 0.0 }
 0x723   : > { %1610 = vadd.xlane.f32.xlu0 %v1609_v0 }
 0x725   : > { %v1604_v1 = vpop.f32.mrf.mxu3 }
 0x796   : > { %v1611_v4 = vpop.xlane.xlu0 %1610 }
 0x797   : > { %v1612_v5 = vmul.f32 %v1611_v4, %v2478_v18 }
 0x799   : > { %v1613_v6 = vsub.f32 %v1606_v63, %v1612_v5 }
 0x79b   : > { %v1614_v7 = vmul.f32 %v1613_v6, %v1613_v6 }
 0x79d   : > { %v1615_v14 = vsel %vm675_vm1, %v1614_v7, 0.0 }
 0x79e   : > { %1616 = vadd.xlane.f32.xlu0 %v1615_v14 }
 0x811   : > { %v1617_v11 = vpop.xlane.xlu0 %1616 }
 0x812   : > { %v1618_v9 = vmul.f32 %v1617_v11, %v2478_v18  ;;  %v2005_v18 = vld [vmem:[%s2589_s24] ss:$0 sm:$0xff] }
 0x814   : > { %v1619_v10 = vadd.f32 1e-05, %v1618_v9 }
 0x816   : > { %2028 = vrsqrt.f32 %v1619_v10  ;;  %vm1626_vm12 = vweird.f32 %v1619_v10 }
 0x81c   : > { %v2029_v12 = vpop.eup %2028 }
 0x81d   : > { %v1621_v13 = vmul.f32 %v2029_v12, %v1619_v10  ;;  %vm1627_vm11 = vweird.f32 %v2029_v12 }
 0x81e   : > { %vm1628_vm13 = vmor %vm1626_vm12, %vm1627_vm11 }
 0x81f   : > { %v1622_v15 = vmul.f32 %v2029_v12, %v1621_v13 }
 0x821   : > { %v1623_v17 = vmul.f32 0.5, %v1622_v15 }
 0x823   : > { %v1624_v19 = vsub.f32 1.5, %v1623_v17 }
 0x825   : > { %v1625_v3 = vmul.f32 %v2029_v12, %v1624_v19 }
 0x827   : > { %v1629_v22 = vsel %vm1628_vm13, %v2029_v12, %v1625_v3 }
 0x828   : > { %v1630_v23 = vmul.f32 %v1629_v22, %v1613_v6 }
 0x82a   : > { %v1634_v24 = vmul.f32 %v2004_v20, %v1630_v23 }
 0x82c   : > { %v1638_v25 = vadd.f32 %v2005_v18, %v1634_v24 }
 0x82e   : > { %1639 = vst.msk [vmem:[%s2245_s3] sm:$0xff] %vm675_vm1, %v1638_v25 }
 0x82f PF: > { %s2590_s28 = sld [smem:[#allocation5_spill]] }
 0x830   : > { %s2591_s25 = sld [smem:[#allocation3_spill]] }
 0x831   : > { %s2592_s26 = sld [smem:[#allocation4_spill]] }
 0x832   : > { %s2593_s27 = sld [smem:[#allocation6_spill]] }
 0x835   : > { %s23_s29 = sadd.s32 1, %s2590_s28   ;;  %s2594_s28 = sld [smem:[#allocation7_spill]] }
 0x836   : > { %p20_p8 = scmp.ge.s32.totalorder %s23_s29, 6  }
 0x838   :  { %22 = sbr.rel (!%p20_p8) target bundleno = 7 (0x7), region = 142 }

// kernel: transformehr_forward.6
= control target key start
LH: loop header
LB: loop body
LE: loop exit
PB: predicated region body
PF: predicated region fallthrough
CT: control target
= control target key end

     0   :  { %s4539_s0 = inlined_call_operand.vmem [shape: f32[2,8,32], index: 0, kind: input, shape index: {}]   ;;  %s4540_s1 = inlined_call_operand.vmem [shape: f32[2,8,32], index: 1, kind: input, shape index: {}]   ;;  %s4541_s2 = inlined_call_operand.vmem [shape: bf16[2,32,96], index: 2, kind: input, shape index: {}]   ;;  %s4542_s3 = inlined_call_operand.vmem [shape: f32[2,1,96], index: 3, kind: input, shape index: {}]   ;;  %s4543_s4 = inlined_call_operand.vmem [shape: bf16[2,32,32], index: 4, kind: input, shape index: {}]   ;;  %s4544_s5 = inlined_call_operand.vmem [shape: f32[2,1,32], index: 5, kind: input, shape index: {}]   ;;  %s4545_s6 = inlined_call_operand.vmem [shape: bf16[2,32,32], index: 6, kind: input, shape index: {}]   ;;  %s4546_s7 = inlined_call_operand.vmem [shape: f32[2,1,32], index: 7, kind: input, shape index: {}]   ;;  %s4547_s8 = inlined_call_operand.vmem [shape: bf16[2,32,64], index: 8, kind: input, shape index: {}]   ;;  %s4548_s9 = inlined_call_operand.vmem [shape: f32[2,1,64], index: 9, kind: input, shape index: {}]   ;;  %s4549_s10 = inlined_call_operand.vmem [shape: bf16[2,32,32], index: 10, kind: input, shape index: {}]   ;;  %s4550_s11 = inlined_call_operand.vmem [shape: f32[2,1,32], index: 11, kind: input, shape index: {}]   ;;  %s4551_s12 = inlined_call_operand.vmem [shape: f32[2,1,1,32], index: 12, kind: input, shape index: {}]   ;;  %s4552_s13 = inlined_call_operand.vmem [shape: f32[2,1,1,32], index: 13, kind: input, shape index: {}]   ;;  %s4553_s14 = inlined_call_operand.vmem [shape: f32[2,1,1,32], index: 14, kind: input, shape index: {}]   ;;  %s4554_s15 = inlined_call_operand.vmem [shape: f32[2,1,1,32], index: 15, kind: input, shape index: {}]   ;;  %s4555_s16 = inlined_call_operand.vmem [shape: f32[2,1,1,32], index: 16, kind: input, shape index: {}]   ;;  %s4556_s17 = inlined_call_operand.vmem [shape: f32[2,1,1,32], index: 17, kind: input, shape index: {}]   ;;  %s4557_s18 = inlined_call_operand.vmem [shape: bf16[2,32,128], index: 18, kind: input, shape index: {}]   ;;  %s4558_s19 = inlined_call_operand.vmem [shape: f32[2,1,128], index: 19, kind: input, shape index: {}]   ;;  %s4559_s20 = inlined_call_operand.vmem [shape: bf16[2,128,32], index: 20, kind: input, shape index: {}]   ;;  %s4560_s21 = inlined_call_operand.vmem [shape: f32[2,1,32], index: 21, kind: input, shape index: {}]   ;;  %s4561_s22 = inlined_call_operand.hbm [shape: f32[2,8,32], index: 22, kind: output, shape index: {}]  }
   0x1   :  { %4578 = sst [smem:[#allocation20_spill]] %s4539_s0 }
   0x2   :  { %4579 = sst [smem:[#allocation21_spill]] %s4540_s1 }
   0x3   :  { %4580 = sst [smem:[#allocation22_spill]] %s4541_s2 }
   0x4   :  { %4581 = sst [smem:[#allocation23_spill]] %s4542_s3 }
   0x5   :  { %4582 = sst [smem:[#allocation24_spill]] %s4543_s4 }
   0x6   :  { %4583 = sst [smem:[#allocation25_spill]] %s4544_s5 }
   0x7   :  { %4584 = sst [smem:[#allocation26_spill]] %s4545_s6 }
   0x8   :  { %4585 = sst [smem:[#allocation27_spill]] %s4546_s7 }
   0x9   :  { %4586 = sst [smem:[#allocation28_spill]] %s4547_s8 }
   0xa   :  { %4587 = sst [smem:[#allocation29_spill]] %s4549_s10 }
   0xb   :  { %4588 = sst [smem:[#allocation30_spill]] %s4550_s11 }
   0xc   :  { %4589 = sst [smem:[#allocation31_spill]] %s4551_s12 }
   0xd   :  { %4590 = sst [smem:[#allocation32_spill]] %s4553_s14 }
   0xe   :  { %4591 = sst [smem:[#allocation33_spill]] %s4554_s15 }
   0xf   :  { %4592 = sst [smem:[#allocation34_spill]] %s4555_s16 }
  0x10   :  { %4593 = sst [smem:[#allocation35_spill]] %s4556_s17 }
  0x11   :  { %4594 = sst [smem:[#allocation36_spill]] %s4557_s18 }
  0x12   :  { %4595 = sst [smem:[#allocation37_spill]] %s4558_s19 }
  0x13   :  { %4596 = sst [smem:[#allocation38_spill]] %s4559_s20 }
  0x14   :  { %4597 = sst [smem:[#allocation39_spill]] %s4560_s21 }
  0x15   :  { %4598 = sst [smem:[#allocation40_spill]] %s4561_s22 }
  0x16   :  { %27 = vsyncpa [#allocation3], 0 }
  0x17   :  { %29 = vsyncpa [#allocation3 + $0x1], 0  ;;  %s3719_s3 = smov 0   ;;  %s3721_s28 = smov 0  }
  0x18   :  { %s3723_s29 = smov 0   ;;  %s3725_s30 = smov 0  }
  0x19   :  { %s3727_s4 = smov 0   ;;  %s3729_s0 = smov 0  }
  0x1a   :  { %s3731_s23 = smov 0   ;;  %s3733_s1 = smov 0  }
  0x1b LB: > { %4599 = sst [smem:[#allocation5_spill]] %s3563_s3  ;;  %s3174_s5 = sadd.s32 4294967295, %s3591_s1   ;;  %s3591_s1 = sphi %s3733_s1, %s35_s1   ;;  %s3587_s23 = sphi %s3731_s23, %s4673_s23   ;;  %s3583_s0 = sphi %s3729_s0, %s4672_s0   ;;  %s3579_s4 = sphi %s3727_s4, %s4671_s4   ;;  %s3575_s30 = sphi %s3725_s30, %s4670_s30   ;;  %s3571_s29 = sphi %s3723_s29, %s4669_s29   ;;  %s3567_s28 = sphi %s3721_s28, %s4668_s28   ;;  %s3563_s3 = sphi %s3719_s3, %s4667_s3  }
  0x1c   : > { %4600 = sst [smem:[#allocation6_spill]] %s3567_s28  ;;  %s3175_s24 = sadd.s32 4294967294, %s3591_s1  }
  0x1d   : > { %4601 = sst [smem:[#allocation7_spill]] %s3571_s29  ;;  %s44_s6 = sadd.s32 1, %s3583_s0 }
  0x1e   : > { %4602 = sst [smem:[#allocation8_spill]] %s3575_s30  ;;  %p45_p0 = scmp.ge.s32.totalorder %s44_s6, 2 }
  0x1f   : > { %4603 = sst [smem:[#allocation9_spill]] %s3579_s4  ;;  %s47_s25 = sadd.s32 1, %s3587_s23 }
  0x20   : > { %4604 = sst [smem:[#allocation10_spill]] %s3583_s0  ;;  %p636_p1 = scmp.ne.s32.totalorder %s3571_s29, %s3567_s28 }
  0x21   : > { %4605 = sst [smem:[#allocation11_spill]] %s3587_s23  ;;  %p637_p2 = scmp.eq.s32.totalorder %s3174_s5, 3 }
  0x22   : > { %4606 = sst [smem:[#allocation12_spill]] %s3591_s1  ;;  %s4675_s6 = smov (%p45_p0, %s44_s6), 0 }
  0x23   : > { %4607 = sst [smem:[#allocation13_spill]] %s4675_s6  ;;  %s4677_s25 = smov (!%p45_p0, %s47_s25), %s3587_s23 }
  0x24   : > { %p3768_p3 = por %p637_p2, %p636_p1  ;;  %p642_p4 = scmp.ne.s32.totalorder %s3567_s28, %s3563_s3 }
  0x25   : > { %p49_p5 = scmp.ge.s32.totalorder %s4677_s25, 2  ;;  %p643_p6 = scmp.eq.s32.totalorder %s3175_s24, 3 }
  0x26   : > { %s4608_s26 = scalar_select %p3768_p3, 1, 0 }
  0x27   : > { %p3178_p7 = scmp.ge.s32.totalorder %s3591_s1, 1  ;;  %p809_p8 = scmp.lt.s32.totalorder %s3591_s1, 5 }
  0x28   : > { %4609 = sst [smem:[#allocation14_spill]] %s4608_s26  ;;  %s4679_s25 = smov (%p49_p5, %s4677_s25), 0 }
  0x29   : > { %4610 = sst [smem:[#allocation15_spill]] %s4679_s25  ;;  %p3778_p9 = por %p643_p6, %p642_p4 }
  0x2a   : > { %p810_p10 = pnand %p3178_p7, %p809_p8  ;;  %s623_s27 = ssub.s32 %s3587_s23, %s4679_s25 }
  0x2b   : > { %s4611_s2 = scalar_select %p3778_p9, 1, 0 }
  0x2c   : > { %s626_s5 = sadd.s32 1, %s3571_s29  ;;  %p624_p11 = scmp.eq.s32.totalorder %s623_s27, 0 }
  0x2d   : > { %4612 = sst [smem:[#allocation16_spill]] %s4611_s2  ;;  %813 = sbr.rel (%p810_p10) target bundleno = 3494 (0xda6), region = 108 }
  0x2e   : > { %s3786_s6 = scalar_select %p624_p11, %s3571_s29, %s626_s5  }
  0x30   : > { %4613 = sst [smem:[#allocation17_spill]] %s3786_s6 }
  0x32   : > { %s4567_s24 = sand.u32 1, %s3567_s28   ;;  %p948_p12 = scmp.lt.s32.totalorder %s3579_s4, 1 }
  0x33   : > { %s3792_s0 = sshll.u32 %s4567_s24, 3  ;;  %p956_p13 = scmp.lt.s32.totalorder %s3575_s30, 1 }
  0x34   : > { %s949_s2 = scalar_select %p948_p12, %s3579_s4, 1 }
  0x35   : > { %s3797_s3 = scalar_select %p956_p13, %s3575_s30, 1 }
  0x36   : > { %s3180_s27 = sshll.u32 %s949_s2, 3  ;;  %s4614_s23 = sld [smem:[#allocation20_spill]] }
  0x37   : > { %s4615_s1 = sld [smem:[#allocation21_spill]]  ;;  %s3303_s22 = sshll.u32 %s3797_s3, 4 }
  0x38   : > { %s4618_s19 = sld [smem:[#allocation22_spill]]  ;;  %s3309_s14 = sshll.u32 %s3797_s3, 6 }
  0x39   : > { %s4621_s28 = sld [smem:[#allocation26_spill]]  ;;  %s3895_s21 = scalar_lea.vmem [#allocation2], %s3792_s0 }
  0x3a   : > { %s4623_s8 = sld [smem:[#allocation28_spill]] }
  0x3b   : > { %s4624_s10 = sld [smem:[#allocation29_spill]] }
  0x3c   : > { %s951_s6 = scalar_lea.vmem %s4614_s23, %s3180_s27  ;;  %s4619_s23 = sld [smem:[#allocation24_spill]] }
  0x3d   : > { %s3805_s26 = scalar_lea.vmem %s4615_s1, %s3180_s27  ;;  %s4632_s27 = sld [smem:[#allocation36_spill]] }
  0x3e   : > { %4616 = sst [smem:[#allocation18_spill]] %s3805_s26  ;;  %s960_s18 = scalar_lea.vmem %s4618_s19, %s3303_s22 }
  0x3f   : > { %s3827_s4 = scalar_lea.vmem %s4621_s28, %s3303_s22  ;;  %s4630_s26 = sld [smem:[#allocation34_spill]] }
  0x40   : > { %s3836_s25 = scalar_lea.vmem %s4623_s8, %s3303_s22  ;;  %s4631_s19 = sld [smem:[#allocation35_spill]] }
  0x41   : > { %s3845_s16 = scalar_lea.vmem %s4624_s10, %s3303_s22  ;;  %s4633_s5 = sld [smem:[#allocation37_spill]] }
  0x42   : > { %s3818_s17 = scalar_lea.vmem %s4619_s23, %s3303_s22  ;;  %4625 = sst [smem:[#allocation19_spill]] %s3845_s16 }
  0x43   : > { %s3878_s2 = scalar_lea.vmem %s4632_s27, %s3303_s22  ;;  %s4634_s24 = sld [smem:[#allocation38_spill]] }
  0x45   : > { %s1010_s28 = scalar_lea.vmem %s4630_s26, %s3797_s3  ;;  %s4635_s26 = sld [smem:[#allocation39_spill]] }
  0x46   : > { %s1013_s30 = scalar_lea.vmem %s4631_s19, %s3797_s3  ;;  %s4636_s19 = sld [smem:[#allocation8_spill]] }
  0x47   : > { %s1021_s23 = scalar_lea.vmem %s4633_s5, %s3797_s3 }
  0x49   : > { %s3888_s15 = scalar_lea.vmem %s4634_s24, %s3309_s14 }
  0x4b   : > { %s1029_s11 = scalar_lea.vmem %s4635_s26, %s3797_s3 }
  0x4c   : > { %p3196_p0 = scmp.ne.s32.totalorder %s4636_s19, 0 }
  0x4e   : > { %1034 = sbr.rel (%p3196_p0) target bundleno = 85 (0x55), region = 112 }
  0x53   : > { %v1035_v0 = vld [vmem:[%s951_s6] sm:$0xff]  ;;  %vm1036_vm0 = vcmask 261120  }
  0x54   : > { %1037 = vst.msk [vmem:[%s3895_s21] sm:$0xff] %vm1036_vm0, %v1035_v0 }
  0x55 PF: > { %v3311_v1 = vld [vmem:[%s960_s18 + $0x8] sm:$0xff]  ;;  %v3310_v2 = vld [vmem:[%s960_s18] sm:$0xff]  ;;  %vm1066_vm1 = vcmask 261120   ;;  %s4637_s14 = sld [smem:[#allocation23_spill]]  ;;  %s3593_s0 = smov 120   ;;  %vm1095_vm2 = vcmask 1047556  }
  0x56   : > { %1076 = vmatpush.bf16.msra.mxu0 %v3311_v1  ;;  %s3594_s18 = smov 112   ;;  %s3595_s6 = smov 104   ;;  %v3597_v19 = vmov 1983009808   ;;  %v3598_v30 = vmov 1934713408  }
  0x57   : > { %s3596_s20 = smov 96   ;;  %v1100_v20 = vunpack.c.l.s4 %v3597_v19  ;;  %v1124_v31 = vunpack.c.l.s4 %v3598_v30  ;;  %vm1464_vm3 = vcmask 64512   ;;  %s3599_s24 = smov 64   ;;  %vm1596_vm4 = vcmask 1043456  }
  0x58   : > { %s3600_s27 = smov 16   ;;  %s3601_s7 = smov 8   ;;  %vm1793_vm5 = vcmask 130048   ;;  %vm1795_vm6 = vcmask 195584  }
  0x59   : > { %v3936_v24 = vunpack.c.0.s8 %v1100_v20  ;;  %v3944_v42 = vunpack.c.0.s8 %v1124_v31  ;;  %s3602_s5 = smov 24   ;;  %s4639_s29 = sld [smem:[#allocation18_spill]] }
  0x5a   : > { %1077 = vmatpush.bf16.msra.mxu0 %v3310_v2  ;;  %s4640_s10 = sld [smem:[#allocation25_spill]]  ;;  %s4642_s19 = scalar_lea.vmem %s4548_s9, %s3797_s3 }
  0x5b   : > { %v3900_v3 = vld [vmem:[%s3895_s21] sm:$0xff]  ;;  %s4638_s22 = scalar_lea.vmem %s4637_s14, %s3797_s3  ;;  %s4643_s12 = sld [smem:[#allocation31_spill]] }
  0x5c   : > { %v1050_v4 = vpack.c.bf16 %v3900_v3, %v3900_v3  ;;  %v3442_v5 = vld [vmem:[%s4638_s22] ss:$0 sm:$0xff] }
  0x5e   : > { %3205 = vmatmul.msk.bf16.vlgmr.msra.gmra.mxu0 %vm1066_vm1, %v1050_v4 }
  0x60   : > { %s4641_s16 = scalar_lea.vmem %s4640_s10, %s3797_s3  ;;  %s4646_s10 = sld [smem:[#allocation27_spill]] }
  0x61   : > { %s4644_s14 = scalar_lea.vmem %s4643_s12, %s3797_s3 }
  0xdb   : > { %v1079_v6 = vpop.f32.mrf.mxu0 }
  0xdc   : > { %v3910_v7 = vadd.f32 %v3442_v5, %v1079_v6 }
  0xde   : > { %1206 = vrot.lane.b32.xlu1 %v3910_v7, %s3593_s0  ;;  %1208 = vrot.lane.b32.xlu0 %v3910_v7, %s3594_s18  ;;  %v1083_v9 = vmul.f32 0.35355338, %v3910_v7 }
  0xe0   : > { %v1097_v35 = vrot.slane %v1083_v9, 4 }
  0xe3   : > { %v1081_v8 = vpop.f32.mrf.mxu0 }
  0xe6   : > { %1210 = vrot.lane.b32.xlu0 %v3910_v7, %s3595_s6 }
  0xee   : > { %1091 = vrot.lane.b32.xlu0 %v1083_v9, %s3595_s6 }
 0x150   : > { %v3920_v10 = vpop.permute.xlu0 %1208  ;;  %v3925_v12 = vpop.permute.xlu1 %1206 }
 0x151   : > { %v3412_v11 = vpack.i.bf16 %v3910_v7, %v3920_v10 }
 0x153   : > { %3413 = vrot.lane.b32.xlu1 %v3412_v11, %s3596_s20 }
 0x158   : > { %v3927_v13 = vpop.permute.xlu0 %1210 }
 0x159   : > { %v3427_v14 = vpack.i.bf16 %v3927_v13, %v3920_v10  ;;  %v3417_v15 = vpack.i.bf16 %v3925_v12, %v3927_v13 }
 0x15b   : > { %3418 = vrot.lane.b32.xlu2 %v3417_v15, %s3596_s20  ;;  %1085 = vrot.lane.b32.xlu1 %v1083_v9, %s3593_s0 }
 0x160   : > { %v1092_v39 = vpop.permute.xlu0 %1091 }
 0x161   : > { %v1107_v49 = vrot.slane %v1092_v39, 4 }
 0x163   : > { %1088 = vrot.lane.b32.xlu2 %v1083_v9, %s3594_s18 }
 0x1b5   : > { %v3419_v16 = vpop.permute.xlu2 %3418 }
 0x1b6   : > { %v3420_v17 = vunpack.i.l.bf16 %v3419_v16  ;;  %v3421_v18 = vunpack.i.h.bf16 %v3419_v16 }
 0x1b8   : > { %v1236_v21 = vrot.slane %v3420_v17, 4  ;;  %v1238_v22 = vrot.slane %v3421_v18, 4 }
 0x1ba   : > { %v1237_v25 = vsel %vm1095_vm2, %v1236_v21, %v3421_v18  ;;  %v1239_v26 = vsel %vm1095_vm2, %v3420_v17, %v1238_v22 }
 0x1bb   : > { %v1243_v29 = vperm.slane %v1237_v25, %v3936_v24  ;;  %v1247_v34 = vperm.slane %v1239_v26, %v3936_v24 }
 0x1bd   : > { %v1089_v23 = vpop.permute.xlu2 %1088  ;;  %v1248_v41 = vrot.slane %v1243_v29, 4  ;;  %v1260_v45 = vrot.slane %v1247_v34, 4 }
 0x1be   : > { %v1094_v27 = vrot.slane %v1089_v23, 4  ;;  %v1098_v40 = vsel %vm1095_vm2, %v1089_v23, %v1097_v35 }
 0x1bf   : > { %v1106_v50 = vperm.slane %v1098_v40, %v3936_v24 }
 0x1c0   : > { %v1096_v36 = vsel %vm1095_vm2, %v1094_v27, %v1083_v9 }
 0x1c1   : > { %v1102_v46 = vperm.slane %v1096_v36, %v3936_v24  ;;  %v1133_v9 = vrot.slane %v1106_v50, 4 }
 0x1c3   : > { %v1121_v60 = vrot.slane %v1102_v46, 4 }
 0x1c5   : > { %v3414_v28 = vpop.permute.xlu1 %3413 }
 0x1c6   : > { %v3416_v32 = vunpack.i.h.bf16 %v3414_v28  ;;  %v3415_v33 = vunpack.i.l.bf16 %v3414_v28 }
 0x1c8   : > { %v1226_v37 = vrot.slane %v3416_v32, 4  ;;  %v1224_v38 = vrot.slane %v3415_v33, 4 }
 0x1ca   : > { %v1225_v43 = vsel %vm1095_vm2, %v1224_v38, %v3416_v32  ;;  %v1227_v44 = vsel %vm1095_vm2, %v3415_v33, %v1226_v37 }
 0x1cb   : > { %v1231_v47 = vperm.slane %v1225_v43, %v3936_v24  ;;  %v1235_v48 = vperm.slane %v1227_v44, %v3936_v24 }
 0x1cd   : > { %v1249_v51 = vsel %vm1095_vm2, %v1248_v41, %v1231_v47  ;;  %v1250_v52 = vrot.slane %v1231_v47, 4  ;;  %v1261_v53 = vsel %vm1095_vm2, %v1260_v45, %v1235_v48  ;;  %v1262_v54 = vrot.slane %v1235_v48, 4  ;;  %v1086_v55 = vpop.permute.xlu1 %1085 }
 0x1ce   : > { %v1255_v56 = vperm.slane %v1249_v51, %v3944_v42  ;;  %v1267_v57 = vperm.slane %v1261_v53, %v3944_v42  ;;  %v1108_v58 = vsel %vm1095_vm2, %v1107_v49, %v1086_v55  ;;  %v1109_v59 = vrot.slane %v1086_v55, 4 }
 0x1cf   : > { %v1251_v61 = vsel %vm1095_vm2, %v1243_v29, %v1250_v52  ;;  %v1263_v62 = vsel %vm1095_vm2, %v1247_v34, %v1262_v54  ;;  %v1114_v63 = vperm.slane %v1108_v58, %v3936_v24 }
 0x1d0   : > { %v1259_v0 = vperm.slane %v1251_v61, %v3944_v42  ;;  %v1271_v1 = vperm.slane %v1263_v62, %v3944_v42  ;;  %v1272_v2 = vrot.slane %v1255_v56, 4  ;;  %v1276_v4 = vrot.slane %v1267_v57, 4 }
 0x1d1   : > { %v1110_v5 = vsel %vm1095_vm2, %v1092_v39, %v1109_v59  ;;  %v1119_v6 = vrot.slane %v1114_v63, 4  ;;  %v1122_v8 = vsel %vm1095_vm2, %v1114_v63, %v1121_v60 }
 0x1d2   : > { %v1274_v11 = vrot.slane %v1259_v0, 4  ;;  %v1278_v15 = vrot.slane %v1271_v1, 4  ;;  %v1118_v16 = vperm.slane %v1110_v5, %v3936_v24  ;;  %v1273_v17 = vsel %vm1095_vm2, 0.0, %v1272_v2 }
 0x1d3   : > { %v1120_v18 = vsel %vm1095_vm2, %v1119_v6, %v1102_v46  ;;  %v1130_v19 = vperm.slane %v1122_v8, %v3944_v42  ;;  %v1277_v20 = vsel %vm1095_vm2, 0.0, %v1276_v4 }
 0x1d4   : > { %v1275_v21 = vsel %vm1095_vm2, 0.0, %v1274_v11  ;;  %v1279_v22 = vsel %vm1095_vm2, 0.0, %v1278_v15  ;;  %v1280_v23 = vsel %vm1095_vm2, %v1274_v11, %v1255_v56  ;;  %v1126_v25 = vperm.slane %v1120_v18, %v3944_v42 }
 0x1d5   : > { %v1285_v26 = vrot.slane %v1275_v21, 4  ;;  %v1296_v27 = vrot.slane %v1279_v22, 4  ;;  %v1131_v28 = vrot.slane %v1118_v16, 4  ;;  %v1134_v29 = vsel %vm1095_vm2, %v1118_v16, %v1133_v9 }
 0x1d6   : > { %v1142_v30 = vperm.slane %v1134_v29, %v3944_v42  ;;  %v1143_v31 = vrot.slane %v1126_v25, 4  ;;  %v1145_v32 = vrot.slane %v1130_v19, 4  ;;  %v1284_v33 = vperm.slane %v1280_v23, %v3936_v24 }
 0x1d7   : > { %v1132_v34 = vsel %vm1095_vm2, %v1131_v28, %v1106_v50  ;;  %v1286_v35 = vsel %vm1095_vm2, %v1285_v26, %v1273_v17  ;;  %v1291_v36 = vsel %vm1095_vm2, %v1278_v15, %v1267_v57  ;;  %v1297_v37 = vsel %vm1095_vm2, %v1296_v27, %v1277_v20 }
 0x1d8   : > { %v1138_v38 = vperm.slane %v1132_v34, %v3944_v42  ;;  %v1144_v39 = vsel %vm1095_vm2, 0.0, %v1143_v31  ;;  %v1146_v40 = vsel %vm1095_vm2, 0.0, %v1145_v32  ;;  %v1149_v41 = vrot.slane %v1142_v30, 4 }
 0x1d9   : > { %v1151_v43 = vsel %vm1095_vm2, %v1145_v32, %v1126_v25  ;;  %v1156_v44 = vrot.slane %v1146_v40, 4  ;;  %v1290_v45 = vperm.slane %v1286_v35, %v3936_v24  ;;  %v1295_v46 = vperm.slane %v1291_v36, %v3936_v24 }
 0x1da   : > { %v1147_v47 = vrot.slane %v1138_v38, 4  ;;  %v1150_v48 = vsel %vm1095_vm2, 0.0, %v1149_v41  ;;  %v1155_v49 = vperm.slane %v1151_v43, %v3936_v24  ;;  %v1162_v50 = vsel %vm1095_vm2, %v1149_v41, %v1138_v38 }
 0x1db   : > { %v1157_v51 = vsel %vm1095_vm2, %v1156_v44, %v1144_v39  ;;  %v1166_v52 = vperm.slane %v1162_v50, %v3936_v24  ;;  %v1167_v53 = vrot.slane %v1150_v48, 4  ;;  %v1301_v54 = vperm.slane %v1297_v37, %v3936_v24 }
 0x1dc   : > { %v1148_v55 = vsel %vm1095_vm2, 0.0, %v1147_v47  ;;  %v1161_v56 = vperm.slane %v1157_v51, %v3936_v24  ;;  %v1175_v57 = vrot.slane %v1155_v49, 4  ;;  %v1304_v58 = vrot.slane %v1284_v33, 4 }
 0x1dd   : > { %v1316_v59 = vrot.slane %v1295_v46, 4  ;;  %v1302_v60 = vrot.slane %v1290_v45, 4  ;;  %v1314_v61 = vrot.slane %v1301_v54, 4  ;;  %v1168_v62 = vsel %vm1095_vm2, %v1167_v53, %v1148_v55 }
 0x1de   : > { %v1305_v63 = vsel %vm1095_vm2, %v1290_v45, %v1304_v58  ;;  %v1172_v0 = vperm.slane %v1168_v62, %v3936_v24  ;;  %v1176_v1 = vsel %vm1095_vm2, %v1161_v56, %v1175_v57  ;;  %v1187_v2 = vrot.slane %v1166_v52, 4 }
 0x1df   : > { %v1313_v4 = vperm.slane %v1305_v63, %v3944_v42  ;;  %v1317_v5 = vsel %vm1095_vm2, %v1301_v54, %v1316_v59  ;;  %v1303_v6 = vsel %vm1095_vm2, %v1302_v60, %v1284_v33  ;;  %v1315_v8 = vsel %vm1095_vm2, %v1314_v61, %v1295_v46 }
 0x1e0   : > { %v1325_v9 = vperm.slane %v1317_v5, %v3944_v42  ;;  %v1309_v11 = vperm.slane %v1303_v6, %v3944_v42  ;;  %v1321_v15 = vperm.slane %v1315_v8, %v3944_v42  ;;  %v1184_v16 = vperm.slane %v1176_v1, %v3944_v42 }
 0x1e1   : > { %v1332_v17 = vrot.slane %v1313_v4, 4  ;;  %v1188_v18 = vsel %vm1095_vm2, %v1172_v0, %v1187_v2  ;;  %v1173_v19 = vrot.slane %v1161_v56, 4  ;;  %v1185_v20 = vrot.slane %v1172_v0, 4 }
 0x1e2   : > { %v1326_v21 = vrot.slane %v1321_v15, 4  ;;  %v1328_v22 = vrot.slane %v1309_v11, 4  ;;  %v1330_v23 = vrot.slane %v1325_v9, 4  ;;  %v1196_v26 = vperm.slane %v1188_v18, %v3944_v42 }
 0x1e3   : > { %v1333_v25 = vsel %vm1095_vm2, %v1325_v9, %v1332_v17  ;;  %v1174_v27 = vsel %vm1095_vm2, %v1173_v19, %v1155_v49  ;;  %v1186_v28 = vsel %vm1095_vm2, %v1185_v20, %v1166_v52  ;;  %v1203_v36 = vrot.slane %v1184_v16, 4 }
 0x1e4   : > { %v1463_v29 = vpack.c.bf16 %v1333_v25, %v1333_v25  ;;  %v1327_v30 = vsel %vm1095_vm2, %v1326_v21, %v1309_v11  ;;  %v1329_v31 = vsel %vm1095_vm2, %v1321_v15, %v1328_v22  ;;  %v1331_v32 = vsel %vm1095_vm2, %v1330_v23, %v1313_v4 }
 0x1e5   : > { %v1460_v33 = vpack.c.bf16 %v1327_v30, %v1327_v30  ;;  %v1461_v34 = vpack.c.bf16 %v1329_v31, %v1329_v31  ;;  %v1462_v35 = vpack.c.bf16 %v1331_v32, %v1331_v32  ;;  %v1180_v38 = vperm.slane %v1174_v27, %v3944_v42 }
 0x1e6   : > { %v1526_v37 = vsel %vm1464_vm3, %v1463_v29, 0  ;;  %v1192_v39 = vperm.slane %v1186_v28, %v3944_v42  ;;  %v1204_v46 = vsel %vm1095_vm2, %v1196_v26, %v1203_v36  ;;  %v1201_v52 = vrot.slane %v1196_v26, 4 }
 0x1e7   : > { %1535 = vmatpush.bf16.xpose.msrb.mxu0 %v1526_v37  ;;  %v1469_v40 = vsel %vm1464_vm3, %v1460_v33, 0  ;;  %v1488_v41 = vsel %vm1464_vm3, %v1461_v34, 0  ;;  %v1507_v43 = vsel %vm1464_vm3, %v1462_v35, 0  ;;  %v1199_v45 = vrot.slane %v1180_v38, 4 }
 0x1e8   : > { %1478 = vmatpush.bf16.xpose.msra.mxu1 %v1469_v40  ;;  %1497 = vmatpush.bf16.xpose.msra.mxu3 %v1488_v41  ;;  %v1197_v44 = vrot.slane %v1192_v39, 4  ;;  %v1459_v49 = vpack.c.bf16 %v1204_v46, %v1204_v46  ;;  %v1202_v53 = vsel %vm1095_vm2, %v1201_v52, %v1184_v16  ;;  %v3422_v4 = vpack.i.bf16 %v3925_v12, %v3910_v7 }
 0x1e9   : > { %v1200_v48 = vsel %vm1095_vm2, %v1192_v39, %v1199_v45  ;;  %v1458_v54 = vpack.c.bf16 %v1202_v53, %v1202_v53 }
 0x1ea   : > { %v1198_v47 = vsel %vm1095_vm2, %v1197_v44, %v1180_v38  ;;  %v1457_v51 = vpack.c.bf16 %v1200_v48, %v1200_v48 }
 0x1eb   : > { %v1456_v50 = vpack.c.bf16 %v1198_v47, %v1198_v47 }
 0x1ee   : > { %3209 = vmatmul.msk.bf16.vlgmr.msrb.gmra.mxu0 %vm1464_vm3, %v1459_v49 }
 0x1ef   : > { %3206 = vmatmul.msk.bf16.vlgmr.msra.gmra.mxu1 %vm1464_vm3, %v1456_v50  ;;  %3207 = vmatmul.msk.bf16.vlgmr.msra.gmra.mxu3 %vm1464_vm3, %v1457_v51 }
 0x1f0   : > { %1516 = vmatpush.bf16.xpose.msrb.mxu3 %v1507_v43 }
 0x1ff   : > { %3208 = vmatmul.msk.bf16.vlgmr.msrb.gmra.mxu3 %vm1464_vm3, %v1458_v54 }
 0x26b   : > { %v1537_v55 = vpop.f32.mrf.mxu0 }
 0x26c   : > { %v1550_v56 = vsel %vm1464_vm3, %v1537_v55, -inf  ;;  %v1480_v57 = vpop.f32.mrf.mxu1 }
 0x26d   : > { %1551 = vmax.xlane.f32.xlu2 %v1550_v56  ;;  %v1541_v58 = vsel %vm1464_vm3, %v1480_v57, -inf }
 0x26e   : > { %1542 = vmax.xlane.f32.xlu1 %v1541_v58 }
 0x272   : > { %v1499_v59 = vpop.f32.mrf.mxu3 }
 0x273   : > { %v1539_v60 = vpop.f32.mrf.mxu0  ;;  %v1544_v61 = vsel %vm1464_vm3, %v1499_v59, -inf }
 0x274   : > { %1545 = vmax.xlane.f32.xlu0 %v1544_v61  ;;  %v1482_v62 = vpop.f32.mrf.mxu1 }
 0x27a   : > { %v1501_v63 = vpop.f32.mrf.mxu3 }
 0x282   : > { %v1518_v0 = vpop.f32.mrf.mxu3 }
 0x283   : > { %v1547_v1 = vsel %vm1464_vm3, %v1518_v0, -inf }
 0x284   : > { %1548 = vmax.xlane.f32.xlu2 %v1547_v1 }
 0x288   : > { %3428 = vrot.lane.b32.xlu0 %v3427_v14, %s3599_s24 }
 0x28a   : > { %v1520_v2 = vpop.f32.mrf.mxu3 }
 0x29c   : > { %3423 = vrot.lane.b32.xlu2 %v3422_v4, %s3599_s24 }
 0x2e0   : > { %v1552_v5 = vpop.xlane.xlu2 %1551 }
 0x2e1   : > { %v1556_v6 = vsub.f32 %v1537_v55, %v1552_v5  ;;  %v1543_v12 = vpop.xlane.xlu1 %1542 }
 0x2e2   : > { %v1553_v18 = vsub.f32 %v1480_v57, %v1543_v12 }
 0x2e3   : > { %v1563_v8 = vmul.f32 1.442695, %v1556_v6 }
 0x2e4   : > { %v1557_v23 = vmul.f32 1.442695, %v1553_v18 }
 0x2e5   : > { %3455 = vpow2.f32 %v1563_v8 }
 0x2e7   : > { %v1546_v9 = vpop.xlane.xlu0 %1545 }
 0x2e8   : > { %v1554_v11 = vsub.f32 %v1499_v59, %v1546_v9 }
 0x2ea   : > { %v1559_v15 = vmul.f32 1.442695, %v1554_v11 }
 0x2eb   : > { %v4037_v16 = vpop.eup %3455 }
 0x2ec   : > { %3457 = vpow2.f32 %v1559_v15  ;;  %v1574_v17 = vsel %vm1464_vm3, %v4037_v16, 0.0 }
 0x2ed   : > { %1575 = vadd.xlane.f32.xlu0 %v1574_v17 }
 0x2f2   : > { %v4041_v10 = vpop.eup %3457 }
 0x2f3   : > { %v1568_v7 = vsel %vm1464_vm3, %v4041_v10, 0.0 }
 0x2f4   : > { %1569 = vadd.xlane.f32.xlu1 %v1568_v7 }
 0x2f7   : > { %v1549_v13 = vpop.xlane.xlu2 %1548 }
 0x2f8   : > { %v1555_v14 = vsub.f32 %v1518_v0, %v1549_v13 }
 0x2fa   : > { %v1561_v19 = vmul.f32 1.442695, %v1555_v14  ;;  %v3429_v20 = vpop.permute.xlu0 %3428 }
 0x2fb   : > { %v3431_v21 = vunpack.i.h.bf16 %v3429_v20  ;;  %v3430_v22 = vunpack.i.l.bf16 %v3429_v20 }
 0x2fc   : > { %3459 = vpow2.f32 %v1561_v19 }
 0x2fd   : > { %v1358_v26 = vrot.slane %v3431_v21, 4  ;;  %v1346_v27 = vrot.slane %v3430_v22, 4  ;;  %3461 = vpow2.f32 %v1557_v23 }
 0x2ff   : > { %v3424_v25 = vpop.permute.xlu2 %3423 }
 0x300   : > { %v3426_v28 = vunpack.i.h.bf16 %v3424_v25  ;;  %v3425_v29 = vunpack.i.l.bf16 %v3424_v25 }
 0x302   : > { %v4045_v30 = vpop.eup %3459  ;;  %v1359_v31 = vsel %vm1095_vm2, %v1358_v26, %v3426_v28  ;;  %v1360_v32 = vrot.slane %v3426_v28, 4  ;;  %v1347_v33 = vsel %vm1095_vm2, %v1346_v27, %v3425_v29  ;;  %v1348_v34 = vrot.slane %v3425_v29, 4 }
 0x303   : > { %v1365_v35 = vperm.slane %v1359_v31, %v3936_v24  ;;  %v1353_v36 = vperm.slane %v1347_v33, %v3936_v24  ;;  %v1571_v37 = vsel %vm1464_vm3, %v4045_v30, 0.0  ;;  %v4057_v45 = vpop.eup %3461 }
 0x304   : > { %v1361_v38 = vsel %vm1095_vm2, %v3431_v21, %v1360_v32  ;;  %v1349_v39 = vsel %vm1095_vm2, %v3430_v22, %v1348_v34  ;;  %1572 = vadd.xlane.f32.xlu1 %v1571_v37  ;;  %v1565_v58 = vsel %vm1464_vm3, %v4057_v45, 0.0 }
 0x305   : > { %v1369_v40 = vperm.slane %v1361_v38, %v3936_v24  ;;  %v1370_v41 = vrot.slane %v1365_v35, 4  ;;  %v1357_v43 = vperm.slane %v1349_v39, %v3936_v24  ;;  %v1372_v44 = vrot.slane %v1353_v36, 4 }
 0x307   : > { %v1382_v46 = vrot.slane %v1369_v40, 4  ;;  %v1371_v47 = vsel %vm1095_vm2, %v1370_v41, %v1353_v36  ;;  %v1373_v48 = vsel %vm1095_vm2, %v1365_v35, %v1372_v44  ;;  %v1384_v49 = vrot.slane %v1357_v43, 4 }
 0x308   : > { %v1377_v50 = vperm.slane %v1371_v47, %v3944_v42  ;;  %v1381_v51 = vperm.slane %v1373_v48, %v3944_v42 }
 0x309   : > { %v1383_v52 = vsel %vm1095_vm2, %v1382_v46, %v1357_v43  ;;  %v1385_v53 = vsel %vm1095_vm2, %v1369_v40, %v1384_v49 }
 0x30a   : > { %v1389_v54 = vperm.slane %v1383_v52, %v3944_v42  ;;  %v1393_v55 = vperm.slane %v1385_v53, %v3944_v42  ;;  %v1394_v56 = vrot.slane %v1377_v50, 4  ;;  %v1396_v57 = vrot.slane %v1381_v51, 4 }
 0x30c   : > { %v1397_v59 = vsel %vm1095_vm2, 0.0, %v1396_v57  ;;  %v1398_v60 = vrot.slane %v1389_v54, 4  ;;  %v1400_v61 = vrot.slane %v1393_v55, 4  ;;  %1566 = vadd.xlane.f32.xlu1 %v1565_v58  ;;  %v1402_v62 = vsel %vm1095_vm2, %v1396_v57, %v1377_v50 }
 0x30d   : > { %v1407_v63 = vrot.slane %v1397_v59, 4  ;;  %v1395_v0 = vsel %vm1095_vm2, 0.0, %v1394_v56  ;;  %v1406_v2 = vperm.slane %v1402_v62, %v3936_v24 }
 0x30e   : > { %v1401_v1 = vsel %vm1095_vm2, 0.0, %v1400_v61  ;;  %v1413_v4 = vsel %vm1095_vm2, %v1400_v61, %v1389_v54  ;;  %v1399_v9 = vsel %vm1095_vm2, 0.0, %v1398_v60 }
 0x30f   : > { %v1418_v5 = vrot.slane %v1401_v1, 4  ;;  %v1408_v6 = vsel %vm1095_vm2, %v1407_v63, %v1395_v0  ;;  %v1417_v8 = vperm.slane %v1413_v4, %v3936_v24  ;;  %v1426_v15 = vrot.slane %v1406_v2, 4 }
 0x310   : > { %v1412_v11 = vperm.slane %v1408_v6, %v3936_v24 }
 0x311   : > { %v1419_v17 = vsel %vm1095_vm2, %v1418_v5, %v1399_v9  ;;  %v1438_v7 = vrot.slane %v1417_v8, 4 }
 0x312   : > { %v1423_v12 = vperm.slane %v1419_v17, %v3936_v24  ;;  %v1427_v13 = vsel %vm1095_vm2, %v1412_v11, %v1426_v15  ;;  %v1424_v14 = vrot.slane %v1412_v11, 4 }
 0x313   : > { %v1435_v18 = vperm.slane %v1427_v13, %v3944_v42 }
 0x314   : > { %v1439_v19 = vsel %vm1095_vm2, %v1423_v12, %v1438_v7  ;;  %v1425_v20 = vsel %vm1095_vm2, %v1424_v14, %v1406_v2  ;;  %v1436_v21 = vrot.slane %v1423_v12, 4 }
 0x315   : > { %v1447_v22 = vperm.slane %v1439_v19, %v3944_v42  ;;  %v1454_v23 = vrot.slane %v1435_v18, 4  ;;  %v1431_v25 = vperm.slane %v1425_v20, %v3944_v42 }
 0x316   : > { %v1437_v26 = vsel %vm1095_vm2, %v1436_v21, %v1417_v8 }
 0x317   : > { %v1455_v27 = vsel %vm1095_vm2, %v1447_v22, %v1454_v23  ;;  %v1443_v28 = vperm.slane %v1437_v26, %v3944_v42  ;;  %v1450_v29 = vrot.slane %v1431_v25, 4  ;;  %v1452_v31 = vrot.slane %v1447_v22, 4 }
 0x318   : > { %v1592_v32 = vpack.c.bf16 %v1455_v27, %v1455_v27 }
 0x319   : > { %v1451_v33 = vsel %vm1095_vm2, %v1443_v28, %v1450_v29  ;;  %v1453_v34 = vsel %vm1095_vm2, %v1452_v31, %v1435_v18  ;;  %v1448_v35 = vrot.slane %v1443_v28, 4 }
 0x31a   : > { %v1655_v36 = vsel %vm1596_vm4, %v1592_v32, 0  ;;  %v1590_v37 = vpack.c.bf16 %v1451_v33, %v1451_v33  ;;  %v1591_v38 = vpack.c.bf16 %v1453_v34, %v1453_v34 }
 0x31b   : > { %1664 = vmatpush.bf16.msra.mxu0 %v1655_v36  ;;  %v1449_v39 = vsel %vm1095_vm2, %v1448_v35, %v1431_v25 }
 0x31c   : > { %v1617_v40 = vsel %vm1596_vm4, %v1590_v37, 0  ;;  %v1636_v41 = vsel %vm1596_vm4, %v1591_v38, 0  ;;  %v1589_v43 = vpack.c.bf16 %v1449_v39, %v1449_v39 }
 0x31d   : > { %1626 = vmatpush.bf16.msra.mxu2 %v1617_v40  ;;  %1645 = vmatpush.bf16.msra.mxu3 %v1636_v41 }
 0x31e   : > { %v1598_v44 = vsel %vm1596_vm4, %v1589_v43, 0 }
 0x31f   : > { %1607 = vmatpush.bf16.msrb.mxu1 %v1598_v44 }
 0x360   : > { %v1576_v46 = vpop.xlane.xlu0 %1575 }
 0x361   : > { %3463 = vrcp.f32 %v1576_v46 }
 0x367   : > { %v3464_v47 = vpop.eup %3463  ;;  %v1570_v48 = vpop.xlane.xlu1 %1569 }
 0x368   : > { %v1584_v49 = vmul.f32 %v3464_v47, %v4037_v16  ;;  %3465 = vrcp.f32 %v1570_v48 }
 0x36a   : > { %v1588_v50 = vpack.c.bf16 %v1584_v49, %v1584_v49 }
 0x36c   : > { %3213 = vmatmul.msk.bf16.vlgmr.msra.gmra.mxu0 %vm1464_vm3, %v1588_v50 }
 0x36e   : > { %v3466_v51 = vpop.eup %3465 }
 0x36f   : > { %v1582_v52 = vmul.f32 %v3466_v51, %v4041_v10 }
 0x371   : > { %v1586_v53 = vpack.c.bf16 %v1582_v52, %v1582_v52 }
 0x373   : > { %3211 = vmatmul.msk.bf16.vlgmr.msra.gmra.mxu2 %vm1464_vm3, %v1586_v53 }
 0x377   : > { %v1573_v54 = vpop.xlane.xlu1 %1572 }
 0x378   : > { %3467 = vrcp.f32 %v1573_v54 }
 0x37e   : > { %v3468_v55 = vpop.eup %3467 }
 0x37f   : > { %v1583_v56 = vmul.f32 %v3468_v55, %v4045_v30  ;;  %v1567_v57 = vpop.xlane.xlu1 %1566 }
 0x380   : > { %3469 = vrcp.f32 %v1567_v57 }
 0x381   : > { %v1587_v58 = vpack.c.bf16 %v1583_v56, %v1583_v56 }
 0x383   : > { %3212 = vmatmul.msk.bf16.vlgmr.msra.gmra.mxu3 %vm1464_vm3, %v1587_v58 }
 0x386   : > { %v3470_v16 = vpop.eup %3469 }
 0x387   : > { %v1581_v59 = vmul.f32 %v3470_v16, %v4057_v45 }
 0x389   : > { %v1585_v60 = vpack.c.bf16 %v1581_v59, %v1581_v59 }
 0x38b   : > { %3210 = vmatmul.msk.bf16.vlgmr.msrb.gmra.mxu1 %vm1464_vm3, %v1585_v60 }
 0x3e9   : > { %v1666_v10 = vpop.f32.mrf.mxu0 }
 0x3ea   : > { %v1682_v0 = vrot.slane %v1666_v10, 4 }
 0x3f1   : > { %v1668_v61 = vpop.f32.mrf.mxu0 }
 0x3f6   : > { %v1628_v62 = vpop.f32.mrf.mxu2 }
 0x3f7   : > { %v1684_v1 = vrot.slane %v1628_v62, 4  ;;  %v1683_v2 = vsel %vm1095_vm2, %v1682_v0, %v1628_v62 }
 0x3f8   : > { %v1689_v4 = vperm.slane %v1683_v2, %v3936_v24 }
 0x3f9   : > { %v1685_v30 = vsel %vm1095_vm2, %v1666_v10, %v1684_v1 }
 0x3fa   : > { %v1693_v8 = vperm.slane %v1685_v30, %v3936_v24  ;;  %v1694_v15 = vrot.slane %v1689_v4, 4 }
 0x3fc   : > { %v1706_v12 = vrot.slane %v1693_v8, 4 }
 0x3fe   : > { %v1630_v63 = vpop.f32.mrf.mxu2 }
 0x406   : > { %v1647_v5 = vpop.f32.mrf.mxu3 }
 0x407   : > { %v1670_v6 = vrot.slane %v1647_v5, 4 }
 0x408   : > { %v1609_v45 = vpop.f32.mrf.mxu1 }
 0x409   : > { %v1671_v9 = vsel %vm1095_vm2, %v1670_v6, %v1609_v45  ;;  %v1672_v11 = vrot.slane %v1609_v45, 4  ;;  %v3312_v6 = vld [vmem:[%s3818_s17] sm:$0xff] }
 0x40a   : > { %v1677_v17 = vperm.slane %v1671_v9, %v3936_v24 }
 0x40b   : > { %v1673_v7 = vsel %vm1095_vm2, %v1647_v5, %v1672_v11  ;;  %v3313_v5 = vld [vmem:[%s3818_s17 + $0x8] sm:$0xff]  ;;  %s4658_s17 = sld [smem:[#allocation6_spill]] }
 0x40c   : > { %v1681_v13 = vperm.slane %v1673_v7, %v3936_v24  ;;  %v1695_v14 = vsel %vm1095_vm2, %v1694_v15, %v1677_v17  ;;  %v1696_v18 = vrot.slane %v1677_v17, 4  ;;  %1822 = vmatpush.bf16.msra.mxu1 %v3313_v5 }
 0x40d   : > { %v1701_v19 = vperm.slane %v1695_v14, %v3944_v42 }
 0x40e   : > { %v1697_v20 = vsel %vm1095_vm2, %v1689_v4, %v1696_v18  ;;  %v1707_v21 = vsel %vm1095_vm2, %v1706_v12, %v1681_v13  ;;  %v1708_v22 = vrot.slane %v1681_v13, 4  ;;  %v1649_v23 = vpop.f32.mrf.mxu3  ;;  %v3317_v12 = vld [vmem:[%s3836_s25 + $0x8] sm:$0xff]  ;;  %v3443_v13 = vld [vmem:[%s4641_s16] ss:$0 sm:$0xff]  ;;  %s4647_s16 = scalar_lea.vmem %s4646_s10, %s3797_s3 }
 0x40f   : > { %v1705_v25 = vperm.slane %v1697_v20, %v3944_v42  ;;  %v1713_v26 = vperm.slane %v1707_v21, %v3944_v42  ;;  %v1718_v31 = vrot.slane %v1701_v19, 4  ;;  %1941 = vmatpush.bf16.msrb.mxu3 %v3317_v12  ;;  %v1039_v23 = vld [vmem:[%s4639_s29] sm:$0xff]  ;;  %s4645_s29 = scalar_lea.vmem %s4552_s13, %s3797_s3 }
 0x410   : > { %v1709_v27 = vsel %vm1095_vm2, %v1693_v8, %v1708_v22  ;;  %v1611_v28 = vpop.f32.mrf.mxu1  ;;  %1823 = vmatpush.bf16.msra.mxu1 %v3312_v6  ;;  %v3316_v22 = vld [vmem:[%s3836_s25] sm:$0xff] }
 0x411   : > { %v1717_v29 = vperm.slane %v1709_v27, %v3944_v42  ;;  %v1720_v32 = vrot.slane %v1705_v25, 4  ;;  %v1722_v34 = vrot.slane %v1713_v26, 4  ;;  %v1719_v39 = vsel %vm1095_vm2, 0.0, %v1718_v31 }
 0x412   : > { %v1916_v25 = vpack.c.bf16 %v1039_v23, %v1039_v23 }
 0x413   : > { %v1721_v33 = vsel %vm1095_vm2, 0.0, %v1720_v32  ;;  %v1724_v35 = vrot.slane %v1717_v29, 4  ;;  %v1726_v36 = vsel %vm1095_vm2, %v1720_v32, %v1701_v19  ;;  %v1723_v47 = vsel %vm1095_vm2, 0.0, %v1722_v34  ;;  %1942 = vmatpush.bf16.msrb.mxu3 %v3316_v22 }
 0x414   : > { %v1731_v37 = vrot.slane %v1721_v33, 4  ;;  %v1730_v38 = vperm.slane %v1726_v36, %v3936_v24 }
 0x415   : > { %v1725_v40 = vsel %vm1095_vm2, 0.0, %v1724_v35  ;;  %v1737_v41 = vsel %vm1095_vm2, %v1724_v35, %v1713_v26  ;;  %v3603_v26 = vmov 32.0  }
 0x416   : > { %v1742_v43 = vrot.slane %v1725_v40, 4  ;;  %v1732_v44 = vsel %vm1095_vm2, %v1731_v37, %v1719_v39  ;;  %v1741_v46 = vperm.slane %v1737_v41, %v3936_v24  ;;  %v1750_v49 = vrot.slane %v1730_v38, 4  ;;  %3240 = vmatmul.msk.bf16.vlgmr.msrb.gmra.mxu3 %vm1066_vm1, %v1916_v25  ;;  %v3315_v41 = vld [vmem:[%s3827_s4 + $0x8] sm:$0xff] }
 0x417   : > { %v1736_v48 = vperm.slane %v1732_v44, %v3936_v24  ;;  %3471 = vrcp.f32 %v3603_v26  ;;  %1909 = vmatpush.bf16.msrb.mxu2 %v3315_v41 }
 0x418   : > { %v1743_v50 = vsel %vm1095_vm2, %v1742_v43, %v1723_v47  ;;  %v1762_v51 = vrot.slane %v1741_v46, 4  ;;  %v3314_v43 = vld [vmem:[%s3827_s4] sm:$0xff]  ;;  %s4653_s4 = sld [smem:[#allocation33_spill]] }
 0x419   : > { %v1747_v52 = vperm.slane %v1743_v50, %v3936_v24  ;;  %v1748_v53 = vrot.slane %v1736_v48, 4  ;;  %v1751_v54 = vsel %vm1095_vm2, %v1736_v48, %v1750_v49 }
 0x41a   : > { %v1759_v60 = vperm.slane %v1751_v54, %v3944_v42 }
 0x41b   : > { %v1763_v55 = vsel %vm1095_vm2, %v1747_v52, %v1762_v51  ;;  %v1749_v56 = vsel %vm1095_vm2, %v1748_v53, %v1730_v38  ;;  %v1760_v57 = vrot.slane %v1747_v52, 4  ;;  %v3444_v38 = vld [vmem:[%s4642_s19] ss:$0 sm:$0xff]  ;;  %1910 = vmatpush.bf16.msrb.mxu2 %v3314_v43 }
 0x41c   : > { %v1771_v58 = vperm.slane %v1763_v55, %v3944_v42  ;;  %v1755_v16 = vperm.slane %v1749_v56, %v3944_v42  ;;  %v1778_v30 = vrot.slane %v1759_v60, 4  ;;  %v3445_v55 = vld [vmem:[%s4644_s14] ss:$0 sm:$0xff] }
 0x41d   : > { %v1761_v59 = vsel %vm1095_vm2, %v1760_v57, %v1741_v46  ;;  %v3472_v27 = vpop.eup %3471 }
 0x41e   : > { %v1776_v10 = vrot.slane %v1771_v58, 4  ;;  %v1767_v61 = vperm.slane %v1761_v59, %v3944_v42  ;;  %v1774_v62 = vrot.slane %v1755_v16, 4  ;;  %v1779_v4 = vsel %vm1095_vm2, %v1771_v58, %v1778_v30  ;;  %v3446_v58 = vld [vmem:[%s4645_s29] ss:$0 sm:$0xff]  ;;  %s4654_s8 = scalar_lea.vmem %s4653_s4, %s3797_s3  ;;  %s4657_s29 = sld [smem:[#allocation9_spill]] }
 0x41f   : > { %v1836_v28 = vmul.f32 32.0, %v3472_v27  ;;  %vm1840_vm7 = vweird.f32 %v3472_v27 }
 0x420   : > { %v1777_v63 = vsel %vm1095_vm2, %v1776_v10, %v1759_v60  ;;  %v1772_v0 = vrot.slane %v1767_v61, 4  ;;  %v1775_v1 = vsel %vm1095_vm2, %v1767_v61, %v1774_v62 }
 0x421   : > { %1785 = vrot.lane.b32.xlu1 %v1777_v63, %s3600_s27  ;;  %1781 = vrot.lane.b32.xlu2 %v1775_v1, %s3601_s7  ;;  %v1837_v29 = vsub.f32 1.0, %v1836_v28 }
 0x422   : > { %v1773_v2 = vsel %vm1095_vm2, %v1772_v0, %v1755_v16 }
 0x423   : > { %v1838_v31 = vmul.f32 %v3472_v27, %v1837_v29 }
 0x425   : > { %v1839_v32 = vadd.f32 %v3472_v27, %v1838_v31 }
 0x429   : > { %1789 = vrot.lane.b32.xlu2 %v1779_v4, %s3602_s5 }
 0x47b   : > { %v1782_v8 = vpop.permute.xlu2 %1781 }
 0x47c   : > { %v1792_v45 = vsel %vm1464_vm3, %v1773_v2, %v1782_v8 }
 0x483   : > { %v1790_v11 = vpop.permute.xlu2 %1789 }
 0x493   : > { %v1786_v9 = vpop.permute.xlu1 %1785 }
 0x494   : > { %v1794_v15 = vsel %vm1793_vm5, %v1792_v45, %v1786_v9 }
 0x495   : > { %v1796_v17 = vsel %vm1795_vm6, %v1794_v15, %v1790_v11 }
 0x496   : > { %v1797_v7 = vpack.c.bf16 %v1796_v17, %v1796_v17 }
 0x498   : > { %3222 = vmatmul.msk.bf16.vlgmr.msra.gmra.mxu1 %vm1066_vm1, %v1797_v7 }
 0x499   : > { %v1944_v39 = vpop.f32.mrf.mxu3 }
 0x49a   : > { %v4174_v40 = vadd.f32 %v3444_v38, %v1944_v39 }
 0x49c   : > { %2070 = vrot.lane.b32.xlu0 %v4174_v40, %s3593_s0  ;;  %v2081_v61 = vrot.slane %v4174_v40, 4 }
 0x4a1   : > { %v1946_v44 = vpop.f32.mrf.mxu3 }
 0x4a4   : > { %2076 = vrot.lane.b32.xlu0 %v4174_v40, %s3595_s6 }
 0x50e   : > { %v4204_v63 = vpop.permute.xlu0 %2070 }
 0x50f   : > { %v2093_v30 = vrot.slane %v4204_v63, 4 }
 0x515   : > { %v1825_v14 = vpop.f32.mrf.mxu1 }
 0x516   : > { %v1826_v18 = vadd.f32 %v3443_v13, %v1825_v14  ;;  %v4213_v6 = vpop.permute.xlu0 %2076 }
 0x517   : > { %v2091_v8 = vrot.slane %v4213_v6, 4  ;;  %v2094_v45 = vsel %vm1095_vm2, %v4213_v6, %v2093_v30 }
 0x518   : > { %v1829_v19 = vadd.f32 %v1826_v18, %v3900_v3  ;;  %v4165_v3 = vsel %vm1840_vm7, %v3472_v27, %v1839_v32  ;;  %v2102_v11 = vperm.slane %v2094_v45, %v3936_v24 }
 0x519   : > { %v2092_v15 = vsel %vm1095_vm2, %v2091_v8, %v4204_v63 }
 0x51a   : > { %v1832_v20 = vsel %vm1066_vm1, %v1829_v19, 0.0  ;;  %v2098_v17 = vperm.slane %v2092_v15, %v3936_v24  ;;  %v2115_v7 = vrot.slane %v2102_v11, 4 }
 0x51b   : > { %1833 = vadd.xlane.f32.xlu2 %v1832_v20 }
 0x51c   : > { %v2103_v14 = vrot.slane %v2098_v17, 4 }
 0x51d   : > { %v1827_v21 = vpop.f32.mrf.mxu1 }
 0x533   : > { %2073 = vrot.lane.b32.xlu2 %v4174_v40, %s3594_s18 }
 0x58e   : > { %v1834_v33 = vpop.xlane.xlu2 %1833 }
 0x58f   : > { %v1842_v34 = vmul.f32 %v4165_v3, %v1834_v33 }
 0x591   : > { %v1843_v35 = vsub.f32 %v1829_v19, %v1842_v34 }
 0x593   : > { %v1844_v36 = vmul.f32 %v1843_v35, %v1843_v35 }
 0x595   : > { %v1845_v37 = vsel %vm1066_vm1, %v1844_v36, 0.0 }
 0x596   : > { %1846 = vadd.xlane.f32.xlu1 %v1845_v37  ;;  %v4200_v10 = vpop.permute.xlu2 %2073 }
 0x597   : > { %v2079_v62 = vrot.slane %v4200_v10, 4  ;;  %v2082_v0 = vsel %vm1095_vm2, %v4200_v10, %v2081_v61 }
 0x598   : > { %v2090_v2 = vperm.slane %v2082_v0, %v3936_v24 }
 0x599   : > { %v2080_v1 = vsel %vm1095_vm2, %v2079_v62, %v4174_v40 }
 0x59a   : > { %v2086_v4 = vperm.slane %v2080_v1, %v3936_v24  ;;  %v2117_v5 = vrot.slane %v2090_v2, 4  ;;  %v2116_v19 = vsel %vm1095_vm2, %v2115_v7, %v2090_v2  ;;  %v3447_v7 = vld [vmem:[%s4647_s16] ss:$0 sm:$0xff] }
 0x59b   : > { %v2122_v21 = vperm.slane %v2116_v19, %v3944_v42 }
 0x59c   : > { %v2105_v9 = vrot.slane %v2086_v4, 4  ;;  %v2118_v12 = vsel %vm1095_vm2, %v2102_v11, %v2117_v5  ;;  %v2104_v23 = vsel %vm1095_vm2, %v2103_v14, %v2086_v4 }
 0x59d   : > { %v2126_v13 = vperm.slane %v2118_v12, %v3944_v42  ;;  %v2110_v25 = vperm.slane %v2104_v23, %v3944_v42  ;;  %v2131_v27 = vrot.slane %v2122_v21, 4 }
 0x59e   : > { %v2106_v18 = vsel %vm1095_vm2, %v2098_v17, %v2105_v9 }
 0x59f   : > { %v2114_v20 = vperm.slane %v2106_v18, %v3944_v42  ;;  %v2133_v22 = vrot.slane %v2126_v13, 4  ;;  %v2127_v32 = vrot.slane %v2110_v25, 4  ;;  %v2132_v34 = vsel %vm1095_vm2, 0.0, %v2131_v27 }
 0x5a1   : > { %v2129_v26 = vrot.slane %v2114_v20, 4  ;;  %v2134_v28 = vsel %vm1095_vm2, 0.0, %v2133_v22  ;;  %v2146_v29 = vsel %vm1095_vm2, %v2133_v22, %v2122_v21  ;;  %v2128_v37 = vsel %vm1095_vm2, 0.0, %v2127_v32 }
 0x5a2   : > { %v2151_v31 = vrot.slane %v2134_v28, 4  ;;  %v2150_v38 = vperm.slane %v2146_v29, %v3936_v24 }
 0x5a3   : > { %v2130_v33 = vsel %vm1095_vm2, 0.0, %v2129_v26 }
 0x5a4   : > { %v2152_v36 = vsel %vm1095_vm2, %v2151_v31, %v2132_v34 }
 0x5a5   : > { %v2156_v39 = vperm.slane %v2152_v36, %v3936_v24 }
 0x5a7   : > { %v2169_v44 = vrot.slane %v2156_v39, 4 }
 0x609   : > { %v1847_v46 = vpop.xlane.xlu1 %1846 }
 0x60a   : > { %v1848_v47 = vmul.f32 %v1847_v46, %v4165_v3  ;;  %v2135_v46 = vsel %vm1095_vm2, %v2129_v26, %v2110_v25 }
 0x60c   : > { %v1849_v48 = vadd.f32 1e-05, %v1848_v47  ;;  %v2139_v47 = vperm.slane %v2135_v46, %v3936_v24 }
 0x60e   : > { %3473 = vrsqrt.f32 %v1849_v48  ;;  %vm1856_vm9 = vweird.f32 %v1849_v48 }
 0x614   : > { %v3474_v49 = vpop.eup %3473 }
 0x615   : > { %v1851_v50 = vmul.f32 %v3474_v49, %v1849_v48  ;;  %vm1857_vm8 = vweird.f32 %v3474_v49 }
 0x616   : > { %vm1858_vm10 = vmor %vm1856_vm9, %vm1857_vm8 }
 0x617   : > { %v1852_v51 = vmul.f32 %v3474_v49, %v1851_v50  ;;  %v2171_v50 = vrot.slane %v2150_v38, 4 }
 0x619   : > { %v1853_v52 = vmul.f32 0.5, %v1852_v51 }
 0x61b   : > { %v1854_v53 = vsub.f32 1.5, %v1853_v52 }
 0x61d   : > { %v1855_v54 = vmul.f32 %v3474_v49, %v1854_v53  ;;  %v2159_v53 = vrot.slane %v2139_v47, 4 }
 0x61f   : > { %v1859_v56 = vsel %vm1858_vm10, %v3474_v49, %v1855_v54  ;;  %v2170_v49 = vsel %vm1095_vm2, %v2169_v44, %v2150_v38  ;;  %v2172_v54 = vsel %vm1095_vm2, %v2156_v39, %v2171_v50 }
 0x620   : > { %v1860_v57 = vmul.f32 %v1859_v56, %v1843_v35  ;;  %v2140_v35 = vrot.slane %v2130_v33, 4  ;;  %v2176_v51 = vperm.slane %v2170_v49, %v3944_v42 }
 0x622   : > { %v1864_v16 = vmul.f32 %v3445_v55, %v1860_v57  ;;  %v2141_v41 = vsel %vm1095_vm2, %v2140_v35, %v2128_v37  ;;  %v2181_v56 = vrot.slane %v2176_v51, 4  ;;  %v2180_v57 = vperm.slane %v2172_v54, %v3944_v42 }
 0x623   : > { %v2145_v43 = vperm.slane %v2141_v41, %v3936_v24 }
 0x624   : > { %v4195_v59 = vadd.f32 %v3446_v58, %v1864_v16  ;;  %v2185_v62 = vrot.slane %v2180_v57, 4 }
 0x625   : > { %v2157_v48 = vrot.slane %v2145_v43, 4  ;;  %v2160_v58 = vsel %vm1095_vm2, %v2145_v43, %v2159_v53 }
 0x626   : > { %v1884_v60 = vpack.c.bf16 %v4195_v59, %v4195_v59  ;;  %v2168_v61 = vperm.slane %v2160_v58, %v3944_v42 }
 0x627   : > { %v2158_v52 = vsel %vm1095_vm2, %v2157_v48, %v2139_v47 }
 0x628   : > { %3231 = vmatmul.msk.bf16.vlgmr.msrb.gmra.mxu2 %vm1066_vm1, %v1884_v60  ;;  %v2164_v55 = vperm.slane %v2158_v52, %v3944_v42  ;;  %v2186_v2 = vsel %vm1095_vm2, %v2185_v62, %v2168_v61  ;;  %v2187_v30 = vrot.slane %v2168_v61, 4 }
 0x629   : > { %v2317_v8 = vpack.c.bf16 %v2186_v2, %v2186_v2 }
 0x62a   : > { %v2182_v16 = vsel %vm1095_vm2, %v2181_v56, %v2164_v55  ;;  %v2183_v60 = vrot.slane %v2164_v55, 4  ;;  %v2188_v45 = vsel %vm1095_vm2, %v2180_v57, %v2187_v30 }
 0x62b   : > { %v2315_v0 = vpack.c.bf16 %v2182_v16, %v2182_v16  ;;  %v2361_v11 = vsel %vm1464_vm3, %v2317_v8, 0  ;;  %v2318_v15 = vpack.c.bf16 %v2188_v45, %v2188_v45 }
 0x62c   : > { %v2184_v1 = vsel %vm1095_vm2, %v2176_v51, %v2183_v60  ;;  %2370 = vmatpush.bf16.xpose.msra.mxu2 %v2361_v11 }
 0x62d   : > { %v2323_v4 = vsel %vm1464_vm3, %v2315_v0, 0  ;;  %v2316_v5 = vpack.c.bf16 %v2184_v1, %v2184_v1  ;;  %v2380_v17 = vsel %vm1464_vm3, %v2318_v15, 0 }
 0x62e   : > { %2332 = vmatpush.bf16.xpose.msrb.mxu0 %v2323_v4  ;;  %2389 = vmatpush.bf16.xpose.msra.mxu3 %v2380_v17 }
 0x62f   : > { %v2342_v9 = vsel %vm1464_vm3, %v2316_v5, 0 }
 0x630   : > { %2351 = vmatpush.bf16.xpose.msrb.mxu1 %v2342_v9 }
 0x6ab   : > { %v1912_v12 = vpop.f32.mrf.mxu2 }
 0x6ac   : > { %v1913_v13 = vadd.f32 %v3447_v7, %v1912_v12 }
 0x6ae   : > { %v1948_v14 = vmul.f32 0.35355338, %v1913_v13 }
 0x6b0   : > { %1953 = vrot.lane.b32.xlu1 %v1948_v14, %s3594_s18  ;;  %1950 = vrot.lane.b32.xlu0 %v1948_v14, %s3593_s0  ;;  %v1961_v22 = vrot.slane %v1948_v14, 4  ;;  %s4648_s0 = sld [smem:[#allocation19_spill]] }
 0x6b3   : > { %v1914_v18 = vpop.f32.mrf.mxu2 }
 0x6b8   : > { %1956 = vrot.lane.b32.xlu0 %v1948_v14, %s3595_s6  ;;  %s4660_s6 = sld [smem:[#allocation40_spill]] }
 0x722   : > { %v1954_v19 = vpop.permute.xlu1 %1953  ;;  %v1951_v20 = vpop.permute.xlu0 %1950 }
 0x723   : > { %v1959_v21 = vrot.slane %v1954_v19, 4  ;;  %v1962_v23 = vsel %vm1095_vm2, %v1954_v19, %v1961_v22  ;;  %v1973_v27 = vrot.slane %v1951_v20, 4 }
 0x724   : > { %v1970_v26 = vperm.slane %v1962_v23, %v3936_v24 }
 0x725   : > { %v1960_v25 = vsel %vm1095_vm2, %v1959_v21, %v1948_v14 }
 0x726   : > { %v1966_v28 = vperm.slane %v1960_v25, %v3936_v24  ;;  %v1997_v33 = vrot.slane %v1970_v26, 4 }
 0x728   : > { %v1985_v36 = vrot.slane %v1966_v28, 4 }
 0x72a   : > { %v1957_v29 = vpop.permute.xlu0 %1956 }
 0x72b   : > { %v1971_v31 = vrot.slane %v1957_v29, 4  ;;  %v1974_v32 = vsel %vm1095_vm2, %v1957_v29, %v1973_v27 }
 0x72c   : > { %v1982_v34 = vperm.slane %v1974_v32, %v3936_v24 }
 0x72d   : > { %v1972_v35 = vsel %vm1095_vm2, %v1971_v31, %v1951_v20 }
 0x72e   : > { %v1978_v37 = vperm.slane %v1972_v35, %v3936_v24  ;;  %v1995_v38 = vrot.slane %v1982_v34, 4  ;;  %v1998_v39 = vsel %vm1095_vm2, %v1982_v34, %v1997_v33 }
 0x72f   : > { %v2006_v41 = vperm.slane %v1998_v39, %v3944_v42 }
 0x730   : > { %v1983_v43 = vrot.slane %v1978_v37, 4  ;;  %v1986_v44 = vsel %vm1095_vm2, %v1978_v37, %v1985_v36  ;;  %v1996_v46 = vsel %vm1095_vm2, %v1995_v38, %v1970_v26 }
 0x731   : > { %v1994_v47 = vperm.slane %v1986_v44, %v3944_v42  ;;  %v2002_v48 = vperm.slane %v1996_v46, %v3944_v42  ;;  %v2013_v49 = vrot.slane %v2006_v41, 4 }
 0x732   : > { %v1984_v50 = vsel %vm1095_vm2, %v1983_v43, %v1966_v28 }
 0x733   : > { %v1990_v51 = vperm.slane %v1984_v50, %v3944_v42  ;;  %v2009_v52 = vrot.slane %v1994_v47, 4  ;;  %v2011_v53 = vrot.slane %v2002_v48, 4  ;;  %v2014_v54 = vsel %vm1095_vm2, 0.0, %v2013_v49 }
 0x734   : > { %v2026_v55 = vsel %vm1095_vm2, %v2013_v49, %v2002_v48  ;;  %v2031_v56 = vrot.slane %v2014_v54, 4  ;;  %v3432_v49 = vpack.i.bf16 %v4204_v63, %v4174_v40  ;;  %v3437_v50 = vpack.i.bf16 %v4213_v6, %v4200_v10 }
 0x735   : > { %v2007_v57 = vrot.slane %v1990_v51, 4  ;;  %v2010_v58 = vsel %vm1095_vm2, 0.0, %v2009_v52  ;;  %v2012_v16 = vsel %vm1095_vm2, 0.0, %v2011_v53  ;;  %v2015_v60 = vsel %vm1095_vm2, %v2009_v52, %v1990_v51 }
 0x736   : > { %v2019_v61 = vperm.slane %v2015_v60, %v3936_v24  ;;  %v2020_v62 = vrot.slane %v2010_v58, 4  ;;  %v2030_v0 = vperm.slane %v2026_v55, %v3936_v24  ;;  %v2032_v1 = vsel %vm1095_vm2, %v2031_v56, %v2012_v16 }
 0x737   : > { %v2008_v2 = vsel %vm1095_vm2, 0.0, %v2007_v57  ;;  %v2036_v30 = vperm.slane %v2032_v1, %v3936_v24 }
 0x738   : > { %v2021_v4 = vsel %vm1095_vm2, %v2020_v62, %v2008_v2  ;;  %v2039_v5 = vrot.slane %v2019_v61, 4  ;;  %v2051_v8 = vrot.slane %v2030_v0, 4 }
 0x739   : > { %v2025_v45 = vperm.slane %v2021_v4, %v3936_v24  ;;  %v2049_v9 = vrot.slane %v2036_v30, 4 }
 0x73a   : > { %v2052_v11 = vsel %vm1095_vm2, %v2036_v30, %v2051_v8 }
 0x73b   : > { %v2050_v15 = vsel %vm1095_vm2, %v2049_v9, %v2030_v0  ;;  %v2040_v17 = vsel %vm1095_vm2, %v2025_v45, %v2039_v5  ;;  %v2060_v7 = vperm.slane %v2052_v11, %v3944_v42  ;;  %v2037_v12 = vrot.slane %v2025_v45, 4 }
 0x73c   : > { %v2048_v13 = vperm.slane %v2040_v17, %v3944_v42  ;;  %v2056_v14 = vperm.slane %v2050_v15, %v3944_v42 }
 0x73d   : > { %v2065_v18 = vrot.slane %v2060_v7, 4  ;;  %v2038_v19 = vsel %vm1095_vm2, %v2037_v12, %v2019_v61 }
 0x73e   : > { %v2044_v20 = vperm.slane %v2038_v19, %v3944_v42  ;;  %v2061_v21 = vrot.slane %v2056_v14, 4  ;;  %v2067_v22 = vrot.slane %v2048_v13, 4 }
 0x73f   : > { %v2066_v23 = vsel %vm1095_vm2, %v2065_v18, %v2048_v13 }
 0x740   : > { %v2313_v25 = vpack.c.bf16 %v2066_v23, %v2066_v23  ;;  %v2062_v26 = vsel %vm1095_vm2, %v2061_v21, %v2044_v20  ;;  %v2068_v27 = vsel %vm1095_vm2, %v2060_v7, %v2067_v22  ;;  %v2063_v28 = vrot.slane %v2044_v20, 4 }
 0x741   : > { %v2311_v29 = vpack.c.bf16 %v2062_v26, %v2062_v26  ;;  %v2314_v31 = vpack.c.bf16 %v2068_v27, %v2068_v27 }
 0x742   : > { %3243 = vmatmul.msk.bf16.vlgmr.msra.gmra.mxu2 %vm1464_vm3, %v2313_v25  ;;  %v2064_v32 = vsel %vm1095_vm2, %v2056_v14, %v2063_v28 }
 0x743   : > { %3241 = vmatmul.msk.bf16.vlgmr.msrb.gmra.mxu0 %vm1464_vm3, %v2311_v29  ;;  %3244 = vmatmul.msk.bf16.vlgmr.msra.gmra.mxu3 %vm1464_vm3, %v2314_v31  ;;  %v2312_v33 = vpack.c.bf16 %v2064_v32, %v2064_v32 }
 0x745   : > { %3242 = vmatmul.msk.bf16.vlgmr.msrb.gmra.mxu1 %vm1464_vm3, %v2312_v33 }
 0x7c0   : > { %v2334_v34 = vpop.f32.mrf.mxu0 }
 0x7c1   : > { %v2395_v35 = vsel %vm1464_vm3, %v2334_v34, -inf }
 0x7c2   : > { %v2353_v36 = vpop.f32.mrf.mxu1  ;;  %2396 = vmax.xlane.f32.xlu1 %v2395_v35 }
 0x7c3   : > { %v2398_v37 = vsel %vm1464_vm3, %v2353_v36, -inf }
 0x7c4   : > { %2399 = vmax.xlane.f32.xlu2 %v2398_v37 }
 0x7c5   : > { %v2372_v38 = vpop.f32.mrf.mxu2 }
 0x7c6   : > { %v2391_v39 = vpop.f32.mrf.mxu3  ;;  %v2401_v46 = vsel %vm1464_vm3, %v2372_v38, -inf }
 0x7c7   : > { %v2404_v41 = vsel %vm1464_vm3, %v2391_v39, -inf }
 0x7c8   : > { %2405 = vmax.xlane.f32.xlu0 %v2404_v41  ;;  %v2336_v43 = vpop.f32.mrf.mxu0 }
 0x7ca   : > { %v2355_v44 = vpop.f32.mrf.mxu1 }
 0x7cc   : > { %2402 = vmax.xlane.f32.xlu2 %v2401_v46 }
 0x7cd   : > { %v2374_v47 = vpop.f32.mrf.mxu2 }
 0x7ce   : > { %v2393_v48 = vpop.f32.mrf.mxu3 }
 0x7dc   : > { %3433 = vrot.lane.b32.xlu0 %v3432_v49, %s3596_s20 }
 0x7e4   : > { %3438 = vrot.lane.b32.xlu2 %v3437_v50, %s3596_s20  ;;  %s4649_s20 = sld [smem:[#allocation30_spill]] }
 0x835   : > { %v2397_v51 = vpop.xlane.xlu1 %2396 }
 0x836   : > { %v2407_v52 = vsub.f32 %v2334_v34, %v2397_v51 }
 0x837   : > { %v2400_v53 = vpop.xlane.xlu2 %2399 }
 0x838   : > { %v2411_v54 = vmul.f32 1.442695, %v2407_v52  ;;  %v2408_v61 = vsub.f32 %v2353_v36, %v2400_v53 }
 0x83a   : > { %3475 = vpow2.f32 %v2411_v54  ;;  %v2413_v2 = vmul.f32 1.442695, %v2408_v61 }
 0x83b   : > { %v2406_v55 = vpop.xlane.xlu0 %2405 }
 0x83c   : > { %v2410_v63 = vsub.f32 %v2391_v39, %v2406_v55 }
 0x83e   : > { %v2417_v10 = vmul.f32 1.442695, %v2410_v63 }
 0x83f   : > { %v2403_v56 = vpop.xlane.xlu2 %2402 }
 0x840   : > { %v4320_v57 = vpop.eup %3475  ;;  %v2409_v58 = vsub.f32 %v2372_v38, %v2403_v56 }
 0x841   : > { %v2419_v40 = vsel %vm1464_vm3, %v4320_v57, 0.0 }
 0x842   : > { %v2415_v16 = vmul.f32 1.442695, %v2409_v58  ;;  %2420 = vadd.xlane.f32.xlu0 %v2419_v40 }
 0x844   : > { %3477 = vpow2.f32 %v2415_v16 }
 0x845   : > { %3479 = vpow2.f32 %v2417_v10 }
 0x846   : > { %3481 = vpow2.f32 %v2413_v2 }
 0x847   : > { %v3439_v6 = vpop.permute.xlu2 %3438 }
 0x848   : > { %v3441_v62 = vunpack.i.h.bf16 %v3439_v6  ;;  %v3440_v0 = vunpack.i.l.bf16 %v3439_v6 }
 0x84a   : > { %v4324_v60 = vpop.eup %3477  ;;  %v2213_v4 = vrot.slane %v3441_v62, 4  ;;  %v2201_v5 = vrot.slane %v3440_v0, 4 }
 0x84b   : > { %v2425_v1 = vsel %vm1464_vm3, %v4324_v60, 0.0  ;;  %v4328_v9 = vpop.eup %3479 }
 0x84c   : > { %2426 = vadd.xlane.f32.xlu1 %v2425_v1  ;;  %v2428_v19 = vsel %vm1464_vm3, %v4328_v9, 0.0  ;;  %v4344_v32 = vpop.eup %3481 }
 0x84d   : > { %v2422_v44 = vsel %vm1464_vm3, %v4344_v32, 0.0 }
 0x84e   : > { %v3434_v30 = vpop.permute.xlu0 %3433 }
 0x84f   : > { %v3436_v8 = vunpack.i.h.bf16 %v3434_v30  ;;  %v3435_v45 = vunpack.i.l.bf16 %v3434_v30 }
 0x851   : > { %v2215_v11 = vrot.slane %v3436_v8, 4  ;;  %v2202_v15 = vsel %vm1095_vm2, %v2201_v5, %v3435_v45  ;;  %v2203_v17 = vrot.slane %v3435_v45, 4  ;;  %v2214_v7 = vsel %vm1095_vm2, %v2213_v4, %v3436_v8 }
 0x852   : > { %v2208_v12 = vperm.slane %v2202_v15, %v3936_v24  ;;  %v2220_v13 = vperm.slane %v2214_v7, %v3936_v24 }
 0x853   : > { %v2204_v14 = vsel %vm1095_vm2, %v3440_v0, %v2203_v17  ;;  %v2216_v18 = vsel %vm1095_vm2, %v3441_v62, %v2215_v11 }
 0x854   : > { %v2212_v20 = vperm.slane %v2204_v14, %v3936_v24  ;;  %v2224_v21 = vperm.slane %v2216_v18, %v3936_v24  ;;  %v2225_v22 = vrot.slane %v2220_v13, 4  ;;  %v2227_v23 = vrot.slane %v2208_v12, 4  ;;  %2429 = vadd.xlane.f32.xlu1 %v2428_v19 }
 0x856   : > { %v2226_v25 = vsel %vm1095_vm2, %v2225_v22, %v2208_v12  ;;  %v2228_v26 = vsel %vm1095_vm2, %v2220_v13, %v2227_v23  ;;  %v2237_v27 = vrot.slane %v2224_v21, 4  ;;  %v2239_v28 = vrot.slane %v2212_v20, 4 }
 0x857   : > { %v2232_v29 = vperm.slane %v2226_v25, %v3944_v42  ;;  %v2236_v31 = vperm.slane %v2228_v26, %v3944_v42 }
 0x858   : > { %v2238_v33 = vsel %vm1095_vm2, %v2237_v27, %v2212_v20  ;;  %v2240_v34 = vsel %vm1095_vm2, %v2224_v21, %v2239_v28 }
 0x859   : > { %v2244_v35 = vperm.slane %v2238_v33, %v3944_v42  ;;  %v2248_v36 = vperm.slane %v2240_v34, %v3944_v42  ;;  %v2249_v37 = vrot.slane %v2232_v29, 4  ;;  %v2251_v38 = vrot.slane %v2236_v31, 4 }
 0x85b   : > { %v2252_v39 = vsel %vm1095_vm2, 0.0, %v2251_v38  ;;  %v2253_v41 = vrot.slane %v2244_v35, 4  ;;  %v2255_v43 = vrot.slane %v2248_v36, 4  ;;  %v2257_v46 = vsel %vm1095_vm2, %v2251_v38, %v2232_v29 }
 0x85c   : > { %v2262_v47 = vrot.slane %v2252_v39, 4  ;;  %2423 = vadd.xlane.f32.xlu1 %v2422_v44  ;;  %v2250_v48 = vsel %vm1095_vm2, 0.0, %v2249_v37  ;;  %v2261_v50 = vperm.slane %v2257_v46, %v3936_v24 }
 0x85d   : > { %v2256_v49 = vsel %vm1095_vm2, 0.0, %v2255_v43  ;;  %v2268_v51 = vsel %vm1095_vm2, %v2255_v43, %v2244_v35  ;;  %v2254_v55 = vsel %vm1095_vm2, 0.0, %v2253_v41 }
 0x85e   : > { %v2273_v52 = vrot.slane %v2256_v49, 4  ;;  %v2263_v53 = vsel %vm1095_vm2, %v2262_v47, %v2250_v48  ;;  %v2272_v54 = vperm.slane %v2268_v51, %v3936_v24  ;;  %v2281_v58 = vrot.slane %v2261_v50, 4 }
 0x85f   : > { %v2267_v56 = vperm.slane %v2263_v53, %v3936_v24 }
 0x860   : > { %v2274_v40 = vsel %vm1095_vm2, %v2273_v52, %v2254_v55  ;;  %v2293_v63 = vrot.slane %v2272_v54, 4 }
 0x861   : > { %v2278_v16 = vperm.slane %v2274_v40, %v3936_v24  ;;  %v2282_v10 = vsel %vm1095_vm2, %v2267_v56, %v2281_v58  ;;  %v2279_v6 = vrot.slane %v2267_v56, 4 }
 0x862   : > { %v2290_v61 = vperm.slane %v2282_v10, %v3944_v42 }
 0x863   : > { %v2294_v62 = vsel %vm1095_vm2, %v2278_v16, %v2293_v63  ;;  %v2280_v0 = vsel %vm1095_vm2, %v2279_v6, %v2261_v50  ;;  %v2291_v1 = vrot.slane %v2278_v16, 4 }
 0x864   : > { %v2302_v2 = vperm.slane %v2294_v62, %v3944_v42  ;;  %v2309_v30 = vrot.slane %v2290_v61, 4  ;;  %v2286_v4 = vperm.slane %v2280_v0, %v3944_v42 }
 0x865   : > { %v2292_v5 = vsel %vm1095_vm2, %v2291_v1, %v2272_v54 }
 0x866   : > { %v2310_v8 = vsel %vm1095_vm2, %v2302_v2, %v2309_v30  ;;  %v2298_v45 = vperm.slane %v2292_v5, %v3944_v42  ;;  %v2305_v11 = vrot.slane %v2286_v4, 4  ;;  %v2307_v15 = vrot.slane %v2302_v2, 4 }
 0x867   : > { %v2446_v17 = vpack.c.bf16 %v2310_v8, %v2310_v8 }
 0x868   : > { %v2306_v7 = vsel %vm1095_vm2, %v2298_v45, %v2305_v11  ;;  %v2308_v12 = vsel %vm1095_vm2, %v2307_v15, %v2290_v61  ;;  %v2303_v13 = vrot.slane %v2298_v45, 4 }
 0x869   : > { %v2508_v14 = vsel %vm1596_vm4, %v2446_v17, 0  ;;  %v2444_v18 = vpack.c.bf16 %v2306_v7, %v2306_v7  ;;  %v2445_v19 = vpack.c.bf16 %v2308_v12, %v2308_v12 }
 0x86a   : > { %2517 = vmatpush.bf16.msrb.mxu3 %v2508_v14  ;;  %v2304_v20 = vsel %vm1095_vm2, %v2303_v13, %v2286_v4 }
 0x86b   : > { %v2470_v21 = vsel %vm1596_vm4, %v2444_v18, 0  ;;  %v2489_v22 = vsel %vm1596_vm4, %v2445_v19, 0  ;;  %v2443_v23 = vpack.c.bf16 %v2304_v20, %v2304_v20 }
 0x86c   : > { %2479 = vmatpush.bf16.msra.mxu1 %v2470_v21  ;;  %2498 = vmatpush.bf16.msrb.mxu2 %v2489_v22 }
 0x86d   : > { %v2451_v25 = vsel %vm1596_vm4, %v2443_v23, 0 }
 0x86e   : > { %2460 = vmatpush.bf16.msra.mxu0 %v2451_v25 }
 0x8b5   : > { %v2421_v26 = vpop.xlane.xlu0 %2420 }
 0x8b6   : > { %3483 = vrcp.f32 %v2421_v26 }
 0x8bc   : > { %v3484_v27 = vpop.eup %3483 }
 0x8bd   : > { %v2435_v28 = vmul.f32 %v3484_v27, %v4320_v57 }
 0x8bf   : > { %v2439_v29 = vpack.c.bf16 %v2435_v28, %v2435_v28  ;;  %v2427_v31 = vpop.xlane.xlu1 %2426 }
 0x8c0   : > { %3485 = vrcp.f32 %v2427_v31 }
 0x8c1   : > { %3245 = vmatmul.msk.bf16.vlgmr.msra.gmra.mxu0 %vm1464_vm3, %v2439_v29 }
 0x8c6   : > { %v3486_v33 = vpop.eup %3485 }
 0x8c7   : > { %v2437_v34 = vmul.f32 %v3486_v33, %v4324_v60  ;;  %v2430_v35 = vpop.xlane.xlu1 %2429 }
 0x8c8   : > { %3487 = vrcp.f32 %v2430_v35 }
 0x8c9   : > { %v2441_v36 = vpack.c.bf16 %v2437_v34, %v2437_v34 }
 0x8cb   : > { %3247 = vmatmul.msk.bf16.vlgmr.msrb.gmra.mxu2 %vm1464_vm3, %v2441_v36 }
 0x8ce   : > { %v3488_v37 = vpop.eup %3487 }
 0x8cf   : > { %v2438_v38 = vmul.f32 %v3488_v37, %v4328_v9  ;;  %v2424_v39 = vpop.xlane.xlu1 %2423 }
 0x8d0   : > { %3489 = vrcp.f32 %v2424_v39 }
 0x8d1   : > { %v2442_v41 = vpack.c.bf16 %v2438_v38, %v2438_v38 }
 0x8d3   : > { %3248 = vmatmul.msk.bf16.vlgmr.msrb.gmra.mxu3 %vm1464_vm3, %v2442_v41 }
 0x8d6   : > { %v3490_v57 = vpop.eup %3489 }
 0x8d7   : > { %v2436_v43 = vmul.f32 %v3490_v57, %v4344_v32 }
 0x8d9   : > { %v2440_v44 = vpack.c.bf16 %v2436_v43, %v2436_v43 }
 0x8db   : > { %3246 = vmatmul.msk.bf16.vlgmr.msra.gmra.mxu1 %vm1464_vm3, %v2440_v44 }
 0x93e   : > { %v2462_v60 = vpop.f32.mrf.mxu0 }
 0x93f   : > { %v2525_v49 = vrot.slane %v2462_v60, 4 }
 0x946   : > { %v2464_v46 = vpop.f32.mrf.mxu0 }
 0x94e   : > { %v2500_v47 = vpop.f32.mrf.mxu2 }
 0x94f   : > { %v2523_v48 = vrot.slane %v2500_v47, 4  ;;  %v2526_v9 = vsel %vm1095_vm2, %v2500_v47, %v2525_v49 }
 0x950   : > { %v2534_v55 = vperm.slane %v2526_v9, %v3936_v24 }
 0x951   : > { %v2524_v50 = vsel %vm1095_vm2, %v2523_v48, %v2462_v60 }
 0x952   : > { %v2530_v51 = vperm.slane %v2524_v50, %v3936_v24  ;;  %v2561_v10 = vrot.slane %v2534_v55, 4 }
 0x954   : > { %v2549_v40 = vrot.slane %v2530_v51, 4 }
 0x956   : > { %v2502_v52 = vpop.f32.mrf.mxu2  ;;  %v2519_v53 = vpop.f32.mrf.mxu3 }
 0x957   : > { %v2535_v54 = vrot.slane %v2519_v53, 4 }
 0x958   : > { %v2481_v32 = vpop.f32.mrf.mxu1 }
 0x959   : > { %v2536_v56 = vsel %vm1095_vm2, %v2535_v54, %v2481_v32  ;;  %v2537_v58 = vrot.slane %v2481_v32, 4 }
 0x95a   : > { %v2542_v63 = vperm.slane %v2536_v56, %v3936_v24 }
 0x95b   : > { %v2538_v16 = vsel %vm1095_vm2, %v2519_v53, %v2537_v58  ;;  %v3319_v53 = vld [vmem:[%s4648_s0 + $0x8] sm:$0xff] }
 0x95c   : > { %v2546_v6 = vperm.slane %v2538_v16, %v3936_v24  ;;  %v2547_v61 = vrot.slane %v2542_v63, 4  ;;  %v2550_v62 = vsel %vm1095_vm2, %v2542_v63, %v2549_v40  ;;  %2673 = vmatpush.bf16.msrb.mxu0 %v3319_v53 }
 0x95d   : > { %v2558_v0 = vperm.slane %v2550_v62, %v3944_v42 }
 0x95e   : > { %v2548_v1 = vsel %vm1095_vm2, %v2547_v61, %v2530_v51  ;;  %v2559_v2 = vrot.slane %v2546_v6, 4  ;;  %v2562_v30 = vsel %vm1095_vm2, %v2546_v6, %v2561_v10  ;;  %v2521_v4 = vpop.f32.mrf.mxu3 }
 0x95f   : > { %v2554_v5 = vperm.slane %v2548_v1, %v3944_v42  ;;  %v2570_v8 = vperm.slane %v2562_v30, %v3944_v42  ;;  %v2573_v45 = vrot.slane %v2558_v0, 4 }
 0x960   : > { %v2560_v11 = vsel %vm1095_vm2, %v2559_v2, %v2534_v55  ;;  %v2483_v15 = vpop.f32.mrf.mxu1 }
 0x961   : > { %v2566_v17 = vperm.slane %v2560_v11, %v3944_v42  ;;  %v2571_v7 = vrot.slane %v2554_v5, 4  ;;  %v2574_v12 = vsel %vm1095_vm2, 0.0, %v2573_v45  ;;  %v2577_v13 = vrot.slane %v2570_v8, 4  ;;  %v3321_v8 = vld [vmem:[%s3878_s2 + $0x8] sm:$0xff]  ;;  %v3329_v11 = vld [vmem:[%s3888_s15 + $0x38] sm:$0xff] }
 0x962   : > { %v2579_v14 = vsel %vm1095_vm2, %v2573_v45, %v2554_v5  ;;  %v2584_v18 = vrot.slane %v2574_v12, 4  ;;  %2760 = vmatpush.bf16.msrb.mxu1 %v3321_v8  ;;  %v3320_v45 = vld [vmem:[%s3878_s2] sm:$0xff]  ;;  %2828 = vmatpush.bf16.msra.mxu2 %v3329_v11 }
 0x963   : > { %v2572_v19 = vsel %vm1095_vm2, 0.0, %v2571_v7  ;;  %v2575_v20 = vrot.slane %v2566_v17, 4  ;;  %v2578_v21 = vsel %vm1095_vm2, 0.0, %v2577_v13  ;;  %v2583_v22 = vperm.slane %v2579_v14, %v3936_v24 }
 0x964   : > { %v2595_v23 = vrot.slane %v2578_v21, 4  ;;  %v2585_v25 = vsel %vm1095_vm2, %v2584_v18, %v2572_v19  ;;  %v2590_v26 = vsel %vm1095_vm2, %v2577_v13, %v2566_v17 }
 0x965   : > { %v2576_v27 = vsel %vm1095_vm2, 0.0, %v2575_v20  ;;  %v2589_v28 = vperm.slane %v2585_v25, %v3936_v24  ;;  %v2594_v29 = vperm.slane %v2590_v26, %v3936_v24  ;;  %v2603_v31 = vrot.slane %v2583_v22, 4 }
 0x966   : > { %v2596_v33 = vsel %vm1095_vm2, %v2595_v23, %v2576_v27  ;;  %2761 = vmatpush.bf16.msrb.mxu1 %v3320_v45 }
 0x967   : > { %v2600_v34 = vperm.slane %v2596_v33, %v3936_v24  ;;  %v2615_v35 = vrot.slane %v2594_v29, 4  ;;  %v2601_v36 = vrot.slane %v2589_v28, 4  ;;  %v2604_v37 = vsel %vm1095_vm2, %v2589_v28, %v2603_v31  ;;  %v3328_v28 = vld [vmem:[%s3888_s15 + $0x30] sm:$0xff]  ;;  %v3326_v31 = vld [vmem:[%s3888_s15 + $0x20] sm:$0xff]  ;;  %v3325_v33 = vld [vmem:[%s3888_s15 + $0x18] sm:$0xff] }
 0x968   : > { %v2612_v60 = vperm.slane %v2604_v37, %v3944_v42  ;;  %2829 = vmatpush.bf16.msra.mxu2 %v3328_v28  ;;  %v3451_v37 = vld [vmem:[%s1021_s23] ss:$0 sm:$0xff] }
 0x969   : > { %v2616_v38 = vsel %vm1095_vm2, %v2600_v34, %v2615_v35  ;;  %v2602_v39 = vsel %vm1095_vm2, %v2601_v36, %v2583_v22  ;;  %v2613_v41 = vrot.slane %v2600_v34, 4  ;;  %v3450_v22 = vld [vmem:[%s4654_s8] ss:$0 sm:$0xff]  ;;  %v3324_v34 = vld [vmem:[%s3888_s15 + $0x10] sm:$0xff]  ;;  %v3323_v35 = vld [vmem:[%s3888_s15 + $0x8] sm:$0xff] }
 0x96a   : > { %v2624_v57 = vperm.slane %v2616_v38, %v3944_v42  ;;  %v2608_v43 = vperm.slane %v2602_v39, %v3944_v42  ;;  %v2631_v51 = vrot.slane %v2612_v60, 4  ;;  %v3322_v36 = vld [vmem:[%s3888_s15] sm:$0xff] }
 0x96b   : > { %v2614_v44 = vsel %vm1095_vm2, %v2613_v41, %v2594_v29  ;;  %v3327_v29 = vld [vmem:[%s3888_s15 + $0x28] sm:$0xff] }
 0x96c   : > { %v2629_v24 = vrot.slane %v2624_v57, 4  ;;  %v2620_v46 = vperm.slane %v2614_v44, %v3944_v42  ;;  %v2627_v47 = vrot.slane %v2608_v43, 4  ;;  %v2632_v52 = vsel %vm1095_vm2, %v2624_v57, %v2631_v51  ;;  %v3318_v42 = vld [vmem:[%s4648_s0] sm:$0xff]  ;;  %2830 = vmatpush.bf16.msra.mxu2 %v3327_v29 }
 0x96d   : > { %2674 = vmatpush.bf16.msrb.mxu0 %v3318_v42 }
 0x96e   : > { %v2630_v48 = vsel %vm1095_vm2, %v2629_v24, %v2612_v60  ;;  %v2625_v49 = vrot.slane %v2620_v46, 4  ;;  %v2628_v50 = vsel %vm1095_vm2, %v2620_v46, %v2627_v47 }
 0x96f   : > { %2638 = vrot.lane.b32.xlu1 %v2630_v48, %s3600_s27  ;;  %2634 = vrot.lane.b32.xlu2 %v2628_v50, %s3601_s7  ;;  %s4650_s27 = scalar_lea.vmem %s4649_s20, %s3797_s3 }
 0x970   : > { %v2626_v9 = vsel %vm1095_vm2, %v2625_v49, %v2608_v43  ;;  %v3448_v16 = vld [vmem:[%s4650_s27] ss:$0 sm:$0xff]  ;;  %2831 = vmatpush.bf16.msra.mxu2 %v3326_v31 }
 0x974   : > { %2832 = vmatpush.bf16.msra.mxu2 %v3325_v33 }
 0x977   : > { %2642 = vrot.lane.b32.xlu2 %v2632_v52, %s3602_s5  ;;  %s4651_s5 = sld [smem:[#allocation32_spill]] }
 0x978   : > { %2833 = vmatpush.bf16.msra.mxu2 %v3324_v34 }
 0x97c   : > { %2834 = vmatpush.bf16.msra.mxu2 %v3323_v35 }
 0x97d   : > { %s4652_s25 = scalar_lea.vmem %s4651_s5, %s3797_s3 }
 0x97e   : > { %v3449_v20 = vld [vmem:[%s4652_s25] ss:$0 sm:$0xff]  ;;  %s2888_s25 = sshll.u32 %s3895_s21, 4  ;;  %s2889_s25 = int_to_ptr.vmem [resolvable:$true] %s2888_s25 }
 0x980   : > { %2835 = vmatpush.bf16.msra.mxu2 %v3322_v36 }
 0x9c9   : > { %v2635_v54 = vpop.permute.xlu2 %2634 }
 0x9ca   : > { %v2645_v55 = vsel %vm1464_vm3, %v2626_v9, %v2635_v54  ;;  %v3452_v9 = vld [vmem:[%s1029_s11] ss:$0 sm:$0xff]  ;;  %s3300_s11 = sshll.u32 %s4657_s29, 3 }
 0x9cb   : > { %s2886_s20 = scalar_lea.hbm %s4660_s6, %s3300_s11 }
 0x9cc   : > { %s2890_s26 = sshll.u32 %s2886_s20, 4  ;;  %s2891_s26 = int_to_ptr.hbm [resolvable:$true] %s2890_s26 }
 0x9cd   : > { %s3511_s4 = sshra.s32 %s2891_s26, 4  ;;  %s3512_s4 = int_to_ptr.hbm [resolvable:$true] %s3511_s4 }
 0x9ce   : > { %s3513_s8 = scalar_lea.hbm %s3512_s4, 8  ;;  %p3518_p5 = scmp.lt.s32.totalorder %s3512_s4, %s4660_s6 }
 0x9cf   : > { %p3514_p1 = scmp.ne.s32.totalorder %s3512_s4, %s3513_s8 }
 0x9d1   : > { %v2643_v56 = vpop.permute.xlu2 %2642  ;;  %p3515_p2 = pnand %p3514_p1, %p3768_p3 }
 0x9d3   : > { %p3516_p4 = pneg %p3515_p2 }
 0x9e1   : > { %v2639_v32 = vpop.permute.xlu1 %2638 }
 0x9e2   : > { %v2646_v58 = vsel %vm1793_vm5, %v2645_v55, %v2639_v32 }
 0x9e3   : > { %v2647_v40 = vsel %vm1795_vm6, %v2646_v58, %v2643_v56 }
 0x9e4   : > { %v2648_v63 = vpack.c.bf16 %v2647_v40, %v2647_v40 }
 0x9e6   : > { %3257 = vmatmul.msk.bf16.vlgmr.msrb.gmra.mxu0 %vm1066_vm1, %v2648_v63 }
 0xa63   : > { %v2676_v10 = vpop.f32.mrf.mxu0 }
 0xa64   : > { %v2677_v6 = vadd.f32 %v3448_v16, %v2676_v10 }
 0xa66   : > { %v2680_v61 = vadd.f32 %v2677_v6, %v4195_v59 }
 0xa68   : > { %v2683_v62 = vsel %vm1066_vm1, %v2680_v61, 0.0 }
 0xa69   : > { %2684 = vadd.xlane.f32.xlu2 %v2683_v62 }
 0xa6b   : > { %v2678_v0 = vpop.f32.mrf.mxu0 }
 0xadc   : > { %v2685_v1 = vpop.xlane.xlu2 %2684 }
 0xadd   : > { %v2686_v2 = vmul.f32 %v2685_v1, %v4165_v3 }
 0xadf   : > { %v2687_v30 = vsub.f32 %v2680_v61, %v2686_v2 }
 0xae1   : > { %v2688_v4 = vmul.f32 %v2687_v30, %v2687_v30 }
 0xae3   : > { %v2689_v5 = vsel %vm1066_vm1, %v2688_v4, 0.0 }
 0xae4   : > { %2690 = vadd.xlane.f32.xlu1 %v2689_v5  ;;  %v3454_v5 = vld [vmem:[%s1013_s30] ss:$0 sm:$0xff]  ;;  %s3517_s30 = scalar_lea.hbm %s4660_s6, 16 }
 0xae5   : > { %p3519_p6 = scmp.lt.s32.totalorder %s3517_s30, %s3513_s8 }
 0xae7   : > { %p3520_p7 = por %p3519_p6, %p3518_p5 }
 0xae9   : > { %p3521_p8 = pnand %p3520_p7, %p3516_p4 }
 0xb57   : > { %v2691_v15 = vpop.xlane.xlu1 %2690 }
 0xb58   : > { %v2692_v59 = vmul.f32 %v2691_v15, %v4165_v3 }
 0xb5a   : > { %v2693_v17 = vadd.f32 1e-05, %v2692_v59 }
 0xb5c   : > { %3491 = vrsqrt.f32 %v2693_v17  ;;  %vm2700_vm12 = vweird.f32 %v2693_v17 }
 0xb62   : > { %v3492_v7 = vpop.eup %3491 }
 0xb63   : > { %v2695_v12 = vmul.f32 %v3492_v7, %v2693_v17  ;;  %vm2701_vm11 = vweird.f32 %v3492_v7 }
 0xb64   : > { %vm2702_vm13 = vmor %vm2700_vm12, %vm2701_vm11 }
 0xb65   : > { %v2696_v13 = vmul.f32 %v3492_v7, %v2695_v12 }
 0xb67   : > { %v2697_v14 = vmul.f32 0.5, %v2696_v13 }
 0xb69   : > { %v2698_v18 = vsub.f32 1.5, %v2697_v14 }
 0xb6b   : > { %v2699_v19 = vmul.f32 %v3492_v7, %v2698_v18 }
 0xb6d   : > { %v2703_v21 = vsel %vm2702_vm13, %v3492_v7, %v2699_v19 }
 0xb6e   : > { %v2704_v23 = vmul.f32 %v2703_v21, %v2687_v30 }
 0xb70   : > { %v2708_v25 = vmul.f32 %v3449_v20, %v2704_v23 }
 0xb72   : > { %v2712_v26 = vadd.f32 %v3450_v22, %v2708_v25 }
 0xb74   : > { %v2735_v27 = vpack.c.bf16 %v2712_v26, %v2712_v26 }
 0xb76   : > { %3266 = vmatmul.msk.bf16.vlgmr.msrb.gmra.mxu1 %vm1066_vm1, %v2735_v27 }
 0xbf3   : > { %v2763_v38 = vpop.f32.mrf.mxu1 }
 0xbf4   : > { %v2764_v39 = vadd.f32 %v3451_v37, %v2763_v38 }
 0xbf6   : > { %v2767_v41 = vmul.f32 %v2764_v39, %v2764_v39 }
 0xbf8   : > { %v2768_v57 = vmul.f32 %v2767_v41, %v2764_v39 }
 0xbfa   : > { %v2769_v43 = vmul.f32 0.044715, %v2768_v57 }
 0xbfb   : > { %v2765_v44 = vpop.f32.mrf.mxu1 }
 0xbfc   : > { %v2770_v60 = vadd.f32 %v2769_v43, %v2764_v39 }
 0xbfe   : > { %v2771_v24 = vmul.f32 0.7978846, %v2770_v60 }
 0xc00   : > { %3493 = vtanh.f32 %v2771_v24 }
 0xc06   : > { %v3494_v46 = vpop.eup %3493 }
 0xc07   : > { %v2773_v47 = vadd.f32 1.0, %v3494_v46 }
 0xc09   : > { %v2774_v48 = vmul.f32 0.5, %v2773_v47 }
 0xc0b   : > { %v2775_v49 = vmul.f32 %v2774_v48, %v2764_v39 }
 0xc0d   : > { %v2776_v50 = vpack.c.bf16 %v2775_v49, %v2775_v49 }
 0xc0f   : > { %2836 = vmatmul.bf16.vlgmr.msra.gmra.mxu2 %v2776_v50 }
 0xc92   : > { %v2837_v51 = vpop.f32.mrf.mxu2 }
 0xc93   : > { %v2838_v52 = vadd.f32 %v3452_v9, %v2837_v51 }
 0xc95   : > { %v2841_v53 = vadd.f32 %v2838_v52, %v2712_v26 }
 0xc97   : > { %v2844_v42 = vsel %vm1066_vm1, %v2841_v53, 0.0 }
 0xc98   : > { %2845 = vadd.xlane.f32.xlu0 %v2844_v42 }
 0xc9a   : > { %v2839_v54 = vpop.f32.mrf.mxu2 }
 0xd0b   : > { %v2846_v55 = vpop.xlane.xlu0 %2845 }
 0xd0c   : > { %v2847_v32 = vmul.f32 %v2846_v55, %v4165_v3 }
 0xd0e   : > { %v2848_v56 = vsub.f32 %v2841_v53, %v2847_v32 }
 0xd10   : > { %v2849_v58 = vmul.f32 %v2848_v56, %v2848_v56 }
 0xd12   : > { %v2850_v40 = vsel %vm1066_vm1, %v2849_v58, 0.0 }
 0xd13   : > { %2851 = vadd.xlane.f32.xlu0 %v2850_v40 }
 0xd86   : > { %v2852_v63 = vpop.xlane.xlu0 %2851 }
 0xd87   : > { %v2853_v16 = vmul.f32 %v2852_v63, %v4165_v3  ;;  %v3453_v3 = vld [vmem:[%s1010_s28] ss:$0 sm:$0xff]  ;;  %s4663_s28 = sand.u32 1, %s4658_s17  }
 0xd88   : > { %s2876_s19 = scalar_lea.sflag [#allocation3], %s4663_s28 }
 0xd89   : > { %v2854_v10 = vadd.f32 1e-05, %v2853_v16 }
 0xd8b   : > { %3495 = vrsqrt.f32 %v2854_v10  ;;  %vm2861_vm15 = vweird.f32 %v2854_v10 }
 0xd91   : > { %v3496_v6 = vpop.eup %3495 }
 0xd92   : > { %v2856_v61 = vmul.f32 %v3496_v6, %v2854_v10  ;;  %vm2862_vm14 = vweird.f32 %v3496_v6 }
 0xd93   : > { %vm2863_vm0 = vmor %vm2861_vm15, %vm2862_vm14 }
 0xd94   : > { %v2857_v62 = vmul.f32 %v3496_v6, %v2856_v61 }
 0xd96   : > { %v2858_v0 = vmul.f32 0.5, %v2857_v62 }
 0xd98   : > { %v2859_v1 = vsub.f32 1.5, %v2858_v0 }
 0xd9a   : > { %v2860_v2 = vmul.f32 %v3496_v6, %v2859_v1 }
 0xd9c   : > { %v2864_v30 = vsel %vm2863_vm0, %v3496_v6, %v2860_v2 }
 0xd9d   : > { %v2865_v4 = vmul.f32 %v2864_v30, %v2848_v56 }
 0xd9f   : > { %v2869_v8 = vmul.f32 %v3453_v3, %v2865_v4 }
 0xda1   : > { %v2873_v45 = vadd.f32 %v3454_v5, %v2869_v8 }
 0xda3   : > { %2874 = vst.msk [vmem:[%s3895_s21] sm:$0xff] %vm1066_vm1, %v2873_v45 }
 0xda4   : > { %3524 = shalt.err (!%p3521_p8)
}
 0xda5   : > { %3330 = dma.vmem_to_hbm [thread:$0]  (%p3768_p3), %s2889_s25, 128, %s2891_s26, %s2876_s19  }
 0xda6 PF: > { %s4664_s21 = sld [smem:[#allocation12_spill]] }
 0xda7   : > { %s4665_s15 = sld [smem:[#allocation5_spill]] }
 0xdac   : > { %p3336_p10 = scmp.ge.s32.totalorder %s4664_s21, 2 }
 0xdad   : > { %s2902_s23 = sand.u32 1, %s4665_s15  }
 0xdae   : > { %p3333_p11 = pnand %p3336_p10, %p3778_p9  ;;  %s2903_s29 = scalar_lea.sflag [#allocation3], %s2902_s23 }
 0xdb0   : > { %p3334_p12 = pneg %p3333_p11 }
 0xdb2   : > { %3558 = dma.done.wait (%p3334_p12), %s2903_s29, 128  }
 0xdb3   : > { %3560 = vsyncadd (%p3334_p12), %s2903_s29, 4294967168  ;;  %s35_s1 = sadd.s32 1, %s4664_s21   ;;  %s4667_s3 = sld [smem:[#allocation6_spill]] }
 0xdb4   : > { %p32_p13 = scmp.ge.s32.totalorder %s35_s1, 6   ;;  %s4668_s28 = sld [smem:[#allocation7_spill]] }
 0xdb5   : > { %s4669_s29 = sld [smem:[#allocation17_spill]] }
 0xdb6   : > { %s4670_s30 = sld [smem:[#allocation10_spill]]  ;;  %34 = sbr.rel (!%p32_p13) target bundleno = 27 (0x1b), region = 210 }
 0xdb7   : > { %s4671_s4 = sld [smem:[#allocation11_spill]] }
 0xdb8   : > { %s4672_s0 = sld [smem:[#allocation13_spill]] }
 0xdb9   : > { %s4673_s23 = sld [smem:[#allocation15_spill]] }
 0xdbb   :  { %2909 = vsyncpa [#allocation3], 1 }
 0xdbc   :  { %2911 = vsyncpa [#allocation3 + $0x1], 1 }

</bundles_post_ra>
